<compile_context>
chip_gen: v6e
topology: v6e:2x2x1
jax: 0.10.0
libtpu: 0.0.40
codegen_flags: <defaults>
</compile_context>

<pallas_src>
import functools

import jax
import jax.numpy as jnp
from jax.experimental import pallas as pl
from jax.experimental.pallas import tpu as pltpu


def _round_up(v, m):
    return (v + m - 1) // m * m


def _conv_stats_kernel(x_ref, w_ref, conv_ref, stat_ref, *, TH, W, KH, KW):
    """Pass 1: 3x3 conv as 9 accumulating MXU dots + per-tile BN partial sums.

    x_ref:    (Hp, Wp, Cin_p)     bf16          zero-padded image of one batch element
    w_ref:    (KH*KW, Cin_p, Cp)  bf16          tap-major conv weights (zero-padded)
    conv_ref: (TH*W, Cp)          bf16 or f32   conv rows for this (n, h) tile
    stat_ref: (8, Cp)             f32           row 0 = sum, row 1 = sum of squares
    """
    h = pl.program_id(1)
    THW, Cp = conv_ref.shape
    Cin_p = x_ref.shape[-1]

    acc = jnp.zeros((THW, Cp), jnp.float32)
    for t in range(KH * KW):                     # static -> unrolled 9 taps
        kh, kw = t // KW, t % KW
        # Tap-shifted window: rows [h*TH+kh, +TH), cols [kw, +W), all channels.
        xs = x_ref[pl.ds(h * TH + kh, TH), pl.ds(kw, W), :]      # (TH, W, Cin_p) bf16
        lhs = xs.reshape(THW, Cin_p)                             # bf16 operand
        acc = acc + jnp.dot(lhs, w_ref[t], preferred_element_type=jnp.float32)

    conv_ref[...] = acc.astype(conv_ref.dtype)

    # Per-tile BN partial statistics from the f32 accumulator (exact batch
    # stats are finalized outside); full-sublane store keeps it unmasked.
    s1 = jnp.sum(acc, axis=0, keepdims=True)            # (1, Cp)
    s2 = jnp.sum(acc * acc, axis=0, keepdims=True)       # (1, Cp)
    row = jax.lax.broadcasted_iota(jnp.int32, (8, Cp), 0)
    stat_ref[...] = jnp.where(row == 0, s1, jnp.where(row == 1, s2, 0.0))


def _bn_hswish_kernel(conv_ref, ss_ref, out_ref):
    """Pass 2: y = conv * scale + shift;  Hardswish(y) = y * relu6(y + 3) / 6."""
    scale = ss_ref[0:1, :]
    shift = ss_ref[1:2, :]
    y = conv_ref[...].astype(jnp.float32) * scale + shift
    out_ref[...] = y * jnp.clip(y + 3.0, 0.0, 6.0) * (1.0 / 6.0)


def conv_bn_activation(x_nchw, weight_oihw, gamma, beta, eps=1e-5):
    """Forward pass of ConvBNActivation (kernel_size=3, stride=1, groups=1)."""
    N, Cin, H, W = x_nchw.shape
    Cout, Cin_w, KH, KW = weight_oihw.shape
    assert Cin == Cin_w and KH == 3 and KW == 3
    pad = (KH - 1) // 2

    Cin_p = _round_up(Cin, 8)        # sublane-friendly contraction dim
    Cp = _round_up(Cout, 128)        # lane-dense output channels

    # H tile: largest divisor of H with (TH*W) % mult == 0 and TH*W rows <= cap.
    # Prefer mult=16 so the conv intermediate can be bf16 (halves HBM traffic).
    ROW_CAP = 1024

    def pick_th(mult):
        for cand in range(min(H, max(1, ROW_CAP // W)), 0, -1):
            if H % cand == 0 and (cand * W) % mult == 0:
                return cand
        return None

    TH = pick_th(16)
    conv_dtype = jnp.bfloat16
    if TH is None:
        TH = pick_th(8)
        conv_dtype = jnp.float32
    assert TH is not None, "need an H tile with TH*W % 8 == 0"
    num_h = H // TH
    THW = TH * W
    M = N * H * W
    G = N * num_h
    Hp, Wp = H + 2 * pad, W + 2 * pad

    # ---- glue (plain JAX): layout, padding, bf16 cast ----
    x = jnp.transpose(x_nchw, (0, 2, 3, 1))                               # NHWC
    x = jnp.pad(x, ((0, 0), (pad, pad), (pad, pad), (0, Cin_p - Cin)))
    x = x.astype(jnp.bfloat16)                                            # (N,Hp,Wp,Cin_p)

    w = jnp.transpose(weight_oihw, (2, 3, 1, 0))                          # (KH,KW,Cin,Cout)
    w = jnp.pad(w, ((0, 0), (0, 0), (0, Cin_p - Cin), (0, Cp - Cout)))
    w = w.reshape(KH * KW, Cin_p, Cp).astype(jnp.bfloat16)

    g = jnp.pad(gamma.astype(jnp.float32), (0, Cp - Cout))
    b = jnp.pad(beta.astype(jnp.float32), (0, Cp - Cout))

    # ---- pass 1: conv + per-tile BN partial sums ----
    kernel1 = functools.partial(_conv_stats_kernel, TH=TH, W=W, KH=KH, KW=KW)
    conv_flat, stats = pl.pallas_call(
        kernel1,
        out_shape=(jax.ShapeDtypeStruct((M, Cp), conv_dtype),
                   jax.ShapeDtypeStruct((G, 8, Cp), jnp.float32)),
        grid=(N, num_h),
        in_specs=[
            # Padded image of batch n; block index ignores h -> stays resident
            # across that image's h-tiles (fetched once per n).
            pl.BlockSpec((None, Hp, Wp, Cin_p), lambda n, h: (n, 0, 0, 0)),
            # Weights resident for the whole grid.
            pl.BlockSpec((KH * KW, Cin_p, Cp), lambda n, h: (0, 0, 0)),
        ],
        out_specs=(
            pl.BlockSpec((THW, Cp), lambda n, h: (n * num_h + h, 0)),
            pl.BlockSpec((None, 8, Cp), lambda n, h: (n * num_h + h, 0, 0)),
        ),
        compiler_params=pltpu.CompilerParams(
            dimension_semantics=("parallel", "parallel"),
            vmem_limit_bytes=32 * 1024 * 1024),
    )(x, w)

    # ---- finalize BN stats (tiny (G, Cp) reduction; exact batch statistics) ----
    s1 = jnp.sum(stats[:, 0, :], axis=0)
    s2 = jnp.sum(stats[:, 1, :], axis=0)
    mean = s1 / M
    var = jnp.maximum(s2 / M - mean * mean, 0.0)     # biased (training-mode) var
    scale = g * jax.lax.rsqrt(var + eps)
    shift = b - mean * scale
    # Pack scale/shift into one sublane-aligned operand: row 0 = scale, row 1 = shift.
    ss = jnp.zeros((8, Cp), jnp.float32).at[0].set(scale).at[1].set(shift)

    # ---- pass 2: BN apply + Hardswish, lane-dense tiles over M ----
    TM2 = THW
    while TM2 * 2 <= 2048 and M % (TM2 * 2) == 0:
        TM2 *= 2

    out_flat = pl.pallas_call(
        _bn_hswish_kernel,
        out_shape=jax.ShapeDtypeStruct((M, Cp), jnp.float32),
        grid=(M // TM2,),
        in_specs=[
            pl.BlockSpec((TM2, Cp), lambda i: (i, 0)),
            pl.BlockSpec((8, Cp), lambda i: (0, 0)),
        ],
        out_specs=pl.BlockSpec((TM2, Cp), lambda i: (i, 0)),
        compiler_params=pltpu.CompilerParams(
            dimension_semantics=("parallel",),
            vmem_limit_bytes=32 * 1024 * 1024),
    )(conv_flat, ss)

    # ---- glue: drop channel padding, back to NCHW ----
    out = out_flat.reshape(N, H, W, Cp)[:, :, :, :Cout].transpose(0, 3, 1, 2)
    return out


def _reference(x_nchw, weight_oihw, gamma, beta, eps=1e-5):
    """Pure-JAX reference matching PyTorch semantics (training-mode BN)."""
    conv = jax.lax.conv_general_dilated(
        x_nchw.astype(jnp.float32), weight_oihw.astype(jnp.float32),
        window_strides=(1, 1), padding=((1, 1), (1, 1)),
        dimension_numbers=("NCHW", "OIHW", "NCHW"))
    mean = jnp.mean(conv, axis=(0, 2, 3), keepdims=True)
    var = jnp.mean(jnp.square(conv - mean), axis=(0, 2, 3), keepdims=True)
    y = (conv - mean) * jax.lax.rsqrt(var + eps)
    y = y * gamma.reshape(1, -1, 1, 1) + beta.reshape(1, -1, 1, 1)
    return y * jnp.clip(y + 3.0, 0.0, 6.0) / 6.0


if __name__ == "__main__":
    key = jax.random.PRNGKey(0)
    k_x, k_w, k_g, k_b = jax.random.split(key, 4)

    N, Cin, H, W = 2, 4, 16, 16
    Cout = 8

    x = jax.random.normal(k_x, (N, Cin, H, W), dtype=jnp.float32)
    weight = 0.1 * jax.random.normal(k_w, (Cout, Cin, 3, 3), dtype=jnp.float32)
    gamma = 1.0 + 0.1 * jax.random.normal(k_g, (Cout,), dtype=jnp.float32)
    beta = 0.05 * jax.random.normal(k_b, (Cout,), dtype=jnp.float32)

    out = conv_bn_activation(x, weight, gamma, beta)
    out = jax.block_until_ready(out)

    ref = _reference(x, weight, gamma, beta)
    assert out.shape == (N, Cout, H, W)
    # bf16 matmul operands + bf16 conv intermediate (f32 accumulate / f32 BN
    # statistics) -> slightly relaxed tolerance.
    assert jnp.allclose(out, ref, atol=3e-2, rtol=2e-2), "mismatch vs reference"

    print("KERNEL_OK")
</pallas_src>

<mosaic_0001>
module attributes {stable_mosaic.version = 11 : i64} {
  func.func @_conv_stats_kernel(%arg0: i32, %arg1: i32, %arg2: memref<1x18x18x8xbf16, #tpu.memory_space<vmem>>, %arg3: memref<9x8x128xbf16, #tpu.memory_space<vmem>>, %arg4: memref<256x128xbf16, #tpu.memory_space<vmem>>, %arg5: memref<1x8x128xf32, #tpu.memory_space<vmem>>) attributes {dimension_semantics = [#tpu.dimension_semantics<parallel>, #tpu.dimension_semantics<parallel>], iteration_bounds = array<i64: 2, 1>, scalar_prefetch = 0 : i64, scratch_operands = 0 : i64, tpu.core_type = #tpu.core_type<tc>, window_params = [{transform_indices = @transform_0, window_bounds = array<i64: 1, 18, 18, 8>}, {pipeline_mode = #tpu.pipeline_mode<synchronous>, transform_indices = @transform_1, window_bounds = array<i64: 9, 8, 128>}, {transform_indices = @transform_2, window_bounds = array<i64: 256, 128>}, {transform_indices = @transform_3, window_bounds = array<i64: 1, 8, 128>}]} {
    %cst = arith.constant 0.000000e+00 : f32
    %0 = vector.broadcast %cst : f32 to vector<256x128xf32>
    %c16_i32 = arith.constant 16 : i32
    %1 = arith.muli %arg1, %c16_i32 : i32
    %c0_i32 = arith.constant 0 : i32
    %2 = arith.addi %1, %c0_i32 : i32
    %c0 = arith.constant 0 : index
    %3 = arith.index_cast %2 : i32 to index
    %c0_0 = arith.constant 0 : index
    %c0_1 = arith.constant 0 : index
    %4 = vector.load %arg2[%c0, %3, %c0_0, %c0_1] : memref<1x18x18x8xbf16, #tpu.memory_space<vmem>>, vector<1x16x16x8xbf16>
    %5 = vector.shape_cast %4 : vector<1x16x16x8xbf16> to vector<16x16x8xbf16>
    %6 = vector.shape_cast %5 : vector<16x16x8xbf16> to vector<256x8xbf16>
    %c0_2 = arith.constant 0 : index
    %c0_3 = arith.constant 0 : index
    %c0_4 = arith.constant 0 : index
    %7 = vector.load %arg3[%c0_2, %c0_3, %c0_4] : memref<9x8x128xbf16, #tpu.memory_space<vmem>>, vector<1x8x128xbf16>
    %8 = vector.shape_cast %7 : vector<1x8x128xbf16> to vector<8x128xbf16>
    %cst_5 = arith.constant dense<0.000000e+00> : vector<256x128xf32>
    %9 = tpu.matmul %6, %8, %cst_5 {dimension_numbers = #tpu.dot_dimension_numbers<[1], [0], [0], [1], [0, 0, 1, 1], [], []>} : vector<256x8xbf16>, vector<8x128xbf16>, vector<256x128xf32> -> vector<256x128xf32>
    %10 = arith.addf %0, %9 : vector<256x128xf32>
    %c16_i32_6 = arith.constant 16 : i32
    %11 = arith.muli %arg1, %c16_i32_6 : i32
    %c0_i32_7 = arith.constant 0 : i32
    %12 = arith.addi %11, %c0_i32_7 : i32
    %c0_8 = arith.constant 0 : index
    %13 = arith.index_cast %12 : i32 to index
    %c1 = arith.constant 1 : index
    %c0_9 = arith.constant 0 : index
    %14 = vector.load %arg2[%c0_8, %13, %c1, %c0_9] : memref<1x18x18x8xbf16, #tpu.memory_space<vmem>>, vector<1x16x16x8xbf16>
    %15 = vector.shape_cast %14 : vector<1x16x16x8xbf16> to vector<16x16x8xbf16>
    %16 = vector.shape_cast %15 : vector<16x16x8xbf16> to vector<256x8xbf16>
    %c1_10 = arith.constant 1 : index
    %c0_11 = arith.constant 0 : index
    %c0_12 = arith.constant 0 : index
    %17 = vector.load %arg3[%c1_10, %c0_11, %c0_12] : memref<9x8x128xbf16, #tpu.memory_space<vmem>>, vector<1x8x128xbf16>
    %18 = vector.shape_cast %17 : vector<1x8x128xbf16> to vector<8x128xbf16>
    %cst_13 = arith.constant dense<0.000000e+00> : vector<256x128xf32>
    %19 = tpu.matmul %16, %18, %cst_13 {dimension_numbers = #tpu.dot_dimension_numbers<[1], [0], [0], [1], [0, 0, 1, 1], [], []>} : vector<256x8xbf16>, vector<8x128xbf16>, vector<256x128xf32> -> vector<256x128xf32>
    %20 = arith.addf %10, %19 : vector<256x128xf32>
    %c16_i32_14 = arith.constant 16 : i32
    %21 = arith.muli %arg1, %c16_i32_14 : i32
    %c0_i32_15 = arith.constant 0 : i32
    %22 = arith.addi %21, %c0_i32_15 : i32
    %c0_16 = arith.constant 0 : index
    %23 = arith.index_cast %22 : i32 to index
    %c2 = arith.constant 2 : index
    %c0_17 = arith.constant 0 : index
    %24 = vector.load %arg2[%c0_16, %23, %c2, %c0_17] : memref<1x18x18x8xbf16, #tpu.memory_space<vmem>>, vector<1x16x16x8xbf16>
    %25 = vector.shape_cast %24 : vector<1x16x16x8xbf16> to vector<16x16x8xbf16>
    %26 = vector.shape_cast %25 : vector<16x16x8xbf16> to vector<256x8xbf16>
    %c2_18 = arith.constant 2 : index
    %c0_19 = arith.constant 0 : index
    %c0_20 = arith.constant 0 : index
    %27 = vector.load %arg3[%c2_18, %c0_19, %c0_20] : memref<9x8x128xbf16, #tpu.memory_space<vmem>>, vector<1x8x128xbf16>
    %28 = vector.shape_cast %27 : vector<1x8x128xbf16> to vector<8x128xbf16>
    %cst_21 = arith.constant dense<0.000000e+00> : vector<256x128xf32>
    %29 = tpu.matmul %26, %28, %cst_21 {dimension_numbers = #tpu.dot_dimension_numbers<[1], [0], [0], [1], [0, 0, 1, 1], [], []>} : vector<256x8xbf16>, vector<8x128xbf16>, vector<256x128xf32> -> vector<256x128xf32>
    %30 = arith.addf %20, %29 : vector<256x128xf32>
    %c16_i32_22 = arith.constant 16 : i32
    %31 = arith.muli %arg1, %c16_i32_22 : i32
    %c1_i32 = arith.constant 1 : i32
    %32 = arith.addi %31, %c1_i32 : i32
    %c0_23 = arith.constant 0 : index
    %33 = arith.index_cast %32 : i32 to index
    %c0_24 = arith.constant 0 : index
    %c0_25 = arith.constant 0 : index
    %34 = vector.load %arg2[%c0_23, %33, %c0_24, %c0_25] : memref<1x18x18x8xbf16, #tpu.memory_space<vmem>>, vector<1x16x16x8xbf16>
    %35 = vector.shape_cast %34 : vector<1x16x16x8xbf16> to vector<16x16x8xbf16>
    %36 = vector.shape_cast %35 : vector<16x16x8xbf16> to vector<256x8xbf16>
    %c3 = arith.constant 3 : index
    %c0_26 = arith.constant 0 : index
    %c0_27 = arith.constant 0 : index
    %37 = vector.load %arg3[%c3, %c0_26, %c0_27] : memref<9x8x128xbf16, #tpu.memory_space<vmem>>, vector<1x8x128xbf16>
    %38 = vector.shape_cast %37 : vector<1x8x128xbf16> to vector<8x128xbf16>
    %cst_28 = arith.constant dense<0.000000e+00> : vector<256x128xf32>
    %39 = tpu.matmul %36, %38, %cst_28 {dimension_numbers = #tpu.dot_dimension_numbers<[1], [0], [0], [1], [0, 0, 1, 1], [], []>} : vector<256x8xbf16>, vector<8x128xbf16>, vector<256x128xf32> -> vector<256x128xf32>
    %40 = arith.addf %30, %39 : vector<256x128xf32>
    %c16_i32_29 = arith.constant 16 : i32
    %41 = arith.muli %arg1, %c16_i32_29 : i32
    %c1_i32_30 = arith.constant 1 : i32
    %42 = arith.addi %41, %c1_i32_30 : i32
    %c0_31 = arith.constant 0 : index
    %43 = arith.index_cast %42 : i32 to index
    %c1_32 = arith.constant 1 : index
    %c0_33 = arith.constant 0 : index
    %44 = vector.load %arg2[%c0_31, %43, %c1_32, %c0_33] : memref<1x18x18x8xbf16, #tpu.memory_space<vmem>>, vector<1x16x16x8xbf16>
    %45 = vector.shape_cast %44 : vector<1x16x16x8xbf16> to vector<16x16x8xbf16>
    %46 = vector.shape_cast %45 : vector<16x16x8xbf16> to vector<256x8xbf16>
    %c4 = arith.constant 4 : index
    %c0_34 = arith.constant 0 : index
    %c0_35 = arith.constant 0 : index
    %47 = vector.load %arg3[%c4, %c0_34, %c0_35] : memref<9x8x128xbf16, #tpu.memory_space<vmem>>, vector<1x8x128xbf16>
    %48 = vector.shape_cast %47 : vector<1x8x128xbf16> to vector<8x128xbf16>
    %cst_36 = arith.constant dense<0.000000e+00> : vector<256x128xf32>
    %49 = tpu.matmul %46, %48, %cst_36 {dimension_numbers = #tpu.dot_dimension_numbers<[1], [0], [0], [1], [0, 0, 1, 1], [], []>} : vector<256x8xbf16>, vector<8x128xbf16>, vector<256x128xf32> -> vector<256x128xf32>
    %50 = arith.addf %40, %49 : vector<256x128xf32>
    %c16_i32_37 = arith.constant 16 : i32
    %51 = arith.muli %arg1, %c16_i32_37 : i32
    %c1_i32_38 = arith.constant 1 : i32
    %52 = arith.addi %51, %c1_i32_38 : i32
    %c0_39 = arith.constant 0 : index
    %53 = arith.index_cast %52 : i32 to index
    %c2_40 = arith.constant 2 : index
    %c0_41 = arith.constant 0 : index
    %54 = vector.load %arg2[%c0_39, %53, %c2_40, %c0_41] : memref<1x18x18x8xbf16, #tpu.memory_space<vmem>>, vector<1x16x16x8xbf16>
    %55 = vector.shape_cast %54 : vector<1x16x16x8xbf16> to vector<16x16x8xbf16>
    %56 = vector.shape_cast %55 : vector<16x16x8xbf16> to vector<256x8xbf16>
    %c5 = arith.constant 5 : index
    %c0_42 = arith.constant 0 : index
    %c0_43 = arith.constant 0 : index
    %57 = vector.load %arg3[%c5, %c0_42, %c0_43] : memref<9x8x128xbf16, #tpu.memory_space<vmem>>, vector<1x8x128xbf16>
    %58 = vector.shape_cast %57 : vector<1x8x128xbf16> to vector<8x128xbf16>
    %cst_44 = arith.constant dense<0.000000e+00> : vector<256x128xf32>
    %59 = tpu.matmul %56, %58, %cst_44 {dimension_numbers = #tpu.dot_dimension_numbers<[1], [0], [0], [1], [0, 0, 1, 1], [], []>} : vector<256x8xbf16>, vector<8x128xbf16>, vector<256x128xf32> -> vector<256x128xf32>
    %60 = arith.addf %50, %59 : vector<256x128xf32>
    %c16_i32_45 = arith.constant 16 : i32
    %61 = arith.muli %arg1, %c16_i32_45 : i32
    %c2_i32 = arith.constant 2 : i32
    %62 = arith.addi %61, %c2_i32 : i32
    %c0_46 = arith.constant 0 : index
    %63 = arith.index_cast %62 : i32 to index
    %c0_47 = arith.constant 0 : index
    %c0_48 = arith.constant 0 : index
    %64 = vector.load %arg2[%c0_46, %63, %c0_47, %c0_48] : memref<1x18x18x8xbf16, #tpu.memory_space<vmem>>, vector<1x16x16x8xbf16>
    %65 = vector.shape_cast %64 : vector<1x16x16x8xbf16> to vector<16x16x8xbf16>
    %66 = vector.shape_cast %65 : vector<16x16x8xbf16> to vector<256x8xbf16>
    %c6 = arith.constant 6 : index
    %c0_49 = arith.constant 0 : index
    %c0_50 = arith.constant 0 : index
    %67 = vector.load %arg3[%c6, %c0_49, %c0_50] : memref<9x8x128xbf16, #tpu.memory_space<vmem>>, vector<1x8x128xbf16>
    %68 = vector.shape_cast %67 : vector<1x8x128xbf16> to vector<8x128xbf16>
    %cst_51 = arith.constant dense<0.000000e+00> : vector<256x128xf32>
    %69 = tpu.matmul %66, %68, %cst_51 {dimension_numbers = #tpu.dot_dimension_numbers<[1], [0], [0], [1], [0, 0, 1, 1], [], []>} : vector<256x8xbf16>, vector<8x128xbf16>, vector<256x128xf32> -> vector<256x128xf32>
    %70 = arith.addf %60, %69 : vector<256x128xf32>
    %c16_i32_52 = arith.constant 16 : i32
    %71 = arith.muli %arg1, %c16_i32_52 : i32
    %c2_i32_53 = arith.constant 2 : i32
    %72 = arith.addi %71, %c2_i32_53 : i32
    %c0_54 = arith.constant 0 : index
    %73 = arith.index_cast %72 : i32 to index
    %c1_55 = arith.constant 1 : index
    %c0_56 = arith.constant 0 : index
    %74 = vector.load %arg2[%c0_54, %73, %c1_55, %c0_56] : memref<1x18x18x8xbf16, #tpu.memory_space<vmem>>, vector<1x16x16x8xbf16>
    %75 = vector.shape_cast %74 : vector<1x16x16x8xbf16> to vector<16x16x8xbf16>
    %76 = vector.shape_cast %75 : vector<16x16x8xbf16> to vector<256x8xbf16>
    %c7 = arith.constant 7 : index
    %c0_57 = arith.constant 0 : index
    %c0_58 = arith.constant 0 : index
    %77 = vector.load %arg3[%c7, %c0_57, %c0_58] : memref<9x8x128xbf16, #tpu.memory_space<vmem>>, vector<1x8x128xbf16>
    %78 = vector.shape_cast %77 : vector<1x8x128xbf16> to vector<8x128xbf16>
    %cst_59 = arith.constant dense<0.000000e+00> : vector<256x128xf32>
    %79 = tpu.matmul %76, %78, %cst_59 {dimension_numbers = #tpu.dot_dimension_numbers<[1], [0], [0], [1], [0, 0, 1, 1], [], []>} : vector<256x8xbf16>, vector<8x128xbf16>, vector<256x128xf32> -> vector<256x128xf32>
    %80 = arith.addf %70, %79 : vector<256x128xf32>
    %c16_i32_60 = arith.constant 16 : i32
    %81 = arith.muli %arg1, %c16_i32_60 : i32
    %c2_i32_61 = arith.constant 2 : i32
    %82 = arith.addi %81, %c2_i32_61 : i32
    %c0_62 = arith.constant 0 : index
    %83 = arith.index_cast %82 : i32 to index
    %c2_63 = arith.constant 2 : index
    %c0_64 = arith.constant 0 : index
    %84 = vector.load %arg2[%c0_62, %83, %c2_63, %c0_64] : memref<1x18x18x8xbf16, #tpu.memory_space<vmem>>, vector<1x16x16x8xbf16>
    %85 = vector.shape_cast %84 : vector<1x16x16x8xbf16> to vector<16x16x8xbf16>
    %86 = vector.shape_cast %85 : vector<16x16x8xbf16> to vector<256x8xbf16>
    %c8 = arith.constant 8 : index
    %c0_65 = arith.constant 0 : index
    %c0_66 = arith.constant 0 : index
    %87 = vector.load %arg3[%c8, %c0_65, %c0_66] : memref<9x8x128xbf16, #tpu.memory_space<vmem>>, vector<1x8x128xbf16>
    %88 = vector.shape_cast %87 : vector<1x8x128xbf16> to vector<8x128xbf16>
    %cst_67 = arith.constant dense<0.000000e+00> : vector<256x128xf32>
    %89 = tpu.matmul %86, %88, %cst_67 {dimension_numbers = #tpu.dot_dimension_numbers<[1], [0], [0], [1], [0, 0, 1, 1], [], []>} : vector<256x8xbf16>, vector<8x128xbf16>, vector<256x128xf32> -> vector<256x128xf32>
    %90 = arith.addf %80, %89 : vector<256x128xf32>
    %91 = arith.truncf %90 : vector<256x128xf32> to vector<256x128xbf16>
    %c0_68 = arith.constant 0 : index
    %c0_69 = arith.constant 0 : index
    %92 = vector.load %arg4[%c0_68, %c0_69] : memref<256x128xbf16, #tpu.memory_space<vmem>>, vector<256x128xbf16>
    tpu.vector_store %arg4[%c0_68, %c0_69], %91 {strides = array<i32>} : memref<256x128xbf16, #tpu.memory_space<vmem>>, vector<256x128xbf16>,
    %cst_70 = arith.constant dense<0.000000e+00> : vector<128xf32>
    %93 = vector.multi_reduction <add>, %90, %cst_70 [0] : vector<256x128xf32> to vector<128xf32>
    %94 = vector.shape_cast %93 : vector<128xf32> to vector<1x128xf32>
    %95 = arith.mulf %90, %90 : vector<256x128xf32>
    %cst_71 = arith.constant dense<0.000000e+00> : vector<128xf32>
    %96 = vector.multi_reduction <add>, %95, %cst_71 [0] : vector<256x128xf32> to vector<128xf32>
    %97 = vector.shape_cast %96 : vector<128xf32> to vector<1x128xf32>
    %98 = tpu.iota {dimensions = array<i32: 0>} : vector<8x128xi32>
    %c0_i32_72 = arith.constant 0 : i32
    %99 = vector.broadcast %c0_i32_72 : i32 to vector<8x128xi32>
    %100 = arith.cmpi eq, %98, %99 : vector<8x128xi32>
    %c1_i32_73 = arith.constant 1 : i32
    %101 = vector.broadcast %c1_i32_73 : i32 to vector<8x128xi32>
    %102 = arith.cmpi eq, %98, %101 : vector<8x128xi32>
    %cst_74 = arith.constant 0.000000e+00 : f32
    %103 = vector.shape_cast %97 : vector<1x128xf32> to vector<1x128xf32>
    %104 = vector.broadcast %103 : vector<1x128xf32> to vector<8x128xf32>
    %105 = vector.broadcast %cst_74 : f32 to vector<8x128xf32>
    %106 = arith.select %102, %104, %105 : vector<8x128xi1>, vector<8x128xf32>
    %107 = vector.shape_cast %94 : vector<1x128xf32> to vector<1x128xf32>
    %108 = vector.broadcast %107 : vector<1x128xf32> to vector<8x128xf32>
    %109 = arith.select %100, %108, %106 : vector<8x128xi1>, vector<8x128xf32>
    %c0_75 = arith.constant 0 : index
    %c0_76 = arith.constant 0 : index
    %c0_77 = arith.constant 0 : index
    %110 = vector.load %arg5[%c0_75, %c0_76, %c0_77] : memref<1x8x128xf32, #tpu.memory_space<vmem>>, vector<1x8x128xf32>
    %111 = vector.shape_cast %110 : vector<1x8x128xf32> to vector<8x128xf32>
    %112 = vector.shape_cast %109 : vector<8x128xf32> to vector<1x8x128xf32>
    tpu.vector_store %arg5[%c0_75, %c0_76, %c0_77], %112 {strides = array<i32>} : memref<1x8x128xf32, #tpu.memory_space<vmem>>, vector<1x8x128xf32>,
    return
  }
  func.func @transform_0(%arg0: i32, %arg1: i32) -> (i32, i32, i32, i32) {
    %c0_i32 = arith.constant 0 : i32
    %c0_i32_0 = arith.constant 0 : i32
    %c0_i32_1 = arith.constant 0 : i32
    %c0_i32_2 = arith.constant 0 : i32
    return %arg0, %c0_i32, %c0_i32_0, %c0_i32_1 : i32, i32, i32, i32
  }
  func.func @transform_1(%arg0: i32, %arg1: i32) -> (i32, i32, i32) {
    %c0_i32 = arith.constant 0 : i32
    %c0_i32_0 = arith.constant 0 : i32
    %c0_i32_1 = arith.constant 0 : i32
    %c0_i32_2 = arith.constant 0 : i32
    return %c0_i32, %c0_i32_0, %c0_i32_1 : i32, i32, i32
  }
  func.func @transform_2(%arg0: i32, %arg1: i32) -> (i32, i32) {
    %c1_i32 = arith.constant 1 : i32
    %0 = arith.muli %arg0, %c1_i32 : i32
    %1 = arith.addi %0, %arg1 : i32
    %c0_i32 = arith.constant 0 : i32
    %c0_i32_0 = arith.constant 0 : i32
    return %1, %c0_i32 : i32, i32
  }
  func.func @transform_3(%arg0: i32, %arg1: i32) -> (i32, i32, i32) {
    %c1_i32 = arith.constant 1 : i32
    %0 = arith.muli %arg0, %c1_i32 : i32
    %1 = arith.addi %0, %arg1 : i32
    %c0_i32 = arith.constant 0 : i32
    %c0_i32_0 = arith.constant 0 : i32
    %c0_i32_1 = arith.constant 0 : i32
    return %1, %c0_i32, %c0_i32_0 : i32, i32, i32
  }
}

</mosaic_0001>

<bundles_post_ra>
// kernel: tpu_custom_call.1
= control target key start
LH: loop header
LB: loop body
LE: loop exit
PB: predicated region body
PF: predicated region fallthrough
CT: control target
= control target key end

     0   :  { %9 = vsyncpa [#allocation3], 0  ;;  %s9312_s0 = inlined_call_operand.vmem [shape: bf16[2,18,18,8], index: 0, kind: input, shape index: {}]   ;;  %s9313_s1 = inlined_call_operand.vmem [shape: bf16[9,8,128], index: 1, kind: input, shape index: {}]   ;;  %s9314_s2 = inlined_call_operand.hbm [shape: bf16[512,128], index: 2, kind: output, shape index: {0}]   ;;  %s9315_s3 = inlined_call_operand.hbm [shape: f32[2,8,128], index: 3, kind: output, shape index: {1}]  }
   0x1   :  { %11 = vsyncpa [#allocation3 + $0x1], 0 }
   0x2   :  { %12 = vsyncpa [#allocation5], 0 }
   0x3   :  { %14 = vsyncpa [#allocation5 + $0x1], 0  ;;  %s6617_s12 = smov 0   ;;  %s6619_s13 = smov 0  }
   0x4   :  { %s6621_s14 = smov 0   ;;  %s6623_s15 = smov 0  }
   0x5   :  { %s6625_s16 = smov 0   ;;  %s6627_s17 = smov 0  }
   0x6 LB: > { %s5190_s18 = sadd.s32 4294967295, %s6591_s17   ;;  %s5191_s19 = sadd.s32 4294967294, %s6591_s17   ;;  %s6591_s17 = sphi %s6627_s17, %s20_s17   ;;  %s6587_s16 = sphi %s6625_s16, %s9570_s16   ;;  %s6583_s15 = sphi %s6623_s15, %s9569_s15   ;;  %s6579_s14 = sphi %s6621_s14, %s9568_s14   ;;  %s6575_s13 = sphi %s6619_s13, %s9567_s13   ;;  %s6571_s12 = sphi %s6617_s12, %s9566_s12  }
   0x7   : > { %s32_s20 = sadd.s32 1, %s6587_s16  ;;  %s88_s21 = sadd.s32 1, %s6579_s14 }
   0x8   : > { %p34_p0 = scmp.ge.s32.totalorder %s32_s20, 2  ;;  %p98_p1 = scmp.ne.s32.totalorder %s6579_s14, %s6575_s13 }
   0x9   : > { %p99_p2 = scmp.eq.s32.totalorder %s5190_s18, 1  ;;  %p104_p3 = scmp.ne.s32.totalorder %s6575_s13, %s6571_s12 }
   0xa   : > { %s9572_s20 = smov (%p34_p0, %s32_s20), 0  ;;  %p105_p5 = scmp.eq.s32.totalorder %s5191_s19, 1 }
   0xb   : > { %p6657_p4 = por %p99_p2, %p98_p1  ;;  %s85_s23 = ssub.s32 %s6587_s16, %s9572_s20 }
   0xc   : > { %p5194_p6 = scmp.ge.s32.totalorder %s6591_s17, 1  ;;  %p86_p7 = scmp.eq.s32.totalorder %s85_s23, 0 }
   0xd   : > { %p6664_p8 = por %p105_p5, %p104_p3  ;;  %p162_p9 = scmp.lt.s32.totalorder %s6591_s17, 3 }
   0xe   : > { %s6670_s25 = scalar_select %p86_p7, %s6579_s14, %s88_s21  }
   0xf   : > { %p163_p10 = pnand %p5194_p6, %p162_p9 }
  0x11   : > { %166 = sbr.rel (%p163_p10) target bundleno = 609 (0x261), region = 28 }
  0x16   : > { %v5198_v0 = vld [vmem:[%s9313_s1 + $0x4] sm:$0xf]  ;;  %vm739_vm0 = vcmask 1043456   ;;  %p191_p11 = scmp.lt.s32.totalorder %s6583_s15, 1  ;;  %v236_v2 = vld [vmem:[%s9313_s1] sm:$0xf] }
  0x17   : > { %6363 = vmatprep.subr.msk.bf16.mxu1 %vm739_vm0, %v5198_v0  ;;  %6362 = vmatprep.subr.msk.bf16.mxu0 %vm739_vm0, %v5198_v0  ;;  %v741_v1 = vsel %vm739_vm0, %v5198_v0, 0  ;;  %v5279_v3 = vld [vmem:[%s9313_s1 + $0x8] sm:$0xf]  ;;  %vm253_vm1 = vsmask.f32 3328  ;;  %v6694_v4 = vsel %vm739_vm0, %v236_v2, 0 }
  0x18   : > { %6361 = vmatpush3.bf16.msra.mxu1 %v741_v1  ;;  %6055 = vmatpush3.bf16.msra.mxu0 %v741_v1  ;;  %s192_s30 = scalar_select %p191_p11, %s6583_s15, 1  ;;  %vm254_vm2 = vsmask.f32 7440  ;;  %vm690_vm3 = vcmask 64512   ;;  %v6720_v16 = vsel %vm739_vm0, %v5279_v3, 0  ;;  %vm1244_vm5 = vcmask 1042432  }
  0x19   : > { %6364 = vmatprep.subr.msk.bf16.mxu1 %vm739_vm0, %v236_v2  ;;  %6365 = vmatprep.subr.msk.bf16.mxu0 %vm739_vm0, %v5279_v3  ;;  %vm6735_vm4 = vmor %vm253_vm1, %vm254_vm2  ;;  %vm1245_vm6 = vcmask 1046532   ;;  %s9139_s5 = sand.u32 1, %s6575_s13   ;;  %s5805_s8 = sshll.u32 %s6583_s15, 11 }
  0x1a   : > { %s6372_s6 = smul.u32 216, %s192_s30  ;;  %vm7021_vm7 = vmor %vm1244_vm5, %vm1245_vm6  ;;  %s9237_s18 = scalar_lea.hbm %s9314_s2, %s5805_s8 }
  0x1b   : > { %s5043_s19 = scalar_lea.sflag [#allocation3], %s9139_s5  ;;  %s6593_s23 = smov [#allocation2]  }
  0x1c   : > { %s6691_s9 = scalar_lea.vmem %s9312_s0, %s6372_s6  ;;  %s5195_s6 = sshll.u32 %s9139_s5, 7 }
  0x1d   : > { %v6697_v5 = vld [vmem:[%s6691_s9] sm:$0xf]  ;;  %v6700_v6 = vld [vmem:[%s6691_s9 + $0x4] sm:$0xf]  ;;  %v6703_v7 = vld [vmem:[%s6691_s9 + $0x8] sm:$0x1] }
  0x1e   : > { %v257_v8 = vshrl.u32 %v6697_v5, 16  ;;  %v260_v9 = vshll.u32 %v6697_v5, 16  ;;  %v266_v10 = vshll.u32 %v6700_v6, 16  ;;  %v270_v11 = vshrl.u32 %v6700_v6, 16  ;;  %v6710_v12 = vld [vmem:[%s6691_s9 + $0x60] sm:$0xf] }
  0x1f   : > { %v276_v13 = vshll.u32 %v6703_v7, 16  ;;  %v6714_v14 = vld [vmem:[%s6691_s9 + $0x64] sm:$0xf]  ;;  %v6717_v15 = vld [vmem:[%s6691_s9 + $0x68] sm:$0x1]  ;;  %v449_v22 = vshrl.u32 %v6710_v12, 16 }
  0x20   : > { %v259_v17 = vrot.slane %v257_v8, 4  ;;  %v262_v18 = vrot.slane %v260_v9, 5  ;;  %v268_v19 = vrot.slane %v266_v10, 5  ;;  %v272_v20 = vrot.slane %v270_v11, 4  ;;  %v6728_v29 = vld [vmem:[%s6691_s9 + $0xc] sm:$0xf] }
  0x21   : > { %v278_v21 = vrot.slane %v276_v13, 5  ;;  %v452_v23 = vshll.u32 %v6710_v12, 16  ;;  %v458_v24 = vshll.u32 %v6714_v14, 16  ;;  %v462_v27 = vshrl.u32 %v6714_v14, 16  ;;  %v6731_v30 = vld [vmem:[%s6691_s9 + $0x10] sm:$0xf] }
  0x22   : > { %v263_v25 = vor.u32 %v262_v18, %v259_v17  ;;  %v273_v26 = vor.u32 %v272_v20, %v268_v19  ;;  %v468_v28 = vshll.u32 %v6717_v15, 16  ;;  %v451_v33 = vrot.slane %v449_v22, 4  ;;  %v6741_v41 = vld [vmem:[%s6691_s9 + $0x14] sm:$0x1]  ;;  %v6752_v53 = vld [vmem:[%s6691_s9 + $0x6c] sm:$0xf] }
  0x23   : > { %v454_v34 = vrot.slane %v452_v23, 5  ;;  %v460_v35 = vrot.slane %v458_v24, 5  ;;  %v464_v38 = vrot.slane %v462_v27, 4  ;;  %v281_v42 = vshrl.u32 %v6728_v29, 16  ;;  %v6756_v58 = vld [vmem:[%s6691_s9 + $0x70] sm:$0xf] }
  0x24   : > { %v264_v36 = vrot.slane %v263_v25, 4  ;;  %v274_v37 = vrot.slane %v273_v26, 4  ;;  %v470_v39 = vrot.slane %v468_v28, 5  ;;  %v284_v43 = vshll.u32 %v6728_v29, 16  ;;  %v6764_v63 = vld [vmem:[%s6691_s9 + $0x74] sm:$0x1] }
  0x25   : > { %v455_v40 = vor.u32 %v454_v34, %v451_v33  ;;  %v290_v44 = vshll.u32 %v6731_v30, 16  ;;  %v465_v47 = vor.u32 %v464_v38, %v460_v35  ;;  %v294_v48 = vshrl.u32 %v6731_v30, 16  ;;  %v6770_v8 = vld [vmem:[%s6691_s9 + $0x18] sm:$0xf]  ;;  %v6783_v25 = vld [vmem:[%s6691_s9 + $0x20] sm:$0x1] }
  0x26   : > { %v269_v45 = vsel %vm6735_vm4, %v264_v36, %v268_v19  ;;  %v279_v46 = vsel %vm6735_vm4, %v274_v37, %v278_v21  ;;  %v283_v51 = vrot.slane %v281_v42, 4  ;;  %v286_v52 = vrot.slane %v284_v43, 5  ;;  %v6777_v21 = vld [vmem:[%s6691_s9 + $0x1c] sm:$0xf]  ;;  %s9155_s7 = scalar_lea.vmem [#allocation2], %s5195_s6  ;;  %s6489_s26 = sshll.u32 %s6593_s23, 4  ;;  %s6490_s26 = int_to_ptr.vmem [resolvable:$false] %s6489_s26 }
  0x27   : > { %v5199_v49 = vcombine.low %v269_v45, %v279_v46  ;;  %v456_v50 = vrot.slane %v455_v40, 4  ;;  %v466_v54 = vrot.slane %v465_v47, 4  ;;  %v292_v55 = vrot.slane %v290_v44, 5  ;;  %v6796_v40 = vld [vmem:[%s9313_s1 + $0x10] sm:$0xf]  ;;  %s6491_s27 = scalar_lea.vmem %s6490_s26, 4096 }
  0x28   : > { %v296_v56 = vrot.slane %v294_v48, 4  ;;  %v300_v57 = vshll.u32 %v6741_v41, 16  ;;  %v287_v60 = vor.u32 %v286_v52, %v283_v51  ;;  %v473_v3 = vshrl.u32 %v6752_v53, 16  ;;  %v6801_v46 = vld [vmem:[%s6691_s9 + $0x7c] sm:$0xf] }
  0x29   : > { %6056 = vmatprep.mubr.msk.bf16.mxu0 %vm690_vm3, %v5199_v49  ;;  %v461_v59 = vsel %vm6735_vm4, %v456_v50, %v460_v35  ;;  %v471_v0 = vsel %vm6735_vm4, %v466_v54, %v470_v39  ;;  %v476_v11 = vshll.u32 %v6752_v53, 16  ;;  %v482_v13 = vshll.u32 %v6756_v58, 16  ;;  %v6790_v35 = vld [vmem:[%s6691_s9 + $0x78] sm:$0xf] }
  0x2a   : > { %v297_v1 = vor.u32 %v296_v56, %v292_v55  ;;  %v302_v2 = vrot.slane %v300_v57, 5  ;;  %v5207_v9 = vcombine.low %v461_v59, %v471_v0  ;;  %v288_v10 = vrot.slane %v287_v60, 4  ;;  %v6808_v56 = vld [vmem:[%s6691_s9 + $0x80] sm:$0x1] }
  0x2b   : > { %v475_v18 = vrot.slane %v473_v3, 4  ;;  %v486_v19 = vshrl.u32 %v6756_v58, 16  ;;  %v492_v20 = vshll.u32 %v6764_v63, 16  ;;  %v478_v23 = vrot.slane %v476_v11, 5  ;;  %9353 = vst [vmem:[#allocation8_spill] sm:$0xff] %v6808_v56 }
  0x2c   : > { %v298_v17 = vrot.slane %v297_v1, 4  ;;  %6072 = vmatprep.mubr.msk.bf16.mxu1 %vm690_vm3, %v5207_v9  ;;  %v293_v22 = vsel %vm6735_vm4, %v288_v10, %v292_v55  ;;  %v484_v24 = vrot.slane %v482_v13, 5  ;;  %v305_v26 = vshrl.u32 %v6770_v8, 16  ;;  %v6814_v1 = vld [vmem:[%s6691_s9 + $0x24] sm:$0xf] }
  0x2d   : > { %v488_v28 = vrot.slane %v486_v19, 4  ;;  %v494_v33 = vrot.slane %v492_v20, 5  ;;  %v308_v34 = vshll.u32 %v6770_v8, 16  ;;  %v479_v37 = vor.u32 %v478_v23, %v475_v18  ;;  %v6822_v10 = vld [vmem:[%s6691_s9 + $0x28] sm:$0xf] }
  0x2e   : > { %v303_v27 = vsel %vm6735_vm4, %v298_v17, %v302_v2  ;;  %v307_v38 = vrot.slane %v305_v26, 4  ;;  %v314_v39 = vshll.u32 %v6777_v21, 16  ;;  %v318_v44 = vshrl.u32 %v6777_v21, 16  ;;  %v6828_v19 = vld [vmem:[%s9313_s1 + $0xc] sm:$0xf] }
  0x2f   : > { %v5200_v36 = vcombine.low %v293_v22, %v303_v27  ;;  %v489_v42 = vor.u32 %v488_v28, %v484_v24  ;;  %v310_v43 = vrot.slane %v308_v34, 5  ;;  %v324_v45 = vshll.u32 %v6783_v25, 16 }
  0x30   : > { %v480_v47 = vrot.slane %v479_v37, 4  ;;  %v316_v48 = vrot.slane %v314_v39, 5  ;;  %v497_v49 = vshrl.u32 %v6790_v35, 16  ;;  %v500_v50 = vshll.u32 %v6790_v35, 16 }
  0x31   : > { %6057 = vmatmul.mubr.msk.bf16.vlgmr.msra.gmra.mxu0 %vm690_vm3, %v5200_v36  ;;  %v490_v51 = vrot.slane %v489_v42, 4  ;;  %v311_v52 = vor.u32 %v310_v43, %v307_v38  ;;  %v320_v54 = vrot.slane %v318_v44, 4  ;;  %v326_v55 = vrot.slane %v324_v45, 5  ;;  %v6840_v36 = vld [vmem:[%s6691_s9 + $0x84] sm:$0xf] }
  0x32   : > { %6123 = vmatpush3.bf16.msra.mxu0 %v6720_v16  ;;  %v485_v57 = vsel %vm6735_vm4, %v480_v47, %v484_v24  ;;  %v499_v59 = vrot.slane %v497_v49, 4  ;;  %v502_v60 = vrot.slane %v500_v50, 5  ;;  %v506_v0 = vshll.u32 %v6801_v46, 16  ;;  %v6833_v24 = vld [vmem:[%s6691_s9 + $0x2c] sm:$0x1] }
  0x33   : > { %6367 = vmatprep.subr.msk.bf16.mxu0 %vm739_vm0, %v6796_v40  ;;  %v495_v16 = vsel %vm6735_vm4, %v490_v51, %v494_v33  ;;  %v312_v2 = vrot.slane %v311_v52, 4  ;;  %v321_v3 = vor.u32 %v320_v54, %v316_v48  ;;  %v510_v9 = vshrl.u32 %v6801_v46, 16  ;;  %v6847_v43 = vld [vmem:[%s6691_s9 + $0x88] sm:$0xf]  ;;  %v6855_v51 = vld [vmem:[%s6691_s9 + $0x8c] sm:$0x1] }
  0x34   : > { %v5208_v11 = vcombine.low %v485_v57, %v495_v16  ;;  %v503_v13 = vor.u32 %v502_v60, %v499_v59  ;;  %v508_v17 = vrot.slane %v506_v0, 5  ;;  %v516_v18 = vshll.u32 %v6808_v56, 16  ;;  %9354 = vst [vmem:[#allocation9_spill] sm:$0xff] %v6855_v51  ;;  %v6863_v60 = vld [vmem:[%s6691_s9 + $0x30] sm:$0xf] }
  0x35   : > { %v317_v20 = vsel %vm6735_vm4, %v312_v2, %v316_v48  ;;  %v322_v22 = vrot.slane %v321_v3, 4  ;;  %v512_v23 = vrot.slane %v510_v9, 4  ;;  %v329_v26 = vshrl.u32 %v6814_v1, 16  ;;  %v6868_v9 = vld [vmem:[%s6691_s9 + $0x34] sm:$0xf] }
  0x36   : > { %6073 = vmatmul.mubr.msk.bf16.vlgmr.msra.gmra.mxu1 %vm690_vm3, %v5208_v11  ;;  %v504_v27 = vrot.slane %v503_v13, 4  ;;  %v518_v28 = vrot.slane %v516_v18, 5  ;;  %v332_v33 = vshll.u32 %v6814_v1, 16  ;;  %v338_v34 = vshll.u32 %v6822_v10, 16 }
  0x37   : > { %6089 = vmatpush3.bf16.msra.mxu1 %v6694_v4  ;;  %v327_v37 = vsel %vm6735_vm4, %v322_v22, %v326_v55  ;;  %v513_v38 = vor.u32 %v512_v23, %v508_v17  ;;  %v331_v39 = vrot.slane %v329_v26, 4  ;;  %v342_v42 = vshrl.u32 %v6822_v10, 16 }
  0x38   : > { %v5201_v44 = vcombine.low %v317_v20, %v327_v37  ;;  %v509_v45 = vsel %vm6735_vm4, %v504_v27, %v508_v17  ;;  %v334_v47 = vrot.slane %v332_v33, 5  ;;  %v340_v48 = vrot.slane %v338_v34, 5  ;;  %6366 = vmatprep.subr.msk.bf16.mxu1 %vm739_vm0, %v6828_v19  ;;  %v6876_v33 = vld [vmem:[%s6691_s9 + $0x38] sm:$0x1] }
  0x39   : > { %v514_v4 = vrot.slane %v513_v38, 4  ;;  %v344_v49 = vrot.slane %v342_v42, 4  ;;  %v348_v50 = vshll.u32 %v6833_v24, 16  ;;  %v521_v52 = vshrl.u32 %v6840_v36, 16  ;;  %v6881_v38 = vld [vmem:[%s6691_s9 + $0x90] sm:$0xf] }
  0x3a   : > { %6060 = vmatprep.mubr.msk.bf16.mxu0 %vm690_vm3, %v5201_v44  ;;  %v335_v54 = vor.u32 %v334_v47, %v331_v39  ;;  %v524_v55 = vshll.u32 %v6840_v36, 16  ;;  %v530_v57 = vshll.u32 %v6847_v43, 16  ;;  %v534_v59 = vshrl.u32 %v6847_v43, 16  ;;  %9355 = vst [vmem:[#allocation10_spill] sm:$0xff] %v6881_v38  ;;  %v6886_v47 = vld [vmem:[%s6691_s9 + $0x94] sm:$0xf] }
  0x3b   : > { %v519_v0 = vsel %vm6735_vm4, %v514_v4, %v518_v28  ;;  %v345_v16 = vor.u32 %v344_v49, %v340_v48  ;;  %v350_v2 = vrot.slane %v348_v50, 5  ;;  %v523_v3 = vrot.slane %v521_v52, 4  ;;  %9356 = vst [vmem:[#allocation11_spill] sm:$0xff] %v6886_v47 }
  0x3c   : > { %v5209_v11 = vcombine.low %v509_v45, %v519_v0  ;;  %v336_v13 = vrot.slane %v335_v54, 4  ;;  %v526_v17 = vrot.slane %v524_v55, 5  ;;  %v532_v18 = vrot.slane %v530_v57, 5 }
  0x3d   : > { %v346_v20 = vrot.slane %v345_v16, 4  ;;  %v536_v22 = vrot.slane %v534_v59, 4  ;;  %v540_v23 = vshll.u32 %v6855_v51, 16  ;;  %v353_v26 = vshrl.u32 %v6863_v60, 16  ;;  %v6895_v16 = vld [vmem:[%s6691_s9 + $0x98] sm:$0x1] }
  0x3e   : > { %6076 = vmatprep.mubr.msk.bf16.mxu1 %vm690_vm3, %v5209_v11  ;;  %v341_v27 = vsel %vm6735_vm4, %v336_v13, %v340_v48  ;;  %v527_v28 = vor.u32 %v526_v17, %v523_v3  ;;  %v356_v34 = vshll.u32 %v6863_v60, 16  ;;  %v362_v37 = vshll.u32 %v6868_v9, 16  ;;  %9357 = vst [vmem:[#allocation12_spill] sm:$0xff] %v6895_v16  ;;  %v6900_v11 = vld [vmem:[%s6691_s9 + $0x3c] sm:$0xf] }
  0x3f   : > { %v351_v39 = vsel %vm6735_vm4, %v346_v20, %v350_v2  ;;  %v537_v42 = vor.u32 %v536_v22, %v532_v18  ;;  %v542_v44 = vrot.slane %v540_v23, 5  ;;  %v355_v45 = vrot.slane %v353_v26, 4  ;;  %v6905_v23 = vld [vmem:[%s6691_s9 + $0x40] sm:$0xf]  ;;  %v1197_v51 = vld [vmem:[%s6691_s9 + $0xc] sm:$0xe] }
  0x40   : > { %v5202_v48 = vcombine.low %v341_v27, %v351_v39  ;;  %v528_v4 = vrot.slane %v527_v28, 4  ;;  %v358_v49 = vrot.slane %v356_v34, 5  ;;  %v364_v50 = vrot.slane %v362_v37, 5 }
  0x41   : > { %v538_v52 = vrot.slane %v537_v42, 4  ;;  %v366_v54 = vshrl.u32 %v6868_v9, 16  ;;  %v372_v55 = vshll.u32 %v6876_v33, 16  ;;  %v545_v57 = vshrl.u32 %v6881_v38, 16 }
  0x42   : > { %6061 = vmatmul.mubr.msk.bf16.gmra.mxu0 %vm690_vm3, %v5202_v48  ;;  %v533_v59 = vsel %vm6735_vm4, %v528_v4, %v532_v18  ;;  %v359_v0 = vor.u32 %v358_v49, %v355_v45  ;;  %v548_v2 = vshll.u32 %v6881_v38, 16  ;;  %v554_v3 = vshll.u32 %v6886_v47, 16  ;;  %v6914_v48 = vld [vmem:[%s6691_s9 + $0x44] sm:$0x1] }
  0x43   : > { %v543_v13 = vsel %vm6735_vm4, %v538_v52, %v542_v44  ;;  %v368_v17 = vrot.slane %v366_v54, 4  ;;  %v374_v20 = vrot.slane %v372_v55, 5  ;;  %v547_v22 = vrot.slane %v545_v57, 4  ;;  %v6919_v52 = vld [vmem:[%s6691_s9 + $0x9c] sm:$0xf] }
  0x44   : > { %v5210_v18 = vcombine.low %v533_v59, %v543_v13  ;;  %v360_v26 = vrot.slane %v359_v0, 4  ;;  %v550_v27 = vrot.slane %v548_v2, 5  ;;  %v556_v28 = vrot.slane %v554_v3, 5  ;;  %9358 = vst [vmem:[#allocation13_spill] sm:$0xff] %v6919_v52  ;;  %v6923_v13 = vld [vmem:[%s6691_s9 + $0xa0] sm:$0xf] }
  0x45   : > { %v369_v34 = vor.u32 %v368_v17, %v364_v50  ;;  %v558_v37 = vshrl.u32 %v6886_v47, 16  ;;  %v564_v39 = vshll.u32 %v6895_v16, 16  ;;  %v377_v42 = vshrl.u32 %v6900_v11, 16  ;;  %9359 = vst [vmem:[#allocation14_spill] sm:$0xff] %v6923_v13 }
  0x46   : > { %6077 = vmatmul.mubr.msk.bf16.gmra.mxu1 %vm690_vm3, %v5210_v18  ;;  %v365_v44 = vsel %vm6735_vm4, %v360_v26, %v364_v50  ;;  %v551_v45 = vor.u32 %v550_v27, %v547_v22  ;;  %v380_v4 = vshll.u32 %v6900_v11, 16  ;;  %v386_v49 = vshll.u32 %v6905_v23, 16  ;;  %v6929_v26 = vld [vmem:[%s6691_s9 + $0xa4] sm:$0x1] }
  0x47   : > { %v370_v54 = vrot.slane %v369_v34, 4  ;;  %v560_v55 = vrot.slane %v558_v37, 4  ;;  %v566_v57 = vrot.slane %v564_v39, 5  ;;  %v379_v59 = vrot.slane %v377_v42, 4  ;;  %9360 = vst [vmem:[#allocation15_spill] sm:$0xff] %v6929_v26 }
  0x48   : > { %v552_v0 = vrot.slane %v551_v45, 4  ;;  %v382_v2 = vrot.slane %v380_v4, 5  ;;  %v388_v3 = vrot.slane %v386_v49, 5  ;;  %v390_v50 = vshrl.u32 %v6905_v23, 16  ;;  %v6933_v34 = vld [vmem:[%s6691_s9 + $0x48] sm:$0xf] }
  0x49   : > { %v375_v17 = vsel %vm6735_vm4, %v370_v54, %v374_v20  ;;  %v561_v22 = vor.u32 %v560_v55, %v556_v28  ;;  %v396_v18 = vshll.u32 %v6914_v48, 16  ;;  %v569_v27 = vshrl.u32 %v6919_v52, 16 }
  0x4a   : > { %v5203_v37 = vcombine.low %v365_v44, %v375_v17  ;;  %v557_v39 = vsel %vm6735_vm4, %v552_v0, %v556_v28  ;;  %v383_v42 = vor.u32 %v382_v2, %v379_v59  ;;  %v392_v45 = vrot.slane %v390_v50, 4  ;;  %v6942_v17 = vld [vmem:[%s6691_s9 + $0x4c] sm:$0xf]  ;;  %v6948_v2 = vld [vmem:[%s6691_s9 + $0x50] sm:$0x1] }
  0x4b   : > { %v562_v4 = vrot.slane %v561_v22, 4  ;;  %v398_v49 = vrot.slane %v396_v18, 5  ;;  %v571_v20 = vrot.slane %v569_v27, 4  ;;  %v572_v54 = vshll.u32 %v6919_v52, 16 }
  0x4c   : > { %6064 = vmatprep.mubr.msk.bf16.mxu0 %vm690_vm3, %v5203_v37  ;;  %v384_v55 = vrot.slane %v383_v42, 4  ;;  %v393_v62 = vor.u32 %v392_v45, %v388_v3  ;;  %v578_v32 = vshll.u32 %v6923_v13, 16  ;;  %v582_v44 = vshrl.u32 %v6923_v13, 16  ;;  %v6954_v42 = vld [vmem:[%s6691_s9 + $0xa8] sm:$0xf] }
  0x4d   : > { %v567_v28 = vsel %vm6735_vm4, %v562_v4, %v566_v57  ;;  %v574_v59 = vrot.slane %v572_v54, 5  ;;  %v588_v0 = vshll.u32 %v6929_v26, 16  ;;  %v401_v50 = vshrl.u32 %v6933_v34, 16  ;;  %9361 = vst [vmem:[#allocation16_spill] sm:$0xff] %v6954_v42 }
  0x4e   : > { %v5211_v22 = vcombine.low %v557_v39, %v567_v28  ;;  %v389_v18 = vsel %vm6735_vm4, %v384_v55, %v388_v3  ;;  %v394_v27 = vrot.slane %v393_v62, 4  ;;  %v580_v37 = vrot.slane %v578_v32, 5 }
  0x4f   : > { %v575_v45 = vor.u32 %v574_v59, %v571_v20  ;;  %v584_v61 = vrot.slane %v582_v44, 4  ;;  %v590_v57 = vrot.slane %v588_v0, 5  ;;  %v403_v4 = vrot.slane %v401_v50, 4  ;;  %v6964_v44 = vld [vmem:[%s6691_s9 + $0xac] sm:$0xf] }
  0x50   : > { %6080 = vmatprep.mubr.msk.bf16.mxu1 %vm690_vm3, %v5211_v22  ;;  %v399_v54 = vsel %vm6735_vm4, %v394_v27, %v398_v49  ;;  %v404_v39 = vshll.u32 %v6933_v34, 16  ;;  %v410_v28 = vshll.u32 %v6942_v17, 16  ;;  %v414_v62 = vshrl.u32 %v6942_v17, 16  ;;  %9362 = vst [vmem:[#allocation17_spill] sm:$0xff] %v6964_v44  ;;  %v6967_v22 = vld [vmem:[%s6691_s9 + $0xb0] sm:$0x1] }
  0x51   : > { %v5204_v3 = vcombine.low %v389_v18, %v399_v54  ;;  %v576_v32 = vrot.slane %v575_v45, 4  ;;  %v585_v55 = vor.u32 %v584_v61, %v580_v37  ;;  %v420_v20 = vshll.u32 %v6948_v2, 16  ;;  %9363 = vst [vmem:[#allocation18_spill] sm:$0xff] %v6967_v22 }
  0x52   : > { %v406_v59 = vrot.slane %v404_v39, 5  ;;  %v412_v0 = vrot.slane %v410_v28, 5  ;;  %v416_v50 = vrot.slane %v414_v62, 4  ;;  %v593_v49 = vshrl.u32 %v6954_v42, 16  ;;  %v6976_v62 = vld [vmem:[%s6691_s9 + $0x54] sm:$0xf] }
  0x53   : > { %6065 = vmatmul.mubr.msk.bf16.gmra.mxu0 %vm690_vm3, %v5204_v3  ;;  %v581_v18 = vsel %vm6735_vm4, %v576_v32, %v580_v37  ;;  %v586_v27 = vrot.slane %v585_v55, 4  ;;  %v422_v61 = vrot.slane %v420_v20, 5  ;;  %v596_v45 = vshll.u32 %v6954_v42, 16  ;;  %v6983_v55 = vld [vmem:[%s6691_s9 + $0x58] sm:$0xf] }
  0x54   : > { %v407_v54 = vor.u32 %v406_v59, %v403_v4  ;;  %v417_v56 = vor.u32 %v416_v50, %v412_v0  ;;  %v595_v39 = vrot.slane %v593_v49, 4  ;;  %v602_v28 = vshll.u32 %v6964_v44, 16  ;;  %v6986_v49 = vld [vmem:[%s6691_s9 + $0x5c] sm:$0x1] }
  0x55   : > { %v591_v3 = vsel %vm6735_vm4, %v586_v27, %v590_v57  ;;  %v598_v26 = vrot.slane %v596_v45, 5  ;;  %v606_v37 = vshrl.u32 %v6964_v44, 16  ;;  %v612_v32 = vshll.u32 %v6967_v22, 16  ;;  %v1196_v22 = vld [vmem:[%s6691_s9] sm:$0xe] }
  0x56   : > { %v5212_v4 = vcombine.low %v581_v18, %v591_v3  ;;  %v408_v20 = vrot.slane %v407_v54, 4  ;;  %v418_v59 = vrot.slane %v417_v56, 4  ;;  %v604_v50 = vrot.slane %v602_v28, 5  ;;  %v6997_v54 = vld [vmem:[%s6691_s9 + $0xb4] sm:$0xf] }
  0x57   : > { %v599_v42 = vor.u32 %v598_v26, %v595_v39  ;;  %v608_v52 = vrot.slane %v606_v37, 4  ;;  %v614_v13 = vrot.slane %v612_v32, 5  ;;  %v425_v57 = vshrl.u32 %v6976_v62, 16  ;;  %9364 = vst [vmem:[#allocation19_spill] sm:$0xff] %v6997_v54  ;;  %v7000_v37 = vld [vmem:[%s6691_s9 + $0xb8] sm:$0xf] }
  0x58   : > { %6081 = vmatmul.mubr.msk.bf16.gmra.mxu1 %vm690_vm3, %v5212_v4  ;;  %v413_v27 = vsel %vm6735_vm4, %v408_v20, %v412_v0  ;;  %v423_v18 = vsel %vm6735_vm4, %v418_v59, %v422_v61  ;;  %v428_v56 = vshll.u32 %v6976_v62, 16  ;;  %v434_v45 = vshll.u32 %v6983_v55, 16  ;;  %v7005_v61 = vld [vmem:[%s6691_s9 + $0xbc] sm:$0x1] }
  0x59   : > { %v5205_v26 = vcombine.low %v413_v27, %v423_v18  ;;  %v600_v39 = vrot.slane %v599_v42, 4  ;;  %v609_v28 = vor.u32 %v608_v52, %v604_v50  ;;  %v427_v3 = vrot.slane %v425_v57, 4 }
  0x5a   : > { %v430_v32 = vrot.slane %v428_v56, 5  ;;  %v436_v4 = vrot.slane %v434_v45, 5  ;;  %v438_v0 = vshrl.u32 %v6983_v55, 16  ;;  %v444_v20 = vshll.u32 %v6986_v49, 16 }
  0x5b   : > { %6068 = vmatprep.mubr.msk.bf16.mxu0 %vm690_vm3, %v5205_v26  ;;  %v605_v59 = vsel %vm6735_vm4, %v600_v39, %v604_v50  ;;  %v610_v27 = vrot.slane %v609_v28, 4  ;;  %v617_v52 = vshrl.u32 %v6997_v54, 16  ;;  %v620_v42 = vshll.u32 %v6997_v54, 16 }
  0x5c   : > { %v431_v57 = vor.u32 %v430_v32, %v427_v3  ;;  %v440_v18 = vrot.slane %v438_v0, 4  ;;  %v446_v56 = vrot.slane %v444_v20, 5  ;;  %v626_v45 = vshll.u32 %v7000_v37, 16 }
  0x5d   : > { %v615_v44 = vsel %vm6735_vm4, %v610_v27, %v614_v13  ;;  %v619_v16 = vrot.slane %v617_v52, 4  ;;  %v622_v26 = vrot.slane %v620_v42, 5  ;;  %v630_v38 = vshrl.u32 %v7000_v37, 16 }
  0x5e   : > { %v5213_v50 = vcombine.low %v605_v59, %v615_v44  ;;  %v432_v39 = vrot.slane %v431_v57, 4  ;;  %v441_v28 = vor.u32 %v440_v18, %v436_v4  ;;  %v628_v47 = vrot.slane %v626_v45, 5  ;;  %v1198_v57 = vld [vmem:[%s6691_s9 + $0x18] sm:$0xe] }
  0x5f   : > { %v623_v54 = vor.u32 %v622_v26, %v619_v16  ;;  %v632_v3 = vrot.slane %v630_v38, 4  ;;  %v636_v32 = vshll.u32 %v7005_v61, 16  ;;  %v5263_v13 = vrot.slane %v1196_v22, 9 }
  0x60   : > { %6084 = vmatprep.mubr.msk.bf16.mxu1 %vm690_vm3, %v5213_v50  ;;  %v437_v44 = vsel %vm6735_vm4, %v432_v39, %v436_v4  ;;  %v442_v20 = vrot.slane %v441_v28, 4  ;;  %v1249_v59 = vrot.slane %v6700_v6, 5  ;;  %v5232_v38 = vcombine.low %v6728_v29, %v6731_v30 }
  0x61   : > { %v624_v16 = vrot.slane %v623_v54, 4  ;;  %v633_v27 = vor.u32 %v632_v3, %v628_v47  ;;  %v638_v52 = vrot.slane %v636_v32, 5  ;;  %v5264_v42 = vrot.slane %v1197_v51, 9 }
  0x62   : > { %v447_v18 = vsel %vm6735_vm4, %v442_v20, %v446_v56  ;;  %v1250_v22 = vsel %vm7021_vm7, %v5263_v13, %v1249_v59  ;;  %v1251_v45 = vrot.slane %v1249_v59, 4  ;;  %v9367_v4 = vrot.slane %v6731_v30, 5 }
  0x63   : > { %v5206_v50 = vcombine.low %v437_v44, %v447_v18  ;;  %v629_v54 = vsel %vm6735_vm4, %v624_v16, %v628_v47  ;;  %v634_v39 = vrot.slane %v633_v27, 4  ;;  %v5231_v51 = vcombine.low %v6697_v5, %v6700_v6  ;;  %v1199_v27 = vld [vmem:[%s6691_s9 + $0x24] sm:$0xe] }
  0x64   : > { %v1258_v26 = vrot.slane %v9367_v4, 4  ;;  %v9368_v28 = vrot.slane %v6703_v7, 5  ;;  %v9369_v3 = vmov %v9367_v4  ;;  %v5233_v13 = vcombine.low %v6770_v8, %v6777_v21  ;;  %v1201_v4 = vld [vmem:[%s6691_s9 + $0x3c] sm:$0xe] }
  0x65   : > { %v1257_v32 = vsel %vm7021_vm7, %v5264_v42, %v9369_v3  ;;  %v5265_v44 = vrot.slane %v1198_v57, 9  ;;  %6069 = vmatmul.mubr.msk.bf16.gmra.mxu0 %vm690_vm3, %v5206_v50  ;;  %v639_v47 = vsel %vm6735_vm4, %v634_v39, %v638_v52  ;;  %v9370_v6 = vrot.slane %v6741_v41, 5  ;;  %v1200_v42 = vld [vmem:[%s6691_s9 + $0x30] sm:$0xe]  ;;  %v1202_v39 = vld [vmem:[%s6691_s9 + $0x48] sm:$0xe] }
  0x66   : > { %v1253_v56 = vsel %vm7021_vm7, %v1251_v45, %v9368_v28  ;;  %v1263_v20 = vrot.slane %v6777_v21, 5  ;;  %v5214_v59 = vcombine.low %v629_v54, %v639_v47  ;;  %v1266_v16 = vrot.slane %v6783_v25, 5  ;;  %v1203_v47 = vld [vmem:[%s6691_s9 + $0x54] sm:$0xe]  ;;  %v7316_v21 = vld [vmem:[%s6691_s9 + $0x2c] sm:$0x1] }
  0x67   : > { %v5280_v5 = vcombine.low %v1250_v22, %v1253_v56  ;;  %v1260_v7 = vsel %vm7021_vm7, %v1258_v26, %v9370_v6  ;;  %v1820_v52 = vsel %vm739_vm0, %v6828_v19, 0  ;;  %v1270_v18 = vrot.slane %v6822_v10, 5 }
  0x68   : > { %v1264_v41 = vsel %vm7021_vm7, %v5265_v44, %v1263_v20  ;;  %v1265_v57 = vrot.slane %v1263_v20, 4  ;;  %6085 = vmatmul.mubr.msk.bf16.gmra.mxu1 %vm690_vm3, %v5214_v59  ;;  %v5281_v22 = vcombine.low %v1257_v32, %v1260_v7  ;;  %v2546_v25 = vsel %vm739_vm0, %v6796_v40, 0 }
  0x69   : > { %6124 = vmatprep.mubr.msk.bf16.mxu0 %vm690_vm3, %v5280_v5  ;;  %v1277_v45 = vrot.slane %v6868_v9, 5  ;;  %6090 = vmatprep.mubr.msk.bf16.mxu1 %vm690_vm3, %v5231_v51  ;;  %v5266_v26 = vrot.slane %v1199_v27, 9  ;;  %v1273_v50 = vrot.slane %v6833_v24, 5  ;;  %v5267_v54 = vrot.slane %v1200_v42, 9  ;;  %v7088_v24 = vld [vmem:[%s9313_s1 + $0x18] sm:$0xf] }
  0x6a   : > { %v1267_v19 = vsel %vm7021_vm7, %v1265_v57, %v1266_v16  ;;  %v1272_v56 = vrot.slane %v1270_v18, 4  ;;  %v1280_v32 = vrot.slane %v6876_v33, 5  ;;  %v5268_v44 = vrot.slane %v1201_v4, 9 }
  0x6b   : > { %v5282_v28 = vcombine.low %v1264_v41, %v1267_v19  ;;  %v1279_v3 = vrot.slane %v1277_v45, 4  ;;  %v1284_v40 = vrot.slane %v6905_v23, 5  ;;  %v1308_v5 = vrot.slane %v6717_v15, 5 }
  0x6c   : > { %v1287_v51 = vrot.slane %v6914_v48, 5  ;;  %v5269_v6 = vrot.slane %v1202_v39, 9  ;;  %v1291_v7 = vrot.slane %v6942_v17, 5  ;;  %v5234_v33 = vcombine.low %v6814_v1, %v6822_v10  ;;  %v1204_v1 = vld [vmem:[%s6691_s9 + $0x60] sm:$0xe] }
  0x6d   : > { %6125 = vmatmul.mubr.msk.bf16.vlgmr.msra.gmra.mxu0 %vm690_vm3, %v5281_v22  ;;  %v1271_v20 = vsel %vm7021_vm7, %v5266_v26, %v1270_v18  ;;  %v1286_v59 = vrot.slane %v1284_v40, 4  ;;  %v1294_v16 = vrot.slane %v6948_v2, 5  ;;  %v1274_v48 = vsel %vm7021_vm7, %v1272_v56, %v1273_v50  ;;  %v7116_v22 = vld [vmem:[%s9313_s1 + $0x14] sm:$0xf]  ;;  %v7141_v50 = vld [vmem:[%s6691_s9 + $0x6c] sm:$0xe] }
  0x6e   : > { %6191 = vmatpush3.bf16.msra.mxu0 %v2546_v25  ;;  %6128 = vmatprep.mubr.msk.bf16.mxu0 %vm690_vm3, %v5282_v28  ;;  %v1278_v27 = vsel %vm7021_vm7, %v5267_v54, %v1277_v45  ;;  %v1281_v42 = vsel %vm7021_vm7, %v1279_v3, %v1280_v32  ;;  %v1293_v41 = vrot.slane %v1291_v7, 4  ;;  %v7106_v10 = vsel %vm7021_vm7, %v5268_v44, %v1284_v40  ;;  %v1207_v39 = vld [vmem:[%s6691_s9 + $0x84] sm:$0xe]  ;;  %v7170_v44 = vld [vmem:[%s6691_s9 + $0x78] sm:$0xe] }
  0x6f   : > { %v7110_v2 = vsel %vm7021_vm7, %v5269_v6, %v1291_v7  ;;  %v5270_v57 = vrot.slane %v1203_v47, 9  ;;  %v1298_v18 = vrot.slane %v6983_v55, 5  ;;  %6369 = vmatprep.subr.msk.bf16.mxu0 %vm739_vm0, %v7088_v24  ;;  %v7126_v25 = vsel %vm7021_vm7, %v1286_v59, %v1287_v51  ;;  %v1208_v40 = vld [vmem:[%s6691_s9 + $0x90] sm:$0xe] }
  0x70   : > { %6091 = vmatmul.mubr.msk.bf16.vlgmr.msra.gmra.mxu1 %vm690_vm3, %v5232_v38  ;;  %v7130_v45 = vsel %vm7021_vm7, %v1293_v41, %v1294_v16  ;;  %v1301_v4 = vrot.slane %v6986_v49, 5  ;;  %v1305_v19 = vrot.slane %v6714_v14, 5  ;;  %v5283_v29 = vcombine.low %v1271_v20, %v1274_v48  ;;  %v9371_v48 = vld [vmem:[#allocation9_spill] sm:$0xff] }
  0x71   : > { %6157 = vmatpush3.bf16.msra.mxu1 %v1820_v52  ;;  %6094 = vmatprep.mubr.msk.bf16.mxu1 %vm690_vm3, %v5233_v13  ;;  %v5235_v30 = vcombine.low %v6863_v60, %v6868_v9  ;;  %v1300_v38 = vrot.slane %v1298_v18, 4  ;;  %v5271_v26 = vrot.slane %v1204_v1, 9  ;;  %v5284_v49 = vcombine.low %v1278_v27, %v1281_v42  ;;  %v1209_v42 = vld [vmem:[%s6691_s9 + $0x9c] sm:$0xe] }
  0x72   : > { %v5236_v52 = vcombine.low %v6900_v11, %v6905_v23  ;;  %v5237_v8 = vcombine.low %v6933_v34, %v6942_v17  ;;  %6368 = vmatprep.subr.msk.bf16.mxu1 %vm739_vm0, %v7116_v22  ;;  %v5285_v60 = vcombine.low %v7106_v10, %v7126_v25  ;;  %v5286_v9 = vcombine.low %v7110_v2, %v7130_v45  ;;  %v9372_v10 = vld [vmem:[#allocation11_spill] sm:$0xff]  ;;  %v9373_v2 = vld [vmem:[#allocation10_spill] sm:$0xff] }
  0x73   : > { %v1307_v54 = vrot.slane %v1305_v19, 4  ;;  %v7160_v28 = vsel %vm7021_vm7, %v5270_v57, %v1298_v18  ;;  %v7164_v56 = vsel %vm7021_vm7, %v1300_v38, %v1301_v4  ;;  %v5272_v32 = vrot.slane %v7141_v50, 9  ;;  %v1210_v18 = vld [vmem:[%s6691_s9 + $0xa8] sm:$0xe]  ;;  %v9375_v38 = vld [vmem:[#allocation14_spill] sm:$0xff] }
  0x74   : > { %v7176_v47 = vsel %vm7021_vm7, %v5271_v26, %v1305_v19  ;;  %v1312_v51 = vrot.slane %v6756_v58, 5  ;;  %v1315_v6 = vrot.slane %v6764_v63, 5  ;;  %v5274_v59 = vrot.slane %v1207_v39, 9  ;;  %v9374_v19 = vld [vmem:[#allocation12_spill] sm:$0xff]  ;;  %v9376_v26 = vld [vmem:[#allocation13_spill] sm:$0xff] }
  0x75   : > { %6129 = vmatmul.mubr.msk.bf16.gmra.mxu0 %vm690_vm3, %v5283_v29  ;;  %v1326_v16 = vrot.slane %v6847_v43, 5  ;;  %v1329_v27 = vrot.slane %v9371_v48, 5  ;;  %v5287_v41 = vcombine.low %v7160_v28, %v7164_v56  ;;  %v7194_v63 = vsel %vm7021_vm7, %v1307_v54, %v1308_v5  ;;  %v9378_v48 = vld [vmem:[#allocation17_spill] sm:$0xff]  ;;  %v5377_v57 = vld [vmem:[%s6691_s9 + $0xc] sm:$0xf] }
  0x76   : > { %6132 = vmatprep.mubr.msk.bf16.mxu0 %vm690_vm3, %v5284_v49  ;;  %v5273_v1 = vrot.slane %v7170_v44, 9  ;;  %v5275_v4 = vrot.slane %v1208_v40, 9  ;;  %v1333_v15 = vrot.slane %v9372_v10, 5  ;;  %v1314_v5 = vrot.slane %v1312_v51, 4 }
  0x77   : > { %v7203_v25 = vsel %vm7021_vm7, %v5274_v59, %v1326_v16  ;;  %v1328_v45 = vrot.slane %v1326_v16, 4  ;;  %v1336_v29 = vrot.slane %v9374_v19, 5  ;;  %v5276_v49 = vrot.slane %v1209_v42, 9  ;;  %v9377_v59 = vld [vmem:[#allocation15_spill] sm:$0xff]  ;;  %v9379_v42 = vld [vmem:[#allocation16_spill] sm:$0xff] }
  0x78   : > { %6095 = vmatmul.mubr.msk.bf16.gmra.mxu1 %vm690_vm3, %v5234_v33  ;;  %v1319_v33 = vrot.slane %v6801_v46, 5  ;;  %v7217_v39 = vsel %vm7021_vm7, %v5275_v4, %v1333_v15  ;;  %v1335_v44 = vrot.slane %v1333_v15, 4  ;;  %v1340_v40 = vrot.slane %v9375_v38, 5  ;;  %v9380_v15 = vld [vmem:[#allocation18_spill] sm:$0xff] }
  0x79   : > { %6098 = vmatprep.mubr.msk.bf16.mxu1 %vm690_vm3, %v5235_v30  ;;  %v7213_v54 = vsel %vm7021_vm7, %v1328_v45, %v1329_v27  ;;  %v1343_v16 = vrot.slane %v9377_v59, 5  ;;  %v5277_v45 = vrot.slane %v1210_v18, 9  ;;  %v1347_v4 = vrot.slane %v9378_v48, 5 }
  0x7a   : > { %v7227_v27 = vsel %vm7021_vm7, %v1335_v44, %v1336_v29  ;;  %v1350_v50 = vrot.slane %v9380_v15, 5  ;;  %v7237_v19 = vsel %vm7021_vm7, %v5276_v49, %v1340_v40  ;;  %v1342_v7 = vrot.slane %v1340_v40, 4  ;;  %v9381_v29 = vld [vmem:[#allocation19_spill] sm:$0xff]  ;;  %v9382_v15 = vld [vmem:[#allocation8_spill] sm:$0xff]  ;;  %v5380_v40 = vld [vmem:[%s6691_s9 + $0x18] sm:$0xf] }
  0x7b   : > { %v7244_v18 = vsel %vm7021_vm7, %v5272_v32, %v1312_v51  ;;  %v7249_v59 = vsel %vm7021_vm7, %v5277_v45, %v1347_v4  ;;  %v1349_v30 = vrot.slane %v1347_v4, 4  ;;  %v7252_v49 = vld [vmem:[%s6691_s9 + $0x10] sm:$0xf]  ;;  %v1321_v20 = vrot.slane %v1319_v33, 4 }
  0x7c   : > { %v2064_v44 = vshrl.u32 %v5377_v57, 16  ;;  %v2067_v32 = vshll.u32 %v5377_v57, 16  ;;  %v5288_v51 = vcombine.low %v7176_v47, %v7194_v63  ;;  %v7267_v45 = vsel %vm7021_vm7, %v1314_v5, %v1315_v6  ;;  %v1211_v57 = vld [vmem:[%s6691_s9 + $0xb4] sm:$0xe]  ;;  %v7288_v47 = vld [vmem:[%s6691_s9 + $0x14] sm:$0x1] }
  0x7d   : > { %6133 = vmatmul.mubr.msk.bf16.gmra.mxu0 %vm690_vm3, %v5285_v60  ;;  %v1322_v60 = vrot.slane %v9382_v15, 5  ;;  %v7282_v11 = vsel %vm7021_vm7, %v5273_v1, %v1319_v33  ;;  %v2073_v6 = vshll.u32 %v7252_v49, 16  ;;  %v5381_v63 = vld [vmem:[%s6691_s9 + $0x1c] sm:$0xf]  ;;  %v2077_v17 = vshrl.u32 %v7252_v49, 16 }
  0x7e   : > { %6136 = vmatprep.mubr.msk.bf16.mxu0 %vm690_vm3, %v5286_v9  ;;  %v7257_v9 = vsel %vm7021_vm7, %v1342_v7, %v1343_v16  ;;  %v7273_v7 = vsel %vm7021_vm7, %v1349_v30, %v1350_v50  ;;  %v2066_v5 = vrot.slane %v2064_v44, 4  ;;  %v2069_v34 = vrot.slane %v2067_v32, 5  ;;  %v5383_v15 = vld [vmem:[%s6691_s9 + $0x24] sm:$0xf]  ;;  %v7301_v44 = vld [vmem:[%s6691_s9 + $0x28] sm:$0xf] }
  0x7f   : > { %v2088_v50 = vshrl.u32 %v5380_v40, 16  ;;  %v1323_v1 = vsel %vm7021_vm7, %v1321_v20, %v1322_v60  ;;  %v5278_v33 = vrot.slane %v1211_v57, 9  ;;  %v7296_v30 = vrot.slane %v2073_v6, 5 }
  0x80   : > { %6099 = vmatmul.mubr.msk.bf16.gmra.mxu1 %vm690_vm3, %v5236_v52  ;;  %v1354_v52 = vrot.slane %v7000_v37, 5  ;;  %v2091_v16 = vshll.u32 %v5380_v40, 16  ;;  %v1357_v23 = vrot.slane %v7005_v61, 5  ;;  %v2079_v4 = vrot.slane %v2077_v17, 4 }
  0x81   : > { %6102 = vmatprep.mubr.msk.bf16.mxu1 %vm690_vm3, %v5237_v8  ;;  %v5382_v8 = vld [vmem:[%s6691_s9 + $0x20] sm:$0x1]  ;;  %v2090_v3 = vrot.slane %v2088_v50, 4  ;;  %v2097_v13 = vshll.u32 %v5381_v63, 16  ;;  %v2083_v20 = vshll.u32 %v7288_v47, 16  ;;  %v2101_v57 = vshrl.u32 %v5381_v63, 16 }
  0x82   : > { %v1356_v32 = vrot.slane %v1354_v52, 4  ;;  %v2093_v60 = vrot.slane %v2091_v16, 5  ;;  %v5289_v61 = vcombine.low %v7244_v18, %v7267_v45  ;;  %v5290_v40 = vcombine.low %v7282_v11, %v1323_v1 }
  0x83   : > { %v2070_v6 = vor.u32 %v2069_v34, %v2066_v5  ;;  %v7312_v17 = vrot.slane %v2097_v13, 5  ;;  %v2080_v28 = vor.u32 %v2079_v4, %v7296_v30  ;;  %v2107_v50 = vshll.u32 %v5382_v8, 16  ;;  %v7339_v5 = vld [vmem:[%s6691_s9 + $0x34] sm:$0xf] }
  0x84   : > { %v2094_v56 = vor.u32 %v2093_v60, %v2090_v3  ;;  %v7324_v18 = vsel %vm7021_vm7, %v5278_v33, %v1354_v52  ;;  %v2112_v13 = vshrl.u32 %v5383_v15, 16  ;;  %v2115_v45 = vshll.u32 %v5383_v15, 16  ;;  %v5386_v52 = vld [vmem:[%s6691_s9 + $0x30] sm:$0xf] }
  0x85   : > { %6137 = vmatmul.mubr.msk.bf16.gmra.mxu0 %vm690_vm3, %v5287_v41  ;;  %v2103_v41 = vrot.slane %v2101_v57, 4  ;;  %v2121_v11 = vshll.u32 %v7301_v44, 16  ;;  %v9384_v3 = vcombine.low %v6710_v12, %v6714_v14  ;;  %v7333_v4 = vsel %vm7021_vm7, %v1356_v32, %v1357_v23 }
  0x86   : > { %6140 = vmatprep.mubr.msk.bf16.mxu0 %vm690_vm3, %v5288_v51  ;;  %v9383_v51 = vcombine.low %v6976_v62, %v6983_v55  ;;  %v2085_v62 = vrot.slane %v2083_v20, 5  ;;  %v2125_v63 = vshrl.u32 %v7301_v44, 16  ;;  %v2071_v34 = vrot.slane %v2070_v6, 4 }
  0x87   : > { %v2104_v55 = vor.u32 %v2103_v41, %v7312_v17  ;;  %v2114_v8 = vrot.slane %v2112_v13, 4  ;;  %v2117_v1 = vrot.slane %v2115_v45, 5  ;;  %v7341_v33 = vrot.slane %v2121_v11, 5  ;;  %v7347_v41 = vld [vmem:[%s6691_s9 + $0x38] sm:$0x1] }
  0x88   : > { %6103 = vmatmul.mubr.msk.bf16.gmra.mxu1 %vm690_vm3, %v9383_v51  ;;  %v2081_v12 = vrot.slane %v2080_v28, 4  ;;  %v2095_v14 = vrot.slane %v2094_v56, 4  ;;  %v2109_v16 = vrot.slane %v2107_v50, 5  ;;  %v2127_v23 = vrot.slane %v2125_v63, 4  ;;  %v5389_v13 = vld [vmem:[%s6691_s9 + $0x3c] sm:$0xf] }
  0x89   : > { %6106 = vmatprep.mubr.msk.bf16.mxu1 %vm690_vm3, %v9384_v3  ;;  %v2105_v15 = vrot.slane %v2104_v55, 4  ;;  %v2131_v32 = vshll.u32 %v7316_v21, 16  ;;  %v2136_v20 = vshrl.u32 %v5386_v52, 16  ;;  %v2139_v60 = vshll.u32 %v5386_v52, 16 }
  0x8a   : > { %v2118_v57 = vor.u32 %v2117_v1, %v2114_v8  ;;  %v2128_v6 = vor.u32 %v2127_v23, %v7341_v33  ;;  %v2145_v28 = vshll.u32 %v7339_v5, 16  ;;  %v2149_v56 = vshrl.u32 %v7339_v5, 16  ;;  %v5392_v8 = vld [vmem:[%s6691_s9 + $0x48] sm:$0xf]  ;;  %v7374_v1 = vld [vmem:[%s6691_s9 + $0x4c] sm:$0xf] }
  0x8b   : > { %v2138_v50 = vrot.slane %v2136_v20, 4  ;;  %v2141_v51 = vrot.slane %v2139_v60, 5  ;;  %v9385_v3 = vcombine.low %v6752_v53, %v6756_v58  ;;  %v5295_v55 = vcombine.low %v7324_v18, %v7333_v4 }
  0x8c   : > { %v7353_v45 = vrot.slane %v2145_v28, 5  ;;  %v2151_v11 = vrot.slane %v2149_v56, 4  ;;  %v2086_v63 = vsel %vm6735_vm4, %v2081_v12, %v2085_v62  ;;  %v2100_v52 = vsel %vm6735_vm4, %v2095_v14, %v7312_v17 }
  0x8d   : > { %6141 = vmatmul.mubr.msk.bf16.gmra.mxu0 %vm690_vm3, %v5289_v61  ;;  %v7356_v61 = vld [vmem:[%s6691_s9 + $0x40] sm:$0xf]  ;;  %v9386_v53 = vcombine.low %v6790_v35, %v6801_v46  ;;  %v2110_v58 = vsel %vm6735_vm4, %v2105_v15, %v2109_v16  ;;  %v2119_v23 = vrot.slane %v2118_v57, 4  ;;  %v2142_v20 = vor.u32 %v2141_v51, %v2138_v50  ;;  %v7408_v50 = vld [vmem:[%s6691_s9 + $0x44] sm:$0x1] }
  0x8e   : > { %6144 = vmatprep.mubr.msk.bf16.mxu0 %vm690_vm3, %v5290_v40  ;;  %v2076_v40 = vsel %vm6735_vm4, %v2071_v34, %v7296_v30  ;;  %v2129_v30 = vrot.slane %v2128_v6, 4  ;;  %v2133_v34 = vrot.slane %v2131_v32, 5  ;;  %v2155_v62 = vshll.u32 %v7347_v41, 16  ;;  %v5395_v51 = vld [vmem:[%s6691_s9 + $0x54] sm:$0xf] }
  0x8f   : > { %v2160_v12 = vshrl.u32 %v5389_v13, 16  ;;  %v2163_v17 = vshll.u32 %v5389_v13, 16  ;;  %v7385_v14 = vsel %vm739_vm0, %v7116_v22, 0  ;;  %v2152_v35 = vor.u32 %v2151_v11, %v7353_v45 }
  0x90   : > { %6107 = vmatmul.mubr.msk.bf16.gmra.mxu1 %vm690_vm3, %v9385_v3  ;;  %v2169_v46 = vshll.u32 %v7356_v61, 16  ;;  %v2173_v16 = vshrl.u32 %v7356_v61, 16  ;;  %v7390_v15 = vcombine.low %v2076_v40, %v2086_v63  ;;  %v7394_v32 = vsel %vm739_vm0, %v7088_v24, 0  ;;  %v7417_v40 = vld [vmem:[%s6691_s9 + $0x58] sm:$0xf] }
  0x91   : > { %6110 = vmatprep.mubr.msk.bf16.mxu1 %vm690_vm3, %v9386_v53  ;;  %v2184_v60 = vshrl.u32 %v5392_v8, 16  ;;  %v2187_v57 = vshll.u32 %v5392_v8, 16  ;;  %v9387_v6 = vcombine.low %v7203_v25, %v7213_v54  ;;  %v7400_v22 = vcombine.low %v2100_v52, %v2110_v58  ;;  %v7422_v8 = vld [vmem:[%s6691_s9 + $0x50] sm:$0x1] }
  0x92   : > { %v2124_v28 = vsel %vm6735_vm4, %v2119_v23, %v7341_v33  ;;  %v2134_v56 = vsel %vm6735_vm4, %v2129_v30, %v2133_v34  ;;  %v2193_v24 = vshll.u32 %v7374_v1, 16  ;;  %v9388_v25 = vcombine.low %v7217_v39, %v7227_v27  ;;  %v5398_v34 = vld [vmem:[%s6691_s9 + $0x60] sm:$0xf] }
  0x93   : > { %v2143_v54 = vrot.slane %v2142_v20, 4  ;;  %v2157_v13 = vrot.slane %v2155_v62, 5  ;;  %v2162_v11 = vrot.slane %v2160_v12, 4  ;;  %v2165_v3 = vrot.slane %v2163_v17, 5 }
  0x94   : > { %v2153_v33 = vrot.slane %v2152_v35, 4  ;;  %v7419_v63 = vrot.slane %v2169_v46, 5  ;;  %v2175_v52 = vrot.slane %v2173_v16, 4  ;;  %v2197_v53 = vshrl.u32 %v7374_v1, 16  ;;  %v7439_v35 = vld [vmem:[%s6691_s9 + $0x5c] sm:$0x1] }
  0x95   : > { %6145 = vmatmul.mubr.msk.bf16.gmra.mxu0 %vm690_vm3, %v9387_v6  ;;  %v9389_v39 = vcombine.low %v6840_v36, %v6847_v43  ;;  %v2186_v27 = vrot.slane %v2184_v60, 4  ;;  %v2189_v58 = vrot.slane %v2187_v57, 5  ;;  %v2208_v23 = vshrl.u32 %v5395_v51, 16 }
  0x96   : > { %6148 = vmatprep.mubr.msk.bf16.mxu0 %vm690_vm3, %v9388_v25  ;;  %v2211_v30 = vshll.u32 %v5395_v51, 16  ;;  %v9390_v20 = vcombine.low %v9373_v2, %v9372_v10  ;;  %v7434_v62 = vcombine.low %v2124_v28, %v2134_v56  ;;  %v7436_v12 = vrot.slane %v2193_v24, 5  ;;  %v7452_v28 = vld [vmem:[%s6691_s9 + $0x64] sm:$0xf] }
  0x97   : > { %v2199_v17 = vrot.slane %v2197_v53, 4  ;;  %v2217_v36 = vshll.u32 %v7417_v40, 16  ;;  %v2179_v43 = vshll.u32 %v7408_v50, 16  ;;  %v2210_v46 = vrot.slane %v2208_v23, 4 }
  0x98   : > { %6111 = vmatmul.mubr.msk.bf16.gmra.mxu1 %vm690_vm3, %v9389_v39  ;;  %v2213_v16 = vrot.slane %v2211_v30, 5  ;;  %v2221_v60 = vshrl.u32 %v7417_v40, 16  ;;  %v2148_v10 = vsel %vm6735_vm4, %v2143_v54, %v7353_v45  ;;  %v2158_v2 = vsel %vm6735_vm4, %v2153_v33, %v2157_v13  ;;  %v7474_v30 = vld [vmem:[%s6691_s9 + $0x68] sm:$0x1] }
  0x99   : > { %6114 = vmatprep.mubr.msk.bf16.mxu1 %vm690_vm3, %v9390_v20  ;;  %v2166_v57 = vor.u32 %v2165_v3, %v2162_v11  ;;  %v7449_v6 = vrot.slane %v2217_v36, 5  ;;  %v2176_v56 = vor.u32 %v2175_v52, %v7419_v63  ;;  %v2190_v24 = vor.u32 %v2189_v58, %v2186_v27  ;;  %v5401_v3 = vld [vmem:[%s6691_s9 + $0x6c] sm:$0xf]  ;;  %v7471_v27 = vld [vmem:[%s6691_s9 + $0x70] sm:$0xf] }
  0x9a   : > { %v2203_v51 = vshll.u32 %v7422_v8, 16  ;;  %v2223_v25 = vrot.slane %v2221_v60, 4  ;;  %v9391_v53 = vcombine.low %v7237_v19, %v7257_v9  ;;  %v2200_v45 = vor.u32 %v2199_v17, %v7436_v12 }
  0x9b   : > { %v2214_v54 = vor.u32 %v2213_v16, %v2210_v46  ;;  %v2232_v13 = vshrl.u32 %v5398_v34, 16  ;;  %v2235_v11 = vshll.u32 %v5398_v34, 16  ;;  %v9392_v33 = vcombine.low %v7249_v59, %v7273_v7  ;;  %v5404_v16 = vld [vmem:[%s6691_s9 + $0x78] sm:$0xf] }
  0x9c   : > { %v2224_v52 = vor.u32 %v2223_v25, %v7449_v6  ;;  %v2227_v39 = vshll.u32 %v7439_v35, 16  ;;  %v2241_v19 = vshll.u32 %v7452_v28, 16  ;;  %v2245_v9 = vshrl.u32 %v7452_v28, 16 }
  0x9d   : > { %6149 = vmatmul.mubr.msk.bf16.gmra.mxu0 %vm690_vm3, %v9391_v53  ;;  %v2167_v58 = vrot.slane %v2166_v57, 4  ;;  %v2181_v23 = vrot.slane %v2179_v43, 5  ;;  %v2234_v34 = vrot.slane %v2232_v13, 4  ;;  %v2237_v20 = vrot.slane %v2235_v11, 5 }
  0x9e   : > { %6152 = vmatprep.mubr.msk.bf16.mxu0 %vm690_vm3, %v9392_v33  ;;  %v9393_v59 = vcombine.low %v9376_v26, %v9375_v38  ;;  %v7480_v7 = vcombine.low %v2148_v10, %v2158_v2  ;;  %v2177_v17 = vrot.slane %v2176_v56, 4  ;;  %v2191_v36 = vrot.slane %v2190_v24, 4  ;;  %v7490_v2 = vld [vmem:[%s6691_s9 + $0x7c] sm:$0xf] }
  0x9f   : > { %v7482_v46 = vrot.slane %v2241_v19, 5  ;;  %v9394_v43 = vcombine.low %v9379_v42, %v9378_v48  ;;  %v2201_v60 = vrot.slane %v2200_v45, 4  ;;  %v2205_v57 = vrot.slane %v2203_v51, 5  ;;  %9395 = vst [vmem:[#allocation9_spill] sm:$0xff] %v7490_v2  ;;  %v5407_v19 = vld [vmem:[%s6691_s9 + $0x84] sm:$0xf] }
  0xa0   : > { %6115 = vmatmul.mubr.msk.bf16.gmra.mxu1 %vm690_vm3, %v9393_v59  ;;  %v2215_v25 = vrot.slane %v2214_v54, 4  ;;  %v2247_v38 = vrot.slane %v2245_v9, 4  ;;  %v2225_v26 = vrot.slane %v2224_v52, 4  ;;  %v2229_v53 = vrot.slane %v2227_v39, 5 }
  0xa1   : > { %6118 = vmatprep.mubr.msk.bf16.mxu1 %vm690_vm3, %v9394_v43  ;;  %v2238_v13 = vor.u32 %v2237_v20, %v2234_v34  ;;  %v2256_v10 = vshrl.u32 %v5401_v3, 16  ;;  %v2172_v56 = vsel %vm6735_vm4, %v2167_v58, %v7419_v63  ;;  %v2259_v24 = vshll.u32 %v5401_v3, 16  ;;  %v6451_v63 = vld [vmem:[%s6691_s9 + $0xc] sm:$0xff]   ;;  %v7524_v34 = vld [vmem:[%s6691_s9 + $0x88] sm:$0xf] }
  0xa2   : > { %v2265_v48 = vshll.u32 %v7471_v27, 16  ;;  %v2269_v42 = vshrl.u32 %v7471_v27, 16  ;;  %v2182_v51 = vsel %vm6735_vm4, %v2177_v17, %v2181_v23  ;;  %v2196_v45 = vsel %vm6735_vm4, %v2191_v36, %v7436_v12  ;;  %9396 = vst [vmem:[#allocation11_spill] sm:$0xff] %v7524_v34  ;;  %v7533_v36 = vld [vmem:[%s6691_s9 + $0x74] sm:$0x1] }
  0xa3   : > { %v2248_v54 = vor.u32 %v2247_v38, %v7482_v46  ;;  %v2251_v11 = vshll.u32 %v7474_v30, 16  ;;  %v2206_v3 = vsel %vm6735_vm4, %v2201_v60, %v2205_v57  ;;  %v2220_v33 = vsel %vm6735_vm4, %v2215_v25, %v7449_v6  ;;  %9398 = vst [vmem:[#allocation10_spill] sm:$0xff] %v7533_v36  ;;  %v7543_v38 = vld [vmem:[%s6691_s9 + $0x80] sm:$0x1] }
  0xa4   : > { %v2280_v52 = vshrl.u32 %v5404_v16, 16  ;;  %v2283_v12 = vshll.u32 %v5404_v16, 16  ;;  %v2230_v18 = vsel %vm6735_vm4, %v2225_v26, %v2229_v53  ;;  %v2239_v4 = vrot.slane %v2238_v13, 4  ;;  %9399 = vst [vmem:[#allocation12_spill] sm:$0xff] %v7543_v38  ;;  %v7546_v26 = vld [vmem:[%s6691_s9 + $0x8c] sm:$0x1] }
  0xa5   : > { %6153 = vmatmul.mubr.msk.bf16.gmra.mxu0 %vm690_vm3, %v5295_v55  ;;  %v2258_v55 = vrot.slane %v2256_v10, 4  ;;  %v2289_v39 = vshll.u32 %v7490_v2, 16  ;;  %v2261_v9 = vrot.slane %v2259_v24, 5  ;;  %v7520_v58 = vrot.slane %v2265_v48, 5  ;;  %9400 = vst [vmem:[#allocation14_spill] sm:$0xff] %v7546_v26  ;;  %v6452_v10 = vld [vmem:[%s6691_s9 + $0x18] sm:$0xff]  }
  0xa6   : > { %6192 = vmatprep.mubr.msk.bf16.mxu0 %vm690_vm3, %v7390_v15  ;;  %v2271_v23 = vrot.slane %v2269_v42, 4  ;;  %v2293_v6 = vshrl.u32 %v7490_v2, 16  ;;  %v9397_v15 = vcombine.low %v9381_v29, %v7000_v37  ;;  %v7530_v20 = vcombine.low %v2172_v56, %v2182_v51  ;;  %v5410_v51 = vld [vmem:[%s6691_s9 + $0x90] sm:$0xf] }
  0xa7   : > { %v2249_v59 = vrot.slane %v2248_v54, 4  ;;  %v2253_v17 = vrot.slane %v2251_v11, 5  ;;  %v2282_v16 = vrot.slane %v2280_v52, 4  ;;  %v2285_v43 = vrot.slane %v2283_v12, 5 }
  0xa8   : > { %6119 = vmatmul.mubr.msk.bf16.gmra.mxu1 %vm690_vm3, %v9397_v15  ;;  %v7536_v60 = vrot.slane %v2289_v39, 5  ;;  %v2295_v57 = vrot.slane %v2293_v6, 4  ;;  %v2304_v25 = vshrl.u32 %v5407_v19, 16  ;;  %v7538_v37 = vcombine.low %v2196_v45, %v2206_v3  ;;  %v7557_v45 = vld [vmem:[%s6691_s9 + $0x94] sm:$0xf] }
  0xa9   : > { %6158 = vmatprep.mubr.msk.bf16.mxu1 %vm690_vm3, %v6451_v63  ;;  %v7540_v29 = vcombine.low %v2220_v33, %v2230_v18  ;;  %v2307_v53 = vshll.u32 %v5407_v19, 16  ;;  %v2313_v13 = vshll.u32 %v7524_v34, 16  ;;  %v2244_v56 = vsel %vm6735_vm4, %v2239_v4, %v7482_v46  ;;  %9401 = vst [vmem:[#allocation13_spill] sm:$0xff] %v7557_v45  ;;  %v7565_v33 = vld [vmem:[%s9313_s1 + $0x20] sm:$0xf]  ;;  %v6453_v46 = vld [vmem:[%s6691_s9 + $0x24] sm:$0xff]  }
  0xaa   : > { %v2262_v24 = vor.u32 %v2261_v9, %v2258_v55  ;;  %v2272_v48 = vor.u32 %v2271_v23, %v7520_v58  ;;  %v2275_v42 = vshll.u32 %v7533_v36, 16  ;;  %v2306_v54 = vrot.slane %v2304_v25, 4  ;;  %9402 = vst [vmem:[#allocation15_spill] sm:$0xff] %v7565_v33 }
  0xab   : > { %v2309_v11 = vrot.slane %v2307_v53, 5  ;;  %v7559_v63 = vrot.slane %v2313_v13, 5  ;;  %v2317_v3 = vshrl.u32 %v7524_v34, 16  ;;  %v2254_v52 = vsel %vm6735_vm4, %v2249_v59, %v2253_v17 }
  0xac   : > { %v2286_v12 = vor.u32 %v2285_v43, %v2282_v16  ;;  %v2296_v18 = vor.u32 %v2295_v57, %v7536_v60  ;;  %v2299_v4 = vshll.u32 %v7543_v38, 16  ;;  %v2328_v19 = vshrl.u32 %v5410_v51, 16  ;;  %v7599_v57 = vld [vmem:[%s6691_s9 + $0xa0] sm:$0xf] }
  0xad   : > { %6193 = vmatmul.mubr.msk.bf16.vlgmr.msra.gmra.mxu0 %vm690_vm3, %v7400_v22  ;;  %v2310_v55 = vor.u32 %v2309_v11, %v2306_v54  ;;  %v2319_v39 = vrot.slane %v2317_v3, 4  ;;  %v2331_v9 = vshll.u32 %v5410_v51, 16  ;;  %v5413_v22 = vld [vmem:[%s6691_s9 + $0x9c] sm:$0xf]  ;;  %v7578_v23 = vrot.slane %v2262_v24, 4  ;;  %9404 = vst [vmem:[#allocation16_spill] sm:$0xff] %v7599_v57 }
  0xae   : > { %6259 = vmatpush3.bf16.msra.mxu0 %v7394_v32  ;;  %6196 = vmatprep.mubr.msk.bf16.mxu0 %vm690_vm3, %v7434_v62  ;;  %v7580_v6 = vrot.slane %v2275_v42, 5  ;;  %v2323_v15 = vshll.u32 %v7546_v26, 16  ;;  %v2337_v59 = vshll.u32 %v7557_v45, 16  ;;  %v7587_v32 = vld [vmem:[%s9313_s1 + $0x1c] sm:$0xf]  ;;  %v7592_v62 = vcombine.low %v2244_v56, %v2254_v52 }
  0xaf   : > { %9403 = vst [vmem:[#allocation17_spill] sm:$0xff] %v7587_v32  ;;  %6371 = vmatprep.subr.msk.bf16.mxu0 %vm739_vm0, %v7565_v33  ;;  %v7594_v17 = vrot.slane %v2272_v48, 4  ;;  %v2320_v16 = vor.u32 %v2319_v39, %v7559_v63  ;;  %v2341_v43 = vshrl.u32 %v7557_v45, 16  ;;  %v7603_v25 = vrot.slane %v2286_v12, 4  ;;  %v7612_v56 = vld [vmem:[%s6691_s9 + $0x98] sm:$0x1] }
  0xb0   : > { %6159 = vmatmul.mubr.msk.bf16.vlgmr.msra.gmra.mxu1 %vm690_vm3, %v6452_v10  ;;  %v7605_v53 = vrot.slane %v2296_v18, 4  ;;  %v7607_v13 = vrot.slane %v2299_v4, 5  ;;  %v7609_v10 = vrot.slane %v2310_v55, 4  ;;  %9405 = vst [vmem:[#allocation18_spill] sm:$0xff] %v7612_v56  ;;  %v2330_v24 = vrot.slane %v2328_v19, 4  ;;  %v6455_v19 = vld [vmem:[%s6691_s9 + $0x3c] sm:$0xff]  }
  0xb1   : > { %6225 = vmatpush3.bf16.msra.mxu1 %v7385_v14  ;;  %6162 = vmatprep.mubr.msk.bf16.mxu1 %vm690_vm3, %v6453_v46  ;;  %v2333_v48 = vrot.slane %v2331_v9, 5  ;;  %v2352_v42 = vshrl.u32 %v5413_v22, 16  ;;  %v2355_v51 = vshll.u32 %v5413_v22, 16  ;;  %v6454_v14 = vld [vmem:[%s6691_s9 + $0x30] sm:$0xff]   ;;  %v7621_v11 = vrot.slane %v2323_v15, 5 }
  0xb2   : > { %6370 = vmatprep.subr.msk.bf16.mxu1 %vm739_vm0, %v7587_v32  ;;  %v7623_v3 = vrot.slane %v2337_v59, 5  ;;  %v2361_v46 = vshll.u32 %v7599_v57, 16  ;;  %v5416_v52 = vld [vmem:[%s6691_s9 + $0xa8] sm:$0xf]  ;;  %v7627_v12 = vrot.slane %v2320_v16, 4  ;;  %v2343_v18 = vrot.slane %v2341_v43, 4 }
  0xb3   : > { %v2347_v4 = vshll.u32 %v7612_v56, 16  ;;  %v2365_v55 = vshrl.u32 %v7599_v57, 16  ;;  %v7632_v39 = vld [vmem:[%s6691_s9 + $0xac] sm:$0xf]  ;;  %v2334_v59 = vor.u32 %v2333_v48, %v2330_v24  ;;  %v7656_v16 = vld [vmem:[%s6691_s9 + $0xa4] sm:$0x1] }
  0xb4   : > { %9406 = vst [vmem:[#allocation19_spill] sm:$0xff] %v7632_v39  ;;  %9407 = vst [vmem:[#allocation8_spill] sm:$0xff] %v7656_v16  ;;  %v2354_v43 = vrot.slane %v2352_v42, 4  ;;  %v2357_v22 = vrot.slane %v2355_v51, 5  ;;  %v2376_v54 = vshrl.u32 %v5416_v52, 16  ;;  %v7658_v9 = vrot.slane %v2361_v46, 5 }
  0xb5   : > { %6197 = vmatmul.mubr.msk.bf16.gmra.mxu0 %vm690_vm3, %v7480_v7  ;;  %v2367_v32 = vrot.slane %v2365_v55, 4  ;;  %v2379_v15 = vshll.u32 %v5416_v52, 16  ;;  %v2385_v33 = vshll.u32 %v7632_v39, 16  ;;  %v5419_v57 = vld [vmem:[%s6691_s9 + $0xb4] sm:$0xf]  ;;  %v2344_v24 = vor.u32 %v2343_v18, %v7623_v3 }
  0xb6   : > { %6200 = vmatprep.mubr.msk.bf16.mxu0 %vm690_vm3, %v7530_v20  ;;  %v2326_v20 = vsel %vm6735_vm4, %v7627_v12, %v7621_v11  ;;  %v7668_v48 = vrot.slane %v2347_v4, 5  ;;  %v7671_v42 = vld [vmem:[%s6691_s9 + $0xb0] sm:$0x1]  ;;  %v2378_v51 = vrot.slane %v2376_v54, 4  ;;  %v7674_v46 = vld [vmem:[%s6691_s9 + $0xb8] sm:$0xf]  ;;  %v2358_v18 = vor.u32 %v2357_v22, %v2354_v43 }
  0xb7   : > { %9408 = vst [vmem:[#allocation20_spill] sm:$0xff] %v7671_v42  ;;  %9409 = vst [vmem:[#allocation21_spill] sm:$0xff] %v7674_v46  ;;  %v2381_v52 = vrot.slane %v2379_v15, 5  ;;  %v7678_v55 = vrot.slane %v2385_v33, 5  ;;  %v2389_v11 = vshrl.u32 %v7632_v39, 16  ;;  %v7681_v12 = vrot.slane %v2334_v59, 4 }
  0xb8   : > { %6163 = vmatmul.mubr.msk.bf16.gmra.mxu1 %vm690_vm3, %v6454_v14  ;;  %v2371_v14 = vshll.u32 %v7656_v16, 16  ;;  %v7684_v4 = vld [vmem:[%s6691_s9 + $0xbc] sm:$0x1]  ;;  %v2400_v54 = vshrl.u32 %v5419_v57, 16  ;;  %v2403_v7 = vshll.u32 %v5419_v57, 16  ;;  %v2368_v56 = vor.u32 %v2367_v32, %v7658_v9  ;;  %v6456_v16 = vld [vmem:[%s6691_s9 + $0x48] sm:$0xff]  }
  0xb9   : > { %6166 = vmatprep.mubr.msk.bf16.mxu1 %vm690_vm3, %v6455_v19  ;;  %v2391_v45 = vrot.slane %v2389_v11, 4  ;;  %v2395_v19 = vshll.u32 %v7671_v42, 16  ;;  %v2409_v15 = vshll.u32 %v7674_v46, 16  ;;  %v5422_v33 = vld [vmem:[%s6691_s9 + $0xc0] sm:$0xf]  ;;  %v2382_v26 = vor.u32 %v2381_v52, %v2378_v51  ;;  %v6457_v57 = vld [vmem:[%s6691_s9 + $0x54] sm:$0xff]  }
  0xba   : > { %v2402_v39 = vrot.slane %v2400_v54, 4  ;;  %v2405_v34 = vrot.slane %v2403_v7, 5  ;;  %v2413_v59 = vshrl.u32 %v7674_v46, 16  ;;  %v7693_v22 = vld [vmem:[%s6691_s9 + $0xc4] sm:$0xf]  ;;  %v2345_v43 = vrot.slane %v2344_v24, 4 }
  0xbb   : > { %v2373_v32 = vrot.slane %v2371_v14, 5  ;;  %v2392_v11 = vor.u32 %v2391_v45, %v7678_v55  ;;  %v2411_v42 = vrot.slane %v2409_v15, 5  ;;  %v2419_v7 = vshll.u32 %v7684_v4, 16  ;;  %v7705_v45 = vld [vmem:[%s6691_s9 + $0xc8] sm:$0x1] }
  0xbc   : > { %v2406_v51 = vor.u32 %v2405_v34, %v2402_v39  ;;  %v2415_v52 = vrot.slane %v2413_v59, 4  ;;  %v2424_v54 = vshrl.u32 %v5422_v33, 16  ;;  %v2359_v46 = vrot.slane %v2358_v18, 4 }
  0xbd   : > { %6201 = vmatmul.mubr.msk.bf16.gmra.mxu0 %vm690_vm3, %v7538_v37  ;;  %v2369_v38 = vrot.slane %v2368_v56, 4  ;;  %v2427_v2 = vshll.u32 %v5422_v33, 16  ;;  %v2433_v37 = vshll.u32 %v7693_v22, 16  ;;  %v2383_v24 = vrot.slane %v2382_v26, 4 }
  0xbe   : > { %6204 = vmatprep.mubr.msk.bf16.mxu0 %vm690_vm3, %v7540_v29  ;;  %v2397_v14 = vrot.slane %v2395_v19, 5  ;;  %v2416_v36 = vor.u32 %v2415_v52, %v2411_v42  ;;  %v2426_v15 = vrot.slane %v2424_v54, 4  ;;  %v2393_v34 = vrot.slane %v2392_v11, 4 }
  0xbf   : > { %v2429_v29 = vrot.slane %v2427_v2, 5  ;;  %v7708_v39 = vrot.slane %v2433_v37, 5  ;;  %v2437_v56 = vshrl.u32 %v7693_v22, 16  ;;  %v9410_v26 = vsel %vm6735_vm4, %v7594_v17, %v7580_v6 }
  0xc0   : > { %6167 = vmatmul.mubr.msk.bf16.gmra.mxu1 %vm690_vm3, %v6456_v16  ;;  %v9411_v16 = vsel %vm6735_vm4, %v7578_v23, %v7520_v58  ;;  %v2407_v19 = vrot.slane %v2406_v51, 4  ;;  %v2417_v33 = vrot.slane %v2416_v36, 4  ;;  %v2421_v2 = vrot.slane %v2419_v7, 5  ;;  %v6458_v23 = vld [vmem:[%s6691_s9 + $0x60] sm:$0xff]  }
  0xc1   : > { %6170 = vmatprep.mubr.msk.bf16.mxu1 %vm690_vm3, %v6457_v57  ;;  %v5434_v18 = vcombine.low %v9411_v16, %v9410_v26  ;;  %v9412_v59 = vsel %vm6735_vm4, %v7605_v53, %v7607_v13  ;;  %v9413_v6 = vsel %vm6735_vm4, %v7603_v25, %v7536_v60  ;;  %v2430_v57 = vor.u32 %v2429_v29, %v2426_v15  ;;  %v5460_v13 = vld [vmem:[%s6691_s9 + $0x24] sm:$0xe]  ;;  %v5463_v26 = vld [vmem:[%s6691_s9 + $0x48] sm:$0xe] }
  0xc2   : > { %v5435_v17 = vcombine.low %v9413_v6, %v9412_v59  ;;  %v2439_v11 = vrot.slane %v2437_v56, 4  ;;  %v2443_v58 = vshll.u32 %v7705_v45, 16  ;;  %v9414_v36 = vsel %vm6735_vm4, %v7609_v10, %v7559_v63  ;;  %v6459_v63 = vld [vmem:[%s6691_s9 + $0x6c] sm:$0xff]   ;;  %v5464_v6 = vld [vmem:[%s6691_s9 + $0x54] sm:$0xe] }
  0xc3   : > { %v5436_v51 = vcombine.low %v9414_v36, %v2326_v20  ;;  %v2340_v53 = vsel %vm6735_vm4, %v7681_v12, %v7623_v3  ;;  %v2350_v60 = vsel %vm6735_vm4, %v2345_v43, %v7668_v48  ;;  %v2364_v25 = vsel %vm6735_vm4, %v2359_v46, %v7658_v9  ;;  %v7761_v12 = vld [vmem:[%s6691_s9 + $0xc] sm:$0xe] }
  0xc4   : > { %v2374_v10 = vsel %vm6735_vm4, %v2369_v38, %v2373_v32  ;;  %v2388_v3 = vsel %vm6735_vm4, %v2383_v24, %v7678_v55  ;;  %v2398_v20 = vsel %vm6735_vm4, %v2393_v34, %v2397_v14  ;;  %v2440_v48 = vor.u32 %v2439_v11, %v7708_v39  ;;  %v5461_v55 = vld [vmem:[%s6691_s9 + $0x30] sm:$0xe]  ;;  %v5462_v14 = vld [vmem:[%s6691_s9 + $0x3c] sm:$0xe] }
  0xc5   : > { %6205 = vmatmul.mubr.msk.bf16.gmra.mxu0 %vm690_vm3, %v7592_v62  ;;  %v2412_v62 = vsel %vm6735_vm4, %v2407_v19, %v2411_v42  ;;  %v2422_v38 = vsel %vm6735_vm4, %v2417_v33, %v2421_v2  ;;  %v7768_v9 = vrot.slane %v2430_v57, 4  ;;  %v2807_v46 = vrot.slane %v7252_v49, 5  ;;  %v6460_v57 = vld [vmem:[%s6691_s9 + $0x78] sm:$0xff]  }
  0xc6   : > { %6208 = vmatprep.mubr.msk.bf16.mxu0 %vm690_vm3, %v5434_v18  ;;  %v7772_v43 = vcombine.low %v2340_v53, %v2350_v60  ;;  %v7774_v32 = vrot.slane %v2440_v48, 4  ;;  %v7776_v52 = vrot.slane %v2443_v58, 5  ;;  %v5476_v7 = vrot.slane %v5460_v13, 9  ;;  %v6461_v53 = vld [vmem:[%s6691_s9 + $0x84] sm:$0xff]   ;;  %v5465_v13 = vld [vmem:[%s6691_s9 + $0x60] sm:$0xe] }
  0xc7   : > { %v7779_v54 = vcombine.low %v2364_v25, %v2374_v10  ;;  %v7781_v42 = vcombine.low %v2388_v3, %v2398_v20  ;;  %v5474_v37 = vrot.slane %v7761_v12, 9  ;;  %v2821_v24 = vrot.slane %v7301_v44, 5  ;;  %v6467_v49 = vld [vmem:[%s6691_s9 + $0x18] sm:$0xff]  }
  0xc8   : > { %6171 = vmatmul.mubr.msk.bf16.gmra.mxu1 %vm690_vm3, %v6458_v23  ;;  %v7787_v15 = vcombine.low %v2412_v62, %v2422_v38  ;;  %v2810_v34 = vrot.slane %v7288_v47, 5  ;;  %v2824_v29 = vrot.slane %v7316_v21, 5  ;;  %v5477_v56 = vrot.slane %v5461_v55, 9  ;;  %v5467_v55 = vld [vmem:[%s6691_s9 + $0x78] sm:$0xe] }
  0xc9   : > { %6174 = vmatprep.mubr.msk.bf16.mxu1 %vm690_vm3, %v6459_v63  ;;  %v2436_v16 = vsel %vm6735_vm4, %v7768_v9, %v7708_v39  ;;  %v7798_v44 = vrot.slane %v2807_v46, 4  ;;  %v7802_v18 = vsel %vm7021_vm7, %v5476_v7, %v2821_v24  ;;  %v2823_v19 = vrot.slane %v2821_v24, 4 }
  0xca   : > { %v2446_v21 = vsel %vm6735_vm4, %v7774_v32, %v7776_v52  ;;  %v2828_v33 = vrot.slane %v7339_v5, 5  ;;  %v2831_v2 = vrot.slane %v7347_v41, 5  ;;  %v5478_v59 = vrot.slane %v5462_v14, 9  ;;  %v6466_v52 = vld [vmem:[%s6691_s9 + $0xc0] sm:$0xff]  }
  0xcb   : > { %v7814_v11 = vsel %vm7021_vm7, %v2823_v19, %v2824_v29  ;;  %v2835_v58 = vrot.slane %v7356_v61, 5  ;;  %v2838_v23 = vrot.slane %v7408_v50, 5  ;;  %v5479_v36 = vrot.slane %v5463_v26, 9  ;;  %v5468_v19 = vld [vmem:[%s6691_s9 + $0x84] sm:$0xe] }
  0xcc   : > { %v5493_v5 = vcombine.low %v7802_v18, %v7814_v11  ;;  %v7824_v41 = vsel %vm7021_vm7, %v5477_v56, %v2828_v33  ;;  %v2830_v60 = vrot.slane %v2828_v33, 4  ;;  %v2842_v25 = vrot.slane %v7374_v1, 5 }
  0xcd   : > { %6209 = vmatmul.mubr.msk.bf16.gmra.mxu0 %vm690_vm3, %v5435_v17  ;;  %v7831_v61 = vsel %vm7021_vm7, %v5478_v59, %v2835_v58  ;;  %v2837_v50 = vrot.slane %v2835_v58, 4  ;;  %v2845_v17 = vrot.slane %v7422_v8, 5  ;;  %v5480_v63 = vrot.slane %v5464_v6, 9  ;;  %v9415_v59 = vld [vmem:[#allocation10_spill] sm:$0xff]  ;;  %v6462_v58 = vld [vmem:[%s6691_s9 + $0x90] sm:$0xff]  }
  0xce   : > { %6212 = vmatprep.mubr.msk.bf16.mxu0 %vm690_vm3, %v5436_v51  ;;  %v7836_v10 = vsel %vm7021_vm7, %v2830_v60, %v2831_v2  ;;  %v7840_v3 = vsel %vm7021_vm7, %v5479_v36, %v2842_v25  ;;  %v2844_v1 = vrot.slane %v2842_v25, 4  ;;  %v2849_v20 = vrot.slane %v7417_v40, 5  ;;  %v5466_v51 = vld [vmem:[%s6691_s9 + $0x6c] sm:$0xe]  ;;  %v9416_v36 = vld [vmem:[#allocation9_spill] sm:$0xff] }
  0xcf   : > { %v5494_v48 = vcombine.low %v7824_v41, %v7836_v10  ;;  %v7849_v8 = vsel %vm7021_vm7, %v2837_v50, %v2838_v23  ;;  %v2852_v62 = vrot.slane %v7439_v35, 5  ;;  %v5481_v38 = vrot.slane %v5465_v13, 9  ;;  %v5469_v60 = vld [vmem:[%s6691_s9 + $0x90] sm:$0xe] }
  0xd0   : > { %6175 = vmatmul.mubr.msk.bf16.gmra.mxu1 %vm690_vm3, %v6460_v57  ;;  %v5495_v40 = vcombine.low %v7831_v61, %v7849_v8  ;;  %v7858_v7 = vsel %vm7021_vm7, %v2844_v1, %v2845_v17  ;;  %v7862_v24 = vsel %vm7021_vm7, %v5480_v63, %v2849_v20  ;;  %v2851_v14 = vrot.slane %v2849_v20, 4  ;;  %v9417_v50 = vld [vmem:[#allocation12_spill] sm:$0xff] }
  0xd1   : > { %6178 = vmatprep.mubr.msk.bf16.mxu1 %vm690_vm3, %v6461_v53  ;;  %v5496_v35 = vcombine.low %v7840_v3, %v7858_v7  ;;  %v2856_v29 = vrot.slane %v7452_v28, 5  ;;  %v2859_v56 = vrot.slane %v7474_v30, 5  ;;  %v5482_v26 = vrot.slane %v5466_v51, 9  ;;  %v9418_v51 = vld [vmem:[#allocation11_spill] sm:$0xff] }
  0xd2   : > { %v7871_v33 = vsel %vm7021_vm7, %v2851_v14, %v2852_v62  ;;  %v2863_v2 = vrot.slane %v7471_v27, 5  ;;  %v2866_v6 = vrot.slane %v9415_v59, 5  ;;  %v5483_v57 = vrot.slane %v5467_v55, 9  ;;  %v6463_v27 = vld [vmem:[%s6691_s9 + $0x9c] sm:$0xff]   ;;  %v5600_v3 = vld [vmem:[%s6691_s9 + $0x48] sm:$0xf] }
  0xd3   : > { %v5497_v23 = vcombine.low %v7862_v24, %v7871_v33  ;;  %v7880_v28 = vsel %vm7021_vm7, %v5481_v38, %v2856_v29  ;;  %v2858_v30 = vrot.slane %v2856_v29, 4  ;;  %v2870_v53 = vrot.slane %v9416_v36, 5  ;;  %v5470_v38 = vld [vmem:[%s6691_s9 + $0x9c] sm:$0xe]  ;;  %v9421_v36 = vld [vmem:[#allocation18_spill] sm:$0xff] }
  0xd4   : > { %v7889_v25 = vsel %vm7021_vm7, %v5482_v26, %v2863_v2  ;;  %v2865_v13 = vrot.slane %v2863_v2, 4  ;;  %v2873_v17 = vrot.slane %v9417_v50, 5  ;;  %v5484_v63 = vrot.slane %v5468_v19, 9  ;;  %v5471_v26 = vld [vmem:[%s6691_s9 + $0xa8] sm:$0xe]  ;;  %v9426_v55 = vld [vmem:[#allocation21_spill] sm:$0xff] }
  0xd5   : > { %6213 = vmatmul.mubr.msk.bf16.gmra.mxu0 %vm690_vm3, %v7772_v43  ;;  %v7896_v1 = vsel %vm7021_vm7, %v2858_v30, %v2859_v56  ;;  %v7900_v43 = vsel %vm7021_vm7, %v5483_v57, %v2870_v53  ;;  %v2872_v20 = vrot.slane %v2870_v53, 4  ;;  %v2877_v62 = vrot.slane %v9418_v51, 5  ;;  %v5473_v57 = vld [vmem:[%s6691_s9 + $0xc0] sm:$0xe]  ;;  %v6464_v19 = vld [vmem:[%s6691_s9 + $0xa8] sm:$0xff]  }
  0xd6   : > { %6216 = vmatprep.mubr.msk.bf16.mxu0 %vm690_vm3, %v7779_v54  ;;  %v7908_v14 = vsel %vm7021_vm7, %v2865_v13, %v2866_v6  ;;  %v9419_v54 = vld [vmem:[#allocation14_spill] sm:$0xff]  ;;  %v5485_v56 = vrot.slane %v5469_v60, 9  ;;  %v2887_v53 = vrot.slane %v9421_v36, 5  ;;  %v5486_v60 = vrot.slane %v5470_v38, 9  ;;  %v5472_v13 = vld [vmem:[%s6691_s9 + $0xb4] sm:$0xe] }
  0xd7   : > { %v2880_v29 = vrot.slane %v9419_v54, 5  ;;  %v7917_v2 = vsel %vm7021_vm7, %v2872_v20, %v2873_v17  ;;  %v7921_v59 = vsel %vm7021_vm7, %v5484_v63, %v2877_v62  ;;  %v2879_v6 = vrot.slane %v2877_v62, 4  ;;  %v9422_v17 = vld [vmem:[#allocation16_spill] sm:$0xff]  ;;  %v9424_v38 = vld [vmem:[#allocation19_spill] sm:$0xff] }
  0xd8   : > { %6179 = vmatmul.mubr.msk.bf16.gmra.mxu1 %vm690_vm3, %v6462_v58  ;;  %v9420_v58 = vld [vmem:[#allocation13_spill] sm:$0xff]  ;;  %v2891_v63 = vrot.slane %v9422_v17, 5  ;;  %v9423_v20 = vld [vmem:[#allocation8_spill] sm:$0xff]  ;;  %v5487_v62 = vrot.slane %v5471_v26, 9  ;;  %v2898_v36 = vrot.slane %v9424_v38, 5  ;;  %v5488_v26 = vrot.slane %v5472_v13, 9 }
  0xd9   : > { %6182 = vmatprep.mubr.msk.bf16.mxu1 %vm690_vm3, %v6463_v27  ;;  %v2884_v30 = vrot.slane %v9420_v58, 5  ;;  %v7931_v50 = vsel %vm7021_vm7, %v2879_v6, %v2880_v29  ;;  %v2894_v51 = vrot.slane %v9423_v20, 5  ;;  %v9425_v17 = vld [vmem:[#allocation20_spill] sm:$0xff]  ;;  %v2811_v39 = vsel %vm7021_vm7, %v7798_v44, %v2810_v34  ;;  %v6484_v44 = vld [vmem:[%s6691_s9 + $0x20] sm:$0x1] }
  0xda   : > { %v7946_v29 = vsel %vm7021_vm7, %v5486_v60, %v2891_v63  ;;  %v2893_v6 = vrot.slane %v2891_v63, 4  ;;  %v2901_v20 = vrot.slane %v9425_v17, 5  ;;  %v6465_v27 = vld [vmem:[%s6691_s9 + $0xb4] sm:$0xff]   ;;  %v2900_v38 = vrot.slane %v2898_v36, 4  ;;  %v8148_v7 = vld [vmem:[%s6691_s9 + $0x4c] sm:$0xf] }
  0xdb   : > { %v7939_v54 = vsel %vm7021_vm7, %v5485_v56, %v2884_v30  ;;  %v2886_v58 = vrot.slane %v2884_v30, 4  ;;  %v7958_v30 = vsel %vm7021_vm7, %v5487_v62, %v2898_v36  ;;  %v2905_v60 = vrot.slane %v9426_v55, 5 }
  0xdc   : > { %v5489_v63 = vrot.slane %v5473_v57, 9  ;;  %v7974_v55 = vsel %vm7021_vm7, %v2900_v38, %v2901_v20  ;;  %v2912_v57 = vrot.slane %v7693_v22, 5  ;;  %v2808_v22 = vsel %vm7021_vm7, %v5474_v37, %v2807_v46  ;;  %v6469_v38 = vld [vmem:[%s6691_s9 + $0x30] sm:$0xff]  }
  0xdd   : > { %6217 = vmatmul.mubr.msk.bf16.gmra.mxu0 %vm690_vm3, %v7781_v42  ;;  %v7954_v56 = vsel %vm7021_vm7, %v2886_v58, %v2887_v53  ;;  %v7967_v42 = vsel %vm7021_vm7, %v2893_v6, %v2894_v51  ;;  %v2908_v53 = vrot.slane %v7684_v4, 5  ;;  %v2907_v58 = vrot.slane %v2905_v60, 4 }
  0xde   : > { %6220 = vmatprep.mubr.msk.bf16.mxu0 %vm690_vm3, %v7787_v15  ;;  %v7978_v15 = vsel %vm7021_vm7, %v5488_v26, %v2905_v60  ;;  %v2915_v51 = vrot.slane %v7705_v45, 5  ;;  %v5459_v45 = vld [vmem:[%s6691_s9 + $0x18] sm:$0xe]  ;;  %v8018_v9 = vsel %vm7021_vm7, %v5489_v63, %v2912_v57  ;;  %v2914_v46 = vrot.slane %v2912_v57, 4  ;;  %v6468_v26 = vld [vmem:[%s6691_s9 + $0x24] sm:$0xff]  }
  0xdf   : > { %v8006_v32 = vsel %vm7021_vm7, %v2907_v58, %v2908_v53  ;;  %v5475_v37 = vrot.slane %v5459_v45, 9  ;;  %v5491_v34 = vcombine.low %v2808_v22, %v2811_v39  ;;  %v9427_v60 = vld [vmem:[#allocation15_spill] sm:$0xff]  ;;  %v5588_v63 = vld [vmem:[%s6691_s9 + $0x18] sm:$0xf]  ;;  %v5589_v57 = vld [vmem:[%s6691_s9 + $0x1c] sm:$0xf] }
  0xe0   : > { %6183 = vmatmul.mubr.msk.bf16.gmra.mxu1 %vm690_vm3, %v6464_v19  ;;  %v5441_v19 = vcombine.low %v2436_v16, %v2446_v21  ;;  %v8023_v47 = vsel %vm7021_vm7, %v2914_v46, %v2915_v51  ;;  %v2817_v21 = vrot.slane %v6484_v44, 5  ;;  %v4574_v53 = vsel %vm739_vm0, %v9427_v60, 0  ;;  %v5591_v51 = vld [vmem:[%s6691_s9 + $0x24] sm:$0xf]  ;;  %v6471_v44 = vld [vmem:[%s6691_s9 + $0x48] sm:$0xff]  }
  0xe1   : > { %6186 = vmatprep.mubr.msk.bf16.mxu1 %vm690_vm3, %v6465_v27  ;;  %v6483_v27 = vld [vmem:[%s6691_s9 + $0x1c] sm:$0xf]  ;;  %v3622_v45 = vshrl.u32 %v5588_v63, 16  ;;  %v3631_v39 = vshll.u32 %v5589_v57, 16  ;;  %v3646_v46 = vshrl.u32 %v5591_v51, 16 }
  0xe2   : > { %v2814_v36 = vrot.slane %v6483_v27, 5  ;;  %v3625_v27 = vshll.u32 %v5588_v63, 16  ;;  %v5669_v60 = vld [vmem:[%s6691_s9 + $0x18] sm:$0xe]  ;;  %v8064_v63 = vld [vmem:[%s6691_s9 + $0x2c] sm:$0x1] }
  0xe3   : > { %v3648_v18 = vrot.slane %v3646_v46, 4 }
  0xe4   : > { %v2816_v16 = vrot.slane %v2814_v36, 4  ;;  %v2815_v17 = vsel %vm7021_vm7, %v5475_v37, %v2814_v36  ;;  %v8048_v36 = vld [vmem:[%s6691_s9 + $0x28] sm:$0xf]  ;;  %v6470_v37 = vld [vmem:[%s6691_s9 + $0x3c] sm:$0xff]  }
  0xe5   : > { %6221 = vmatmul.mubr.msk.bf16.gmra.mxu0 %vm690_vm3, %v5441_v19  ;;  %v9428_v19 = vld [vmem:[#allocation17_spill] sm:$0xff] }
  0xe6   : > { %6260 = vmatprep.mubr.msk.bf16.mxu0 %vm690_vm3, %v6467_v49  ;;  %v2818_v20 = vsel %vm7021_vm7, %v2816_v16, %v2817_v21  ;;  %v4104_v22 = vsel %vm739_vm0, %v9428_v19, 0  ;;  %v3635_v49 = vshrl.u32 %v5589_v57, 16  ;;  %v3659_v16 = vshrl.u32 %v8048_v36, 16  ;;  %v5590_v21 = vld [vmem:[%s6691_s9 + $0x20] sm:$0x1] }
  0xe7   : > { %v5492_v58 = vcombine.low %v2815_v17, %v2818_v20  ;;  %v3624_v17 = vrot.slane %v3622_v45, 4  ;;  %v3627_v20 = vrot.slane %v3625_v27, 5  ;;  %v5594_v19 = vld [vmem:[%s6691_s9 + $0x30] sm:$0xf]  ;;  %v3641_v45 = vshll.u32 %v5590_v21, 16 }
  0xe8   : > { %6187 = vmatmul.mubr.msk.bf16.gmra.mxu1 %vm690_vm3, %v6466_v52  ;;  %v3649_v52 = vshll.u32 %v5591_v51, 16  ;;  %v3661_v51 = vrot.slane %v3659_v16, 4  ;;  %v5685_v27 = vrot.slane %v5669_v60, 9  ;;  %v4368_v46 = vrot.slane %v5590_v21, 5  ;;  %v5670_v16 = vld [vmem:[%s6691_s9 + $0x24] sm:$0xe] }
  0xe9   : > { %6226 = vmatprep.mubr.msk.bf16.mxu1 %vm690_vm3, %v5491_v34  ;;  %v3655_v34 = vshll.u32 %v8048_v36, 16  ;;  %v6472_v21 = vld [vmem:[%s6691_s9 + $0x54] sm:$0xff]   ;;  %v3673_v10 = vshll.u32 %v5594_v19, 16  ;;  %v6473_v60 = vld [vmem:[%s6691_s9 + $0x60] sm:$0xff]  }
  0xea   : > { %v3651_v11 = vrot.slane %v3649_v52, 5  ;;  %v3665_v52 = vshll.u32 %v8064_v63, 16 }
  0xed   : > { %6261 = vmatmul.mubr.msk.bf16.vlgmr.msra.gmra.mxu0 %vm690_vm3, %v6468_v26  ;;  %v8060_v26 = vrot.slane %v3631_v39, 5 }
  0xee   : > { %6327 = vmatpush3.bf16.msra.mxu0 %v4574_v53  ;;  %6264 = vmatprep.mubr.msk.bf16.mxu0 %vm690_vm3, %v6469_v38  ;;  %v3637_v38 = vrot.slane %v3635_v49, 4  ;;  %v4365_v53 = vrot.slane %v5589_v57, 5  ;;  %v8074_v57 = vld [vmem:[%s6691_s9 + $0x34] sm:$0xf] }
  0xf0   : > { %6227 = vmatmul.mubr.msk.bf16.vlgmr.msra.gmra.mxu1 %vm690_vm3, %v5492_v58  ;;  %v8069_v58 = vrot.slane %v3655_v34, 5  ;;  %v3638_v39 = vor.u32 %v3637_v38, %v8060_v26  ;;  %v4367_v49 = vrot.slane %v4365_v53, 4  ;;  %v3652_v34 = vor.u32 %v3651_v11, %v3648_v18 }
  0xf1   : > { %6293 = vmatpush3.bf16.msra.mxu1 %v4104_v22  ;;  %6230 = vmatprep.mubr.msk.bf16.mxu1 %vm690_vm3, %v5493_v5  ;;  %v8067_v5 = vpop.f32.mrf.mxu0  ;;  %v3628_v22 = vor.u32 %v3627_v20, %v3624_v17  ;;  %v3670_v17 = vshrl.u32 %v5594_v19, 16  ;;  %v3683_v38 = vshrl.u32 %v8074_v57, 16  ;;  %v8099_v61 = vsel %vm7021_vm7, %v5685_v27, %v4365_v53  ;;  %v5597_v19 = vld [vmem:[%s6691_s9 + $0x3c] sm:$0xf] }
  0xf2   : > { %v3662_v41 = vor.u32 %v3661_v51, %v8069_v58  ;;  %v3639_v8 = vrot.slane %v3638_v39, 4  ;;  %v3667_v11 = vrot.slane %v3665_v52, 5  ;;  %v5686_v51 = vrot.slane %v5670_v16, 9  ;;  %v8113_v39 = vld [vmem:[%s6691_s9 + $0x38] sm:$0x1] }
  0xf3   : > { %v8091_v20 = vpop.f32.mrf.mxu0  ;;  %v3629_v18 = vrot.slane %v3628_v22, 4  ;;  %v3653_v12 = vrot.slane %v3652_v34, 4  ;;  %v4375_v22 = vrot.slane %v8064_v63, 5  ;;  %v3685_v52 = vrot.slane %v3683_v38, 4 }
  0xf4   : > { %v3663_v27 = vrot.slane %v3662_v41, 4  ;;  %v3694_v34 = vshrl.u32 %v5597_v19, 16  ;;  %v3697_v16 = vshll.u32 %v5597_v19, 16  ;;  %v8126_v41 = vld [vmem:[%s6691_s9 + $0x40] sm:$0xf] }
  0xf5   : > { %6265 = vmatmul.mubr.msk.bf16.gmra.mxu0 %vm690_vm3, %v6470_v37  ;;  %v8110_v53 = vpop.f32.mrf.mxu0  ;;  %v3634_v63 = vsel %vm6735_vm4, %v3629_v18, %v8060_v26  ;;  %v3658_v26 = vsel %vm6735_vm4, %v3653_v12, %v8069_v58  ;;  %v5671_v18 = vld [vmem:[%s6691_s9 + $0x30] sm:$0xe]  ;;  %v3703_v24 = vshll.u32 %v8126_v41, 16  ;;  %v3707_v33 = vshrl.u32 %v8126_v41, 16 }
  0xf6   : > { %6268 = vmatprep.mubr.msk.bf16.mxu0 %vm690_vm3, %v6471_v44  ;;  %v8082_v37 = vpop.f32.mrf.mxu1  ;;  %v4372_v44 = vrot.slane %v8048_v36, 5  ;;  %v3643_v36 = vrot.slane %v3641_v45, 5  ;;  %v3672_v45 = vrot.slane %v3670_v17, 4  ;;  %v3668_v58 = vsel %vm6735_vm4, %v3663_v27, %v3667_v11 }
  0xf7   : > { %9429 = vst [vmem:[#allocation10_spill] sm:$0xff] %v8082_v37  ;;  %v8155_v12 = vpop.f32.mrf.mxu0  ;;  %v3699_v19 = vrot.slane %v3697_v16, 5  ;;  %v3731_v11 = vshrl.u32 %v8148_v7, 16 }
  0xf8   : > { %6231 = vmatmul.mubr.msk.bf16.gmra.mxu1 %vm690_vm3, %v5494_v48  ;;  %v3679_v48 = vshll.u32 %v8074_v57, 16  ;;  %v8106_v6 = vpop.f32.mrf.mxu1  ;;  %v4374_v4 = vrot.slane %v4372_v44, 4  ;;  %v3644_v17 = vsel %vm6735_vm4, %v3639_v8, %v3643_v36  ;;  %v4379_v36 = vrot.slane %v8074_v57, 5  ;;  %v6475_v8 = vld [vmem:[%s6691_s9 + $0x78] sm:$0xff]  }
  0xf9   : > { %6234 = vmatprep.mubr.msk.bf16.mxu1 %vm690_vm3, %v5495_v40  ;;  %v8103_v40 = vsel %vm7021_vm7, %v4367_v49, %v4368_v46  ;;  %9430 = vst [vmem:[#allocation9_spill] sm:$0xff] %v8106_v6  ;;  %v3675_v49 = vrot.slane %v3673_v10, 5  ;;  %v8169_v27 = vcombine.low %v3634_v63, %v3644_v17  ;;  %v8171_v57 = vcombine.low %v3658_v26, %v3668_v58  ;;  %v8185_v17 = vld [vmem:[%s6691_s9 + $0x58] sm:$0xf]  ;;  %v8191_v58 = vld [vmem:[%s6691_s9 + $0x44] sm:$0x1] }
  0xfa   : > { %v8115_v46 = vrot.slane %v3679_v48, 5  ;;  %v8132_v10 = vpop.f32.mrf.mxu1  ;;  %v8139_v48 = vsel %vm7021_vm7, %v5686_v51, %v4372_v44  ;;  %v8143_v38 = vsel %vm7021_vm7, %v4374_v4, %v4375_v22  ;;  %v3696_v51 = vrot.slane %v3694_v34, 4  ;;  %v5603_v34 = vld [vmem:[%s6691_s9 + $0x54] sm:$0xf] }
  0xfb   : > { %9431 = vst [vmem:[#allocation12_spill] sm:$0xff] %v8132_v10  ;;  %v3676_v44 = vor.u32 %v3675_v49, %v3672_v45  ;;  %v3721_v22 = vshll.u32 %v5600_v3, 16  ;;  %v4381_v13 = vrot.slane %v4379_v36, 4  ;;  %v4382_v63 = vrot.slane %v8113_v39, 5  ;;  %v5672_v49 = vld [vmem:[%s6691_s9 + $0x3c] sm:$0xe] }
  0xfc   : > { %v3686_v4 = vor.u32 %v3685_v52, %v8115_v46  ;;  %v8167_v45 = vpop.f32.mrf.mxu1  ;;  %v5687_v52 = vrot.slane %v5671_v18, 9  ;;  %v3700_v18 = vor.u32 %v3699_v19, %v3696_v51  ;;  %v9434_v6 = vcombine.low %v7880_v28, %v7896_v1 }
  0xfd   : > { %6269 = vmatmul.mubr.msk.bf16.gmra.mxu0 %vm690_vm3, %v6472_v21  ;;  %v3727_v21 = vshll.u32 %v8148_v7, 16  ;;  %9432 = vst [vmem:[#allocation11_spill] sm:$0xff] %v8167_v45  ;;  %v3723_v45 = vrot.slane %v3721_v22, 5  ;;  %v3742_v51 = vshrl.u32 %v5603_v34, 16  ;;  %v3745_v19 = vshll.u32 %v5603_v34, 16 }
  0xfe   : > { %6272 = vmatprep.mubr.msk.bf16.mxu0 %vm690_vm3, %v6473_v60  ;;  %v3689_v60 = vshll.u32 %v8113_v39, 16  ;;  %v8188_v26 = vrot.slane %v3686_v4, 4  ;;  %v3733_v39 = vrot.slane %v3731_v11, 4  ;;  %v8226_v22 = vsel %vm7021_vm7, %v4381_v13, %v4382_v63 }
  0xff   : > { %v8196_v10 = vrot.slane %v3727_v21, 5  ;;  %v9436_v21 = vcombine.low %v7889_v25, %v7908_v14  ;;  %v4386_v25 = vrot.slane %v8126_v41, 5  ;;  %v6477_v14 = vld [vmem:[%s6691_s9 + $0x90] sm:$0xff]   ;;  %v5688_v1 = vrot.slane %v5672_v49, 9  ;;  %v5606_v41 = vld [vmem:[%s6691_s9 + $0x60] sm:$0xf] }
 0x100   : > { %6235 = vmatmul.mubr.msk.bf16.gmra.mxu1 %vm690_vm3, %v5496_v35  ;;  %v6474_v35 = vld [vmem:[%s6691_s9 + $0x6c] sm:$0xff]   ;;  %v8181_v62 = vrot.slane %v3689_v60, 5  ;;  %v3744_v37 = vrot.slane %v3742_v51, 4 }
 0x101   : > { %6238 = vmatprep.mubr.msk.bf16.mxu1 %vm690_vm3, %v5497_v23  ;;  %v3718_v23 = vshrl.u32 %v5600_v3, 16  ;;  %v8179_v3 = vrot.slane %v3676_v44, 4  ;;  %v3709_v44 = vrot.slane %v3707_v33, 4  ;;  %v3755_v33 = vshrl.u32 %v8185_v17, 16 }
 0x102   : > { %v8177_v16 = vpop.f32.mrf.mxu0  ;;  %v3734_v13 = vor.u32 %v3733_v39, %v8196_v10  ;;  %v4393_v39 = vrot.slane %v8148_v7, 5  ;;  %v9440_v7 = vcombine.low %v7900_v43, %v7917_v2  ;;  %v9442_v43 = vcombine.low %v7921_v59, %v7931_v50  ;;  %v6478_v2 = vld [vmem:[%s6691_s9 + $0x9c] sm:$0xff]  }
 0x103   : > { %9433 = vst [vmem:[#allocation14_spill] sm:$0xff] %v8177_v16  ;;  %v3720_v60 = vrot.slane %v3718_v23, 4  ;;  %v6476_v23 = vld [vmem:[%s6691_s9 + $0x84] sm:$0xff]   ;;  %v8253_v16 = vld [vmem:[%s6691_s9 + $0x5c] sm:$0x1]  ;;  %v4400_v59 = vrot.slane %v8185_v17, 5 }
 0x104   : > { %v8214_v28 = vpop.f32.mrf.mxu0 }
 0x105   : > { %6273 = vmatmul.mubr.msk.bf16.gmra.mxu0 %vm690_vm3, %v6474_v35  ;;  %v8193_v35 = vrot.slane %v3703_v24, 5  ;;  %v3751_v24 = vshll.u32 %v8185_v17, 16  ;;  %9437 = vst [vmem:[#allocation18_spill] sm:$0xff] %v8214_v28  ;;  %v3747_v28 = vrot.slane %v3745_v19, 5 }
 0x106   : > { %6276 = vmatprep.mubr.msk.bf16.mxu0 %vm690_vm3, %v6475_v8  ;;  %v8202_v4 = vpop.f32.mrf.mxu1  ;;  %v8205_v8 = vld [vmem:[%s6691_s9 + $0x50] sm:$0x1]  ;;  %v8246_v49 = vpop.f32.mrf.mxu0 }
 0x107   : > { %9435 = vst [vmem:[#allocation13_spill] sm:$0xff] %v8202_v4  ;;  %v3710_v34 = vor.u32 %v3709_v44, %v8193_v35  ;;  %v8236_v4 = vrot.slane %v3700_v18, 4  ;;  %v8243_v11 = vrot.slane %v3751_v24, 5  ;;  %v3757_v44 = vrot.slane %v3755_v33, 4  ;;  %9439 = vst [vmem:[#allocation8_spill] sm:$0xff] %v8246_v49 }
 0x108   : > { %6239 = vmatmul.mubr.msk.bf16.gmra.mxu1 %vm690_vm3, %v9434_v6  ;;  %v8222_v6 = vsel %vm7021_vm7, %v5687_v52, %v4379_v36  ;;  %v3724_v36 = vor.u32 %v3723_v45, %v3720_v60  ;;  %v3737_v52 = vshll.u32 %v8205_v8, 16  ;;  %v8241_v63 = vpop.f32.mrf.mxu1  ;;  %v4388_v18 = vrot.slane %v4386_v25, 4  ;;  %v5673_v24 = vld [vmem:[%s6691_s9 + $0x48] sm:$0xe] }
 0x109   : > { %6242 = vmatprep.mubr.msk.bf16.mxu1 %vm690_vm3, %v9436_v21  ;;  %v3713_v21 = vshll.u32 %v8191_v58, 16  ;;  %9438 = vst [vmem:[#allocation16_spill] sm:$0xff] %v8241_v63  ;;  %v4389_v60 = vrot.slane %v8191_v58, 5  ;;  %v3711_v51 = vrot.slane %v3710_v34, 4  ;;  %v3766_v33 = vshrl.u32 %v5606_v41, 16 }
 0x10a   : > { %v8259_v63 = vsel %vm7021_vm7, %v5688_v1, %v4386_v25  ;;  %v3725_v45 = vrot.slane %v3724_v36, 4  ;;  %v3735_v49 = vrot.slane %v3734_v13, 4  ;;  %v3739_v58 = vrot.slane %v3737_v52, 5  ;;  %v8274_v36 = vld [vmem:[%s6691_s9 + $0x64] sm:$0xf]  ;;  %v8281_v13 = vpop.f32.mrf.mxu0 }
 0x10b   : > { %v3715_v19 = vrot.slane %v3713_v21, 5  ;;  %v3706_v34 = vsel %vm6735_vm4, %v8236_v4, %v8193_v35  ;;  %v3748_v21 = vor.u32 %v3747_v28, %v3744_v37  ;;  %v3758_v1 = vor.u32 %v3757_v44, %v8243_v11  ;;  %9443 = vst [vmem:[#allocation20_spill] sm:$0xff] %v8281_v13  ;;  %v5674_v28 = vld [vmem:[%s6691_s9 + $0x54] sm:$0xe]  ;;  %v6482_v13 = vld [vmem:[%s6691_s9 + $0xcc] sm:$0xff]  }
 0x10c   : > { %v3761_v25 = vshll.u32 %v8253_v16, 16  ;;  %v8285_v52 = vsel %vm7021_vm7, %v4388_v18, %v4389_v60  ;;  %v5689_v35 = vrot.slane %v5673_v24, 9  ;;  %v4395_v37 = vrot.slane %v4393_v39, 4 }
 0x10d   : > { %6277 = vmatmul.mubr.msk.bf16.gmra.mxu0 %vm690_vm3, %v6476_v23  ;;  %v3769_v23 = vshll.u32 %v5606_v41, 16  ;;  %v4396_v4 = vrot.slane %v8205_v8, 5  ;;  %v6479_v41 = vld [vmem:[%s6691_s9 + $0xa8] sm:$0xff]   ;;  %v3716_v44 = vsel %vm6735_vm4, %v3711_v51, %v3715_v19  ;;  %v3768_v50 = vrot.slane %v3766_v33, 4 }
 0x10e   : > { %6280 = vmatprep.mubr.msk.bf16.mxu0 %vm690_vm3, %v6477_v14  ;;  %v8265_v14 = vpop.f32.mrf.mxu1  ;;  %v3740_v18 = vsel %vm6735_vm4, %v3735_v49, %v3739_v58  ;;  %v3775_v60 = vshll.u32 %v8274_v36, 16  ;;  %v3779_v8 = vshrl.u32 %v8274_v36, 16  ;;  %v3759_v51 = vrot.slane %v3758_v1, 4  ;;  %v8303_v33 = vld [vmem:[%s6691_s9 + $0x68] sm:$0x1] }
 0x10f   : > { %9441 = vst [vmem:[#allocation19_spill] sm:$0xff] %v8265_v14  ;;  %v3749_v14 = vrot.slane %v3748_v21, 4  ;;  %v3763_v17 = vrot.slane %v3761_v25, 5  ;;  %v5690_v19 = vrot.slane %v5674_v28, 9  ;;  %v9446_v49 = vsel %vm6735_vm4, %v8188_v26, %v8181_v62  ;;  %v5609_v25 = vld [vmem:[%s6691_s9 + $0x6c] sm:$0xf] }
 0x110   : > { %6243 = vmatmul.mubr.msk.bf16.gmra.mxu1 %vm690_vm3, %v9440_v7  ;;  %v3771_v7 = vrot.slane %v3769_v23, 5  ;;  %v8300_v24 = vpop.f32.mrf.mxu1  ;;  %v8324_v21 = vsel %vm7021_vm7, %v5689_v35, %v4393_v39  ;;  %v8328_v1 = vsel %vm7021_vm7, %v4395_v37, %v4396_v4  ;;  %v8331_v62 = vcombine.low %v3706_v34, %v3716_v44  ;;  %v5675_v4 = vld [vmem:[%s6691_s9 + $0x60] sm:$0xe]  ;;  %v5615_v44 = vld [vmem:[%s6691_s9 + $0x84] sm:$0xf] }
 0x111   : > { %6246 = vmatprep.mubr.msk.bf16.mxu1 %vm690_vm3, %v9442_v43  ;;  %v3730_v43 = vsel %vm6735_vm4, %v3725_v45, %v8196_v10  ;;  %9444 = vst [vmem:[#allocation21_spill] sm:$0xff] %v8300_v24  ;;  %v9447_v45 = vsel %vm6735_vm4, %v8179_v3, %v8115_v46  ;;  %v4402_v46 = vrot.slane %v4400_v59, 4  ;;  %v4403_v3 = vrot.slane %v8253_v16, 5 }
 0x112   : > { %v8318_v23 = vcombine.low %v9447_v45, %v9446_v49  ;;  %9448 = vst [vmem:[#allocation17_spill] sm:$0xff] %v8331_v62  ;;  %v3772_v26 = vor.u32 %v3771_v7, %v3768_v50  ;;  %v8338_v28 = vcombine.low %v3730_v43, %v3740_v18  ;;  %v8340_v39 = vrot.slane %v3775_v60, 5 }
 0x113   : > { %v8306_v10 = vpop.f32.mrf.mxu0  ;;  %v8342_v35 = vrot.slane %v3779_v8, 4  ;;  %v3785_v37 = vshll.u32 %v8303_v33, 16  ;;  %v9450_v34 = vcombine.low %v7939_v54, %v7954_v56  ;;  %v3754_v50 = vsel %vm6735_vm4, %v3749_v14, %v8243_v11  ;;  %v5612_v54 = vld [vmem:[%s6691_s9 + $0x78] sm:$0xf] }
 0x114   : > { %9445 = vst [vmem:[#allocation15_spill] sm:$0xff] %v8306_v10  ;;  %9449 = vst [vmem:[#allocation22_spill] sm:$0xff] %v8338_v28  ;;  %v3764_v7 = vsel %vm6735_vm4, %v3759_v51, %v3763_v17  ;;  %v8362_v43 = vsel %vm7021_vm7, %v5690_v19, %v4400_v59  ;;  %v9452_v56 = vcombine.low %v7946_v29, %v7967_v42  ;;  %v3790_v60 = vshrl.u32 %v5609_v25, 16  ;;  %v8374_v51 = vld [vmem:[%s6691_s9 + $0x7c] sm:$0xf]  ;;  %v6481_v59 = vld [vmem:[%s6691_s9 + $0xc0] sm:$0xff]  }
 0x115   : > { %6281 = vmatmul.mubr.msk.bf16.gmra.mxu0 %vm690_vm3, %v6478_v2  ;;  %v8336_v2 = vld [vmem:[%s6691_s9 + $0x70] sm:$0xf]  ;;  %v8369_v18 = vpop.f32.mrf.mxu0  ;;  %v3793_v8 = vshll.u32 %v5609_v25, 16  ;;  %v8379_v17 = vsel %vm7021_vm7, %v4402_v46, %v4403_v3  ;;  %v8381_v29 = vrot.slane %v3772_v26, 4  ;;  %v5691_v42 = vrot.slane %v5675_v4, 9 }
 0x116   : > { %6284 = vmatprep.mubr.msk.bf16.mxu0 %vm690_vm3, %v6479_v41  ;;  %v6480_v41 = vld [vmem:[%s6691_s9 + $0xb4] sm:$0xff]   ;;  %9453 = vst [vmem:[#allocation24_spill] sm:$0xff] %v8369_v18  ;;  %v3799_v11 = vshll.u32 %v8336_v2, 16  ;;  %v3803_v14 = vshrl.u32 %v8336_v2, 16  ;;  %v4407_v19 = vrot.slane %v8274_v36, 5  ;;  %v8384_v49 = vcombine.low %v3754_v50, %v3764_v7 }
 0x117   : > { %v3782_v45 = vor.u32 %v8342_v35, %v8340_v39  ;;  %v8388_v25 = vrot.slane %v3785_v37, 5  ;;  %v3814_v46 = vshrl.u32 %v5612_v54, 16  ;;  %v3817_v3 = vshll.u32 %v5612_v54, 16  ;;  %v8400_v4 = vld [vmem:[%s6691_s9 + $0x88] sm:$0xf]  ;;  %v8403_v35 = vpop.f32.mrf.mxu0 }
 0x118   : > { %6247 = vmatmul.mubr.msk.bf16.gmra.mxu1 %vm690_vm3, %v9450_v34  ;;  %v8350_v16 = vpop.f32.mrf.mxu1  ;;  %9454 = vst [vmem:[#allocation25_spill] sm:$0xff] %v8384_v49  ;;  %v4410_v34 = vrot.slane %v8303_v33, 5  ;;  %v3823_v36 = vshll.u32 %v8374_v51, 16  ;;  %v3827_v26 = vshrl.u32 %v8374_v51, 16  ;;  %9456 = vst [vmem:[#allocation27_spill] sm:$0xff] %v8403_v35  ;;  %v3792_v33 = vrot.slane %v3790_v60, 4 }
 0x119   : > { %9451 = vst [vmem:[#allocation23_spill] sm:$0xff] %v8350_v16  ;;  %6250 = vmatprep.mubr.msk.bf16.mxu1 %vm690_vm3, %v9452_v56  ;;  %v8392_v56 = vld [vmem:[%s6691_s9 + $0x74] sm:$0x1]  ;;  %v3795_v37 = vrot.slane %v3793_v8, 5  ;;  %v8405_v50 = vrot.slane %v3799_v11, 5  ;;  %v3805_v7 = vrot.slane %v3803_v14, 4  ;;  %v9457_v54 = vcombine.low %v7958_v30, %v7974_v55  ;;  %v8433_v49 = vpop.f32.mrf.mxu0 }
 0x11a   : > { %v8395_v58 = vpop.f32.mrf.mxu1  ;;  %v4409_v16 = vrot.slane %v4407_v19, 4  ;;  %v8418_v60 = vld [vmem:[%s6691_s9 + $0x80] sm:$0x1]  ;;  %v8421_v8 = vld [vmem:[%s6691_s9 + $0x6c] sm:$0xe]  ;;  %v3838_v11 = vshrl.u32 %v5615_v44, 16 }
 0x11b   : > { %9455 = vst [vmem:[#allocation26_spill] sm:$0xff] %v8395_v58  ;;  %v8414_v58 = vsel %vm7021_vm7, %v5691_v42, %v4407_v19  ;;  %v3841_v14 = vshll.u32 %v5615_v44, 16  ;;  %v3851_v24 = vshrl.u32 %v8400_v4, 16  ;;  %v3816_v19 = vrot.slane %v3814_v46, 4  ;;  %9459 = vst [vmem:[#allocation29_spill] sm:$0xff] %v8433_v49 }
 0x11c   : > { %v8429_v42 = vpop.f32.mrf.mxu1  ;;  %v3819_v35 = vrot.slane %v3817_v3, 5  ;;  %v8431_v18 = vrot.slane %v3823_v36, 5  ;;  %v3829_v10 = vrot.slane %v3827_v26, 4  ;;  %v9460_v44 = vcombine.low %v7978_v15, %v8006_v32  ;;  %v8452_v32 = vld [vmem:[%s6691_s9 + $0x8c] sm:$0x1] }
 0x11d   : > { %6285 = vmatmul.mubr.msk.bf16.gmra.mxu0 %vm690_vm3, %v6480_v41  ;;  %v3809_v41 = vshll.u32 %v8392_v56, 16  ;;  %9458 = vst [vmem:[#allocation28_spill] sm:$0xff] %v8429_v42  ;;  %v3796_v30 = vor.u32 %v3795_v37, %v3792_v33  ;;  %v3806_v55 = vor.u32 %v3805_v7, %v8405_v50  ;;  %v3833_v46 = vshll.u32 %v8418_v60, 16  ;;  %v5677_v33 = vld [vmem:[%s6691_s9 + $0x78] sm:$0xe] }
 0x11e   : > { %6288 = vmatprep.mubr.msk.bf16.mxu0 %vm690_vm3, %v6481_v59  ;;  %v3847_v59 = vshll.u32 %v8400_v4, 16  ;;  %v8443_v3 = vrot.slane %v3782_v45, 4  ;;  %v8447_v36 = vsel %vm7021_vm7, %v4409_v16, %v4410_v34  ;;  %v5692_v26 = vrot.slane %v8421_v8, 9  ;;  %v8457_v42 = vpop.f32.mrf.mxu1  ;;  %v5618_v8 = vld [vmem:[%s6691_s9 + $0x90] sm:$0xf] }
 0x11f   : > { %v4421_v15 = vrot.slane %v8374_v51, 5  ;;  %v3840_v37 = vrot.slane %v3838_v11, 4  ;;  %v3843_v7 = vrot.slane %v3841_v14, 5  ;;  %9461 = vst [vmem:[#allocation30_spill] sm:$0xff] %v8457_v42  ;;  %v3811_v45 = vrot.slane %v3809_v41, 5 }
 0x120   : > { %6251 = vmatmul.mubr.msk.bf16.gmra.mxu1 %vm690_vm3, %v9457_v54  ;;  %v4414_v54 = vrot.slane %v8336_v2, 5  ;;  %v8455_v2 = vrot.slane %v3847_v59, 5  ;;  %v4417_v49 = vrot.slane %v8392_v56, 5  ;;  %v3820_v16 = vor.u32 %v3819_v35, %v3816_v19  ;;  %v8466_v59 = vld [vmem:[%s6691_s9 + $0x94] sm:$0xf] }
 0x121   : > { %6254 = vmatprep.mubr.msk.bf16.mxu1 %vm690_vm3, %v9460_v44  ;;  %v3853_v44 = vrot.slane %v3851_v24, 4  ;;  %v3830_v34 = vor.u32 %v3829_v10, %v8431_v18  ;;  %v3797_v51 = vrot.slane %v3796_v30, 4  ;;  %v3807_v11 = vrot.slane %v3806_v55, 4 }
 0x122   : > { %v4416_v62 = vrot.slane %v4414_v54, 4  ;;  %v3835_v14 = vrot.slane %v3833_v46, 5  ;;  %v9462_v24 = vcombine.low %v8099_v61, %v8103_v40  ;;  %v5693_v56 = vrot.slane %v5677_v33, 9 }
 0x123   : > { %v4423_v35 = vrot.slane %v4421_v15, 4  ;;  %v4424_v10 = vrot.slane %v8418_v60, 5  ;;  %v3857_v41 = vshll.u32 %v8452_v32, 16  ;;  %v3854_v30 = vor.u32 %v3853_v44, %v8455_v2 }
 0x124   : > { %v3862_v55 = vshrl.u32 %v5618_v8, 16  ;;  %v3865_v46 = vshll.u32 %v5618_v8, 16  ;;  %v9464_v61 = vcombine.low %v8018_v9, %v8023_v47  ;;  %v3821_v40 = vrot.slane %v3820_v16, 4 }
 0x125   : > { %v8462_v28 = vpop.f32.mrf.mxu0  ;;  %6289 = vmatmul.mubr.msk.bf16.gmra.mxu0 %vm690_vm3, %v6482_v13  ;;  %v3844_v13 = vor.u32 %v3843_v7, %v3840_v37  ;;  %v3831_v33 = vrot.slane %v3830_v34, 4  ;;  %v3871_v60 = vshll.u32 %v8466_v59, 16  ;;  %v3788_v37 = vsel %vm6735_vm4, %v8443_v3, %v8388_v25 }
 0x126   : > { %6328 = vmatprep.mubr.msk.bf16.mxu0 %vm690_vm3, %v9462_v24  ;;  %v3875_v24 = vshrl.u32 %v8466_v59, 16  ;;  %v3802_v9 = vsel %vm6735_vm4, %v3797_v51, %v8405_v50  ;;  %v8498_v47 = vsel %vm7021_vm7, %v5692_v26, %v4414_v54  ;;  %v8502_v7 = vsel %vm7021_vm7, %v4416_v62, %v4417_v49  ;;  %v5678_v54 = vld [vmem:[%s6691_s9 + $0x84] sm:$0xe] }
 0x127   : > { %v8474_v19 = vpop.f32.mrf.mxu0  ;;  %v8510_v25 = vsel %vm7021_vm7, %v5693_v56, %v4421_v15  ;;  %v8514_v50 = vsel %vm7021_vm7, %v4423_v35, %v4424_v10  ;;  %v3859_v3 = vrot.slane %v3857_v41, 5  ;;  %v3845_v62 = vrot.slane %v3844_v13, 4  ;;  %v8538_v13 = vld [vmem:[%s6691_s9 + $0x98] sm:$0x1]  ;;  %v9503_v31 = vld [vmem:[#allocation30_spill] sm:$0xff] }
 0x128   : > { %9463 = vst [vmem:[#allocation31_spill] sm:$0xff] %v8474_v19  ;;  %v8477_v42 = vpop.f32.mrf.mxu1  ;;  %6255 = vmatmul.mubr.msk.bf16.gmra.mxu1 %vm690_vm3, %v9464_v61  ;;  %v3855_v49 = vrot.slane %v3854_v30, 4  ;;  %v3864_v16 = vrot.slane %v3862_v55, 4  ;;  %v3867_v34 = vrot.slane %v3865_v46, 5  ;;  %v3826_v15 = vsel %vm6735_vm4, %v3821_v40, %v8431_v18  ;;  %v5621_v30 = vld [vmem:[%s6691_s9 + $0x9c] sm:$0xf] }
 0x129   : > { %v8485_v19 = vpop.f32.mrf.mxu0  ;;  %6294 = vmatprep.mubr.msk.bf16.mxu1 %vm690_vm3, %v8169_v27  ;;  %v3812_v27 = vsel %vm6735_vm4, %v3807_v11, %v3811_v45  ;;  %v3836_v45 = vsel %vm6735_vm4, %v3831_v33, %v3835_v14  ;;  %v8526_v51 = vrot.slane %v3871_v60, 5  ;;  %v3877_v11 = vrot.slane %v3875_v24, 4  ;;  %v8569_v24 = vld [vmem:[%s6691_s9 + $0xa0] sm:$0xf] }
 0x12a   : > { %v8504_v44 = vpop.f32.mrf.mxu1  ;;  %v9465_v35 = vcombine.low %v8139_v48, %v8143_v38  ;;  %v5707_v10 = vcombine.low %v8362_v43, %v8379_v17  ;;  %v5708_v41 = vcombine.low %v8414_v58, %v8447_v36  ;;  %v5694_v18 = vrot.slane %v5678_v54, 9 }
 0x12b   : > { %v8517_v26 = vpop.f32.mrf.mxu0  ;;  %v4428_v14 = vrot.slane %v8400_v4, 5  ;;  %v9466_v48 = vcombine.low %v8222_v6, %v8226_v22  ;;  %v9467_v38 = vsel %vm6735_vm4, %v8381_v29, %v8340_v39  ;;  %v8554_v61 = vcombine.low %v3802_v9, %v3812_v27  ;;  %v5679_v29 = vld [vmem:[%s6691_s9 + $0x90] sm:$0xe] }
 0x12c   : > { %v8519_v8 = vpop.f32.mrf.mxu1  ;;  %v8552_v46 = vcombine.low %v9467_v38, %v3788_v37  ;;  %v8560_v60 = vcombine.low %v3826_v15, %v3836_v45  ;;  %v3850_v6 = vsel %vm6735_vm4, %v3845_v62, %v8455_v2  ;;  %v3860_v22 = vsel %vm6735_vm4, %v3855_v49, %v3859_v3  ;;  %v9474_v4 = vld [vmem:[#allocation8_spill] sm:$0xff] }
 0x12d   : > { %v6126_v56 = vpop.f32.mrf.mxu0  ;;  %6329 = vmatmul.mubr.msk.bf16.vlgmr.msra.gmra.mxu0 %vm690_vm3, %v9465_v35  ;;  %v3868_v39 = vor.u32 %v3867_v34, %v3864_v16  ;;  %v3878_v9 = vor.u32 %v3877_v11, %v8526_v51  ;;  %v3881_v27 = vshll.u32 %v8538_v13, 16  ;;  %v3886_v54 = vshrl.u32 %v5621_v30, 16 }
 0x12e   : > { %v8541_v55 = vpop.f32.mrf.mxu1  ;;  %6332 = vmatprep.mubr.msk.bf16.mxu0 %vm690_vm3, %v9466_v48  ;;  %v3889_v15 = vshll.u32 %v5621_v30, 16  ;;  %v8580_v3 = vsel %vm7021_vm7, %v5694_v18, %v4428_v14  ;;  %v4430_v62 = vrot.slane %v4428_v14, 4  ;;  %v4431_v49 = vrot.slane %v8452_v32, 5 }
 0x12f   : > { %v1494_v33 = vpop.f32.mrf.mxu0  ;;  %v5695_v16 = vrot.slane %v5679_v29, 9  ;;  %v4435_v34 = vrot.slane %v8466_v59, 5  ;;  %v3895_v11 = vshll.u32 %v8569_v24, 16  ;;  %v3899_v35 = vshrl.u32 %v8569_v24, 16 }
 0x130   : > { %v6092_v37 = vpop.f32.mrf.mxu1  ;;  %6295 = vmatmul.mubr.msk.bf16.vlgmr.msra.gmra.mxu1 %vm690_vm3, %v8171_v57  ;;  %v8589_v48 = vcombine.low %v3850_v6, %v3860_v22  ;;  %v8591_v18 = vrot.slane %v3868_v39, 4  ;;  %v3879_v32 = vrot.slane %v3878_v9, 4  ;;  %v3883_v38 = vrot.slane %v3881_v27, 5  ;;  %v5624_v22 = vld [vmem:[%s6691_s9 + $0xa8] sm:$0xf] }
 0x131   : > { %v1078_v45 = vadd.f32 %v6092_v37, %v8067_v5  ;;  %v6127_v2 = vpop.f32.mrf.mxu0  ;;  %6298 = vmatprep.mubr.msk.bf16.mxu1 %vm690_vm3, %v8318_v23  ;;  %v3888_v29 = vrot.slane %v3886_v54, 4  ;;  %v3891_v59 = vrot.slane %v3889_v15, 5  ;;  %v4438_v6 = vrot.slane %v8538_v13, 5  ;;  %v8617_v27 = vld [vmem:[%s6691_s9 + $0xac] sm:$0xf] }
 0x132   : > { %v1069_v57 = vpop.f32.mrf.mxu1  ;;  %v3901_v9 = vrot.slane %v3899_v35, 4  ;;  %v9471_v35 = vld [vmem:[#allocation14_spill] sm:$0xff] }
 0x133   : > { %v8586_v5 = vadd.f32 %v6126_v56, %v1078_v45  ;;  %v1070_v23 = vadd.f32 %v1069_v57, %v8091_v20  ;;  %v1497_v30 = vpop.f32.mrf.mxu0  ;;  %v9468_v45 = vcombine.low %v8259_v63, %v8285_v52  ;;  %v8602_v20 = vsel %vm7021_vm7, %v4430_v62, %v4431_v49  ;;  %v5680_v62 = vld [vmem:[%s6691_s9 + $0x9c] sm:$0xe] }
 0x134   : > { %v6093_v14 = vpop.f32.mrf.mxu1  ;;  %v4437_v63 = vrot.slane %v4435_v34, 4  ;;  %v8614_v52 = vrot.slane %v3895_v11, 5  ;;  %v4442_v49 = vrot.slane %v8569_v24, 5  ;;  %v3919_v24 = vshll.u32 %v8617_v27, 16 }
 0x135   : > { %v8593_v37 = vadd.f32 %v1494_v33, %v1070_v23  ;;  %v1081_v40 = vadd.f32 %v6093_v14, %v8110_v53  ;;  %v6130_v56 = vpop.f32.mrf.mxu0  ;;  %6333 = vmatmul.mubr.msk.bf16.gmra.mxu0 %vm690_vm3, %v9468_v45  ;;  %v9469_v33 = vcombine.low %v8324_v21, %v8328_v1  ;;  %v8612_v53 = vsel %vm7021_vm7, %v5695_v16, %v4435_v34  ;;  %v5623_v1 = vld [vmem:[%s6691_s9 + $0xa4] sm:$0x1]  ;;  %v9470_v16 = vld [vmem:[#allocation17_spill] sm:$0xff] }
 0x136   : > { %v1072_v39 = vpop.f32.mrf.mxu1  ;;  %v3874_v21 = vsel %vm6735_vm4, %v8591_v18, %v8526_v51  ;;  %v3910_v34 = vshrl.u32 %v5624_v22, 16  ;;  %v9472_v51 = vld [vmem:[#allocation22_spill] sm:$0xff]  ;;  %v3923_v18 = vshrl.u32 %v8617_v27, 16 }
 0x137   : > { %6336 = vmatprep.mubr.msk.bf16.mxu0 %vm690_vm3, %v9469_v33  ;;  %v8619_v54 = vadd.f32 %v6127_v2, %v1081_v40  ;;  %v1073_v13 = vadd.f32 %v1072_v39, %v8155_v12  ;;  %v1510_v15 = vpop.f32.mrf.mxu0  ;;  %v3884_v40 = vsel %vm6735_vm4, %v3879_v32, %v3883_v38  ;;  %v3892_v2 = vor.u32 %v3891_v59, %v3888_v29  ;;  %v9473_v59 = vld [vmem:[#allocation18_spill] sm:$0xff] }
 0x138   : > { %v6096_v57 = vpop.f32.mrf.mxu1  ;;  %6299 = vmatmul.mubr.msk.bf16.gmra.mxu1 %vm690_vm3, %v9470_v16  ;;  %v3913_v12 = vshll.u32 %v5624_v22, 16  ;;  %v8642_v39 = vsel %vm7021_vm7, %v4437_v63, %v4438_v6  ;;  %v3902_v32 = vor.u32 %v3901_v9, %v8614_v52  ;;  %v3905_v38 = vshll.u32 %v5623_v1, 16 }
 0x139   : > { %v8633_v11 = vadd.f32 %v1497_v30, %v1073_v13  ;;  %v1094_v23 = vadd.f32 %v6096_v57, %v9471_v35  ;;  %v6131_v14 = vpop.f32.mrf.mxu0  ;;  %6302 = vmatprep.mubr.msk.bf16.mxu1 %vm690_vm3, %v9472_v51  ;;  %v5696_v30 = vrot.slane %v5680_v62, 9  ;;  %v4444_v13 = vrot.slane %v4442_v49, 4 }
 0x13a   : > { %v1085_v45 = vpop.f32.mrf.mxu1  ;;  %v4445_v57 = vrot.slane %v5623_v1, 5  ;;  %v8650_v51 = vrot.slane %v3892_v2, 4  ;;  %v3912_v6 = vrot.slane %v3910_v34, 4  ;;  %v3915_v63 = vrot.slane %v3913_v12, 5  ;;  %v8660_v1 = vld [vmem:[%s6691_s9 + $0xb0] sm:$0x1] }
 0x13b   : > { %v8645_v29 = vadd.f32 %v6130_v56, %v1094_v23  ;;  %v1086_v22 = vadd.f32 %v1085_v45, %v9473_v59  ;;  %v1513_v33 = vpop.f32.mrf.mxu0  ;;  %v8662_v23 = vrot.slane %v3919_v24, 5  ;;  %v3925_v2 = vrot.slane %v3923_v18, 4  ;;  %v9475_v12 = vld [vmem:[#allocation20_spill] sm:$0xff] }
 0x13c   : > { %v6097_v16 = vpop.f32.mrf.mxu1  ;;  %v8672_v43 = vrot.slane %v3902_v32, 4  ;;  %v8674_v17 = vrot.slane %v3905_v38, 5  ;;  %v8682_v58 = vsel %vm7021_vm7, %v5696_v30, %v4442_v49  ;;  %v8686_v36 = vsel %vm7021_vm7, %v4444_v13, %v4445_v57  ;;  %v8698_v30 = vld [vmem:[%s6691_s9 + $0xb8] sm:$0xf] }
 0x13d   : > { %v8652_v9 = vadd.f32 %v1510_v15, %v1086_v22  ;;  %v1097_v62 = vadd.f32 %v6097_v16, %v9474_v4  ;;  %v6134_v56 = vpop.f32.mrf.mxu0  ;;  %6337 = vmatmul.mubr.msk.bf16.gmra.mxu0 %vm690_vm3, %v5707_v10  ;;  %v8668_v15 = vcombine.low %v3874_v21, %v3884_v40  ;;  %v5681_v10 = vld [vmem:[%s6691_s9 + $0xa8] sm:$0xe]  ;;  %v9476_v40 = vld [vmem:[#allocation25_spill] sm:$0xff]  ;;  %v3916_v32 = vor.u32 %v3915_v63, %v3912_v6 }
 0x13e   : > { %v1088_v45 = vpop.f32.mrf.mxu1  ;;  %6340 = vmatprep.mubr.msk.bf16.mxu0 %vm690_vm3, %v5708_v41  ;;  %v5627_v41 = vld [vmem:[%s6691_s9 + $0xb4] sm:$0xf]  ;;  %v3929_v38 = vshll.u32 %v8660_v1, 16  ;;  %v4449_v49 = vrot.slane %v8617_v27, 5  ;;  %v9477_v22 = vld [vmem:[#allocation15_spill] sm:$0xff]  ;;  %v3926_v16 = vor.u32 %v3925_v2, %v8662_v23  ;;  %v3908_v27 = vsel %vm6735_vm4, %v8672_v43, %v8674_v17 }
 0x13f   : > { %v8677_v34 = vadd.f32 %v6131_v14, %v1097_v62  ;;  %v1089_v24 = vadd.f32 %v1088_v45, %v9475_v12  ;;  %v1526_v18 = vpop.f32.mrf.mxu0  ;;  %v5697_v62 = vrot.slane %v5681_v10, 9  ;;  %v3934_v6 = vshrl.u32 %v5627_v41, 16 }
 0x140   : > { %v6100_v21 = vpop.f32.mrf.mxu1  ;;  %6303 = vmatmul.mubr.msk.bf16.gmra.mxu1 %vm690_vm3, %v9476_v40  ;;  %v3937_v63 = vshll.u32 %v5627_v41, 16  ;;  %v3943_v2 = vshll.u32 %v8698_v30, 16  ;;  %v3947_v10 = vshrl.u32 %v8698_v30, 16  ;;  %v5630_v40 = vld [vmem:[%s6691_s9 + $0xc0] sm:$0xf]  ;;  %v3917_v4 = vrot.slane %v3916_v32, 4 }
 0x141   : > { %v8700_v59 = vadd.f32 %v1513_v33, %v1089_v24  ;;  %v1110_v13 = vadd.f32 %v6100_v21, %v9477_v22  ;;  %v6135_v57 = vpop.f32.mrf.mxu0  ;;  %6306 = vmatprep.mubr.msk.bf16.mxu1 %vm690_vm3, %v8552_v46  ;;  %v9479_v24 = vld [vmem:[#allocation24_spill] sm:$0xff]  ;;  %v3931_v43 = vrot.slane %v3929_v38, 5  ;;  %v4451_v17 = vrot.slane %v4449_v49, 4  ;;  %v8731_v32 = vld [vmem:[%s6691_s9 + $0xc4] sm:$0xf] }
 0x142   : > { %v1101_v45 = vpop.f32.mrf.mxu1  ;;  %v4452_v33 = vrot.slane %v8660_v1, 5  ;;  %v8728_v14 = vsel %vm7021_vm7, %v5697_v62, %v4449_v49  ;;  %v9483_v1 = vcombine.low %v8510_v25, %v8514_v50  ;;  %v8743_v62 = vrot.slane %v3943_v2, 5 }
 0x143   : > { %v8712_v12 = vadd.f32 %v6134_v56, %v1110_v13  ;;  %v1102_v21 = vadd.f32 %v1101_v45, %v9479_v24  ;;  %v1529_v46 = vpop.f32.mrf.mxu0  ;;  %v9481_v56 = vld [vmem:[#allocation27_spill] sm:$0xff]  ;;  %v9482_v45 = vcombine.low %v8498_v47, %v8502_v7  ;;  %v3927_v24 = vrot.slane %v3926_v16, 4  ;;  %v9484_v16 = vld [vmem:[#allocation29_spill] sm:$0xff] }
 0x144   : > { %v6101_v22 = vpop.f32.mrf.mxu1  ;;  %v3958_v47 = vshrl.u32 %v5630_v40, 16  ;;  %v3961_v7 = vshll.u32 %v5630_v40, 16  ;;  %v3922_v25 = vsel %vm6735_vm4, %v3917_v4, %v8662_v23  ;;  %v8752_v50 = vsel %vm7021_vm7, %v4451_v17, %v4452_v33  ;;  %v5682_v40 = vld [vmem:[%s6691_s9 + $0xb4] sm:$0xe] }
 0x145   : > { %9478 = vst [vmem:[#allocation17_spill] sm:$0xff] %v8712_v12  ;;  %v8719_v35 = vadd.f32 %v1526_v18, %v1102_v21  ;;  %v1113_v41 = vadd.f32 %v6101_v22, %v9481_v56  ;;  %v6138_v13 = vpop.f32.mrf.mxu0  ;;  %6341 = vmatmul.mubr.msk.bf16.gmra.mxu0 %vm690_vm3, %v9482_v45  ;;  %v8738_v18 = vld [vmem:[%s6691_s9 + $0xbc] sm:$0x1]  ;;  %v3936_v21 = vrot.slane %v3934_v6, 4  ;;  %v3939_v22 = vrot.slane %v3937_v63, 5 }
 0x146   : > { %v1104_v38 = vpop.f32.mrf.mxu1  ;;  %6344 = vmatprep.mubr.msk.bf16.mxu0 %vm690_vm3, %v9483_v1  ;;  %v3971_v6 = vshrl.u32 %v8731_v32, 16  ;;  %v3953_v23 = vshll.u32 %v8738_v18, 16  ;;  %v4456_v17 = vrot.slane %v8698_v30, 5  ;;  %v9485_v1 = vld [vmem:[#allocation31_spill] sm:$0xff] }
 0x147   : > { %9480 = vst [vmem:[#allocation14_spill] sm:$0xff] %v8719_v35  ;;  %v8740_v56 = vadd.f32 %v6135_v57, %v1113_v41  ;;  %v1105_v45 = vadd.f32 %v1104_v38, %v9484_v16  ;;  %v1542_v49 = vpop.f32.mrf.mxu0  ;;  %v3949_v35 = vrot.slane %v3947_v10, 4  ;;  %v3967_v57 = vshll.u32 %v8731_v32, 16 }
 0x148   : > { %v6104_v12 = vpop.f32.mrf.mxu1  ;;  %6307 = vmatmul.mubr.msk.bf16.gmra.mxu1 %vm690_vm3, %v8554_v61  ;;  %v3932_v61 = vsel %vm6735_vm4, %v3927_v24, %v3931_v43  ;;  %v3940_v33 = vor.u32 %v3939_v22, %v3936_v21  ;;  %v3960_v41 = vrot.slane %v3958_v47, 4  ;;  %v3963_v38 = vrot.slane %v3961_v7, 5 }
 0x149   : > { %v8756_v63 = vadd.f32 %v1529_v46, %v1105_v45  ;;  %v1126_v2 = vadd.f32 %v6104_v12, %v8462_v28  ;;  %v6139_v10 = vpop.f32.mrf.mxu0  ;;  %6310 = vmatprep.mubr.msk.bf16.mxu1 %vm690_vm3, %v8560_v60  ;;  %v9486_v60 = vsel %vm6735_vm4, %v8650_v51, %v8614_v52  ;;  %v3950_v24 = vor.u32 %v3949_v35, %v8743_v62 }
 0x14a   : > { %v1117_v4 = vpop.f32.mrf.mxu1  ;;  %v8774_v43 = vcombine.low %v9486_v60, %v3908_v27  ;;  %v8777_v30 = vcombine.low %v3922_v25, %v3932_v61  ;;  %v8781_v22 = vrot.slane %v3967_v57, 5  ;;  %v3973_v47 = vrot.slane %v3971_v6, 4  ;;  %v5632_v27 = vld [vmem:[%s6691_s9 + $0xc8] sm:$0x1] }
 0x14b   : > { %v8766_v46 = vadd.f32 %v6138_v13, %v1126_v2  ;;  %v1118_v28 = vadd.f32 %v1117_v4, %v9485_v1  ;;  %v1545_v12 = vpop.f32.mrf.mxu0  ;;  %v5714_v13 = vcombine.low %v8728_v14, %v8752_v50  ;;  %v9487_v52 = vcombine.low %v8580_v3, %v8602_v20  ;;  %v5633_v14 = vld [vmem:[%s6691_s9 + $0xcc] sm:$0xf]  ;;  %v8802_v20 = vld [vmem:[%s6691_s9 + $0xd0] sm:$0xf]  ;;  %v5683_v4 = vld [vmem:[%s6691_s9 + $0xc0] sm:$0xe] }
 0x14c   : > { %v6105_v21 = vpop.f32.mrf.mxu1  ;;  %v8790_v35 = vrot.slane %v3953_v23, 5  ;;  %v5698_v51 = vrot.slane %v5682_v40, 9  ;;  %v9488_v50 = vcombine.low %v8612_v53, %v8642_v39  ;;  %v4459_v57 = vrot.slane %v8738_v18, 5 }
 0x14d   : > { %v8783_v7 = vadd.f32 %v1542_v49, %v1118_v28  ;;  %v1129_v16 = vadd.f32 %v6105_v21, %v8485_v19  ;;  %v6142_v45 = vpop.f32.mrf.mxu0  ;;  %6345 = vmatmul.mubr.msk.bf16.gmra.mxu0 %vm690_vm3, %v9487_v52  ;;  %v8798_v49 = vrot.slane %v3940_v33, 4  ;;  %v4458_v19 = vrot.slane %v4456_v17, 4 }
 0x14e   : > { %v1120_v25 = vpop.f32.mrf.mxu1  ;;  %6348 = vmatprep.mubr.msk.bf16.mxu0 %vm690_vm3, %v9488_v50  ;;  %v3964_v3 = vor.u32 %v3963_v38, %v3960_v41  ;;  %v8807_v23 = vrot.slane %v3950_v24, 4  ;;  %v4463_v53 = vrot.slane %v8731_v32, 5  ;;  %v3974_v33 = vor.u32 %v3973_v47, %v8781_v22 }
 0x14f   : > { %v8804_v6 = vadd.f32 %v6139_v10, %v1129_v16  ;;  %v1121_v2 = vadd.f32 %v1120_v25, %v8517_v26  ;;  %v1558_v61 = vpop.f32.mrf.mxu0  ;;  %v3977_v18 = vshll.u32 %v5632_v27, 16  ;;  %v3982_v40 = vshrl.u32 %v5633_v14, 16  ;;  %v9491_v10 = vld [vmem:[#allocation10_spill] sm:$0xff]  ;;  %v9492_v16 = vld [vmem:[#allocation9_spill] sm:$0xff] }
 0x150   : > { %v6108_v39 = vpop.f32.mrf.mxu1  ;;  %6311 = vmatmul.mubr.msk.bf16.gmra.mxu1 %vm690_vm3, %v8589_v48  ;;  %v3985_v41 = vshll.u32 %v5633_v14, 16  ;;  %v3991_v28 = vshll.u32 %v8802_v20, 16  ;;  %v3995_v32 = vshrl.u32 %v8802_v20, 16  ;;  %v4457_v48 = vsel %vm7021_vm7, %v5698_v51, %v4456_v17  ;;  %v9493_v17 = vld [vmem:[#allocation12_spill] sm:$0xff] }
 0x151   : > { %9489 = vst [vmem:[#allocation22_spill] sm:$0xff] %v8804_v6  ;;  %v8814_v38 = vadd.f32 %v1545_v12, %v1121_v2  ;;  %v1142_v1 = vadd.f32 %v6108_v39, %v9491_v10  ;;  %v6143_v26 = vpop.f32.mrf.mxu0  ;;  %6314 = vmatprep.mubr.msk.bf16.mxu1 %vm690_vm3, %v8668_v15  ;;  %v4460_v24 = vsel %vm7021_vm7, %v4458_v19, %v4459_v57  ;;  %v3965_v21 = vrot.slane %v3964_v3, 4 }
 0x152   : > { %v1133_v60 = vpop.f32.mrf.mxu1  ;;  %v5699_v12 = vrot.slane %v5683_v4, 9  ;;  %v4465_v25 = vrot.slane %v4463_v53, 4  ;;  %v4466_v15 = vrot.slane %v5632_v27, 5  ;;  %v3975_v2 = vrot.slane %v3974_v33, 4  ;;  %v5635_v33 = vld [vmem:[%s6691_s9 + $0xd4] sm:$0x1] }
 0x153   : > { %9490 = vst [vmem:[#allocation18_spill] sm:$0xff] %v8814_v38  ;;  %v8825_v47 = vadd.f32 %v6142_v45, %v1142_v1  ;;  %v1134_v52 = vadd.f32 %v1133_v60, %v9492_v16  ;;  %v1561_v14 = vpop.f32.mrf.mxu0  ;;  %v3979_v39 = vrot.slane %v3977_v18, 5  ;;  %v3984_v10 = vrot.slane %v3982_v40, 4  ;;  %v9495_v18 = vld [vmem:[#allocation11_spill] sm:$0xff] }
 0x154   : > { %v6109_v50 = vpop.f32.mrf.mxu1  ;;  %v3987_v38 = vrot.slane %v3985_v41, 5  ;;  %v9494_v45 = vcombine.low %v8682_v58, %v8686_v36  ;;  %v8835_v57 = vrot.slane %v3991_v28, 5  ;;  %v3997_v27 = vrot.slane %v3995_v32, 4 }
 0x155   : > { %v8828_v6 = vadd.f32 %v1558_v61, %v1134_v52  ;;  %v1145_v51 = vadd.f32 %v6109_v50, %v9493_v17  ;;  %v6146_v19 = vpop.f32.mrf.mxu0  ;;  %v3946_v61 = vsel %vm6735_vm4, %v8798_v49, %v8743_v62  ;;  %v3956_v4 = vsel %vm6735_vm4, %v8807_v23, %v8790_v35  ;;  %v5684_v62 = vld [vmem:[%s6691_s9 + $0xcc] sm:$0xe]  ;;  %s5062_s9 = sshll.u32 %s9155_s7, 4  ;;  %s9239_s9 = int_to_ptr.vmem [resolvable:$true] %s5062_s9 }
 0x156   : > { %6349 = vmatmul.mubr.msk.bf16.gmra.mxu0 %vm690_vm3, %v9494_v45  ;;  %v1136_v3 = vpop.f32.mrf.mxu1  ;;  %v4470_v58 = vrot.slane %v8802_v20, 5  ;;  %v4467_v1 = vsel %vm7021_vm7, %v4465_v25, %v4466_v15  ;;  %v5715_v35 = vcombine.low %v4457_v48, %v4460_v24  ;;  %v3970_v20 = vsel %vm6735_vm4, %v3965_v21, %v8781_v22  ;;  %v9497_v25 = vld [vmem:[#allocation16_spill] sm:$0xff]  ;;  %s6485_s21 = scalar_lea.vmem %s9239_s9, 2048  ;;  %p6492_p1 = scmp.lt.s32.totalorder %s9239_s9, %s6490_s26 }
 0x157   : > { %6352 = vmatprep.mubr.msk.bf16.mxu0 %vm690_vm3, %v5714_v13  ;;  %v8848_v36 = vadd.f32 %v6143_v26, %v1145_v51  ;;  %v1137_v40 = vadd.f32 %v1136_v3, %v9495_v18  ;;  %v1574_v41 = vpop.f32.mrf.mxu0  ;;  %v4464_v13 = vsel %vm7021_vm7, %v5699_v12, %v4463_v53  ;;  %v3980_v23 = vsel %vm6735_vm4, %v3975_v2, %v3979_v39  ;;  %v9496_v53 = vld [vmem:[#allocation13_spill] sm:$0xff]  ;;  %p6486_p12 = scmp.ne.s32.totalorder %s9239_s9, %s6485_s21  ;;  %p6493_p2 = scmp.lt.s32.totalorder %s6491_s27, %s6485_s21 }
 0x158   : > { %v6112_v49 = vpop.f32.mrf.mxu1  ;;  %6315 = vmatmul.mubr.msk.bf16.gmra.mxu1 %vm690_vm3, %v8774_v43  ;;  %v3988_v26 = vor.u32 %v3987_v38, %v3984_v10  ;;  %v3998_v12 = vor.u32 %v3997_v27, %v8835_v57  ;;  %v4001_v43 = vshll.u32 %v5635_v33, 16  ;;  %v5716_v24 = vcombine.low %v4464_v13, %v4467_v1 }
 0x159   : > { %v8863_v28 = vadd.f32 %v1561_v14, %v1137_v40  ;;  %v1158_v32 = vadd.f32 %v6112_v49, %v9496_v53  ;;  %v6147_v60 = vpop.f32.mrf.mxu0  ;;  %6318 = vmatprep.mubr.msk.bf16.mxu1 %vm690_vm3, %v8777_v30  ;;  %v5700_v16 = vrot.slane %v5684_v62, 9  ;;  %v4472_v52 = vrot.slane %v4470_v58, 4  ;;  %v9498_v30 = vld [vmem:[#allocation19_spill] sm:$0xff]  ;;  %p6487_p13 = pnand %p6486_p12, %p6657_p4  ;;  %p6494_p3 = por %p6493_p2, %p6492_p1 }
 0x15a   : > { %v1149_v48 = vpop.f32.mrf.mxu1  ;;  %v4473_v22 = vrot.slane %v5635_v33, 5  ;;  %v5650_v50 = vcombine.low %v3946_v61, %v3956_v4  ;;  %v5651_v2 = vcombine.low %v3970_v20, %v3980_v23  ;;  %v3989_v39 = vrot.slane %v3988_v26, 4  ;;  %v9499_v33 = vld [vmem:[#allocation21_spill] sm:$0xff]  ;;  %v9500_v62 = vld [vmem:[#allocation23_spill] sm:$0xff]  ;;  %v9501_v26 = vld [vmem:[#allocation26_spill] sm:$0xff] }
 0x15b   : > { %v8869_v21 = vadd.f32 %v6146_v19, %v1158_v32  ;;  %v1150_v38 = vadd.f32 %v1149_v48, %v9497_v25  ;;  %v1577_v14 = vpop.f32.mrf.mxu0  ;;  %v3999_v45 = vrot.slane %v3998_v12, 4  ;;  %v4003_v27 = vrot.slane %v4001_v43, 5  ;;  %v9502_v43 = vld [vmem:[#allocation28_spill] sm:$0xff]  ;;  %p6488_p0 = pneg %p6487_p13 }
 0x15c   : > { %v6113_v15 = vpop.f32.mrf.mxu1  ;;  %v4471_v19 = vsel %vm7021_vm7, %v5700_v16, %v4470_v58  ;;  %v4474_v61 = vsel %vm7021_vm7, %v4472_v52, %v4473_v22  ;;  %v3994_v13 = vsel %vm6735_vm4, %v3989_v39, %v8835_v57 }
 0x15d   : > { %v8872_v10 = vadd.f32 %v1574_v41, %v1150_v38  ;;  %v1161_v17 = vadd.f32 %v6113_v15, %v9498_v30  ;;  %v6150_v51 = vpop.f32.mrf.mxu0  ;;  %v4004_v0 = vsel %vm6735_vm4, %v3999_v45, %v4003_v27  ;;  %p6495_p5 = pnand %p6494_p3, %p6488_p0 }
 0x15e   : > { %6353 = vmatmul.mubr.msk.bf16.gmra.mxu0 %vm690_vm3, %v5715_v35  ;;  %v1152_v3 = vpop.f32.mrf.mxu1  ;;  %v5717_v35 = vcombine.low %v4471_v19, %v4474_v61  ;;  %v5652_v12 = vcombine.low %v3994_v13, %v4004_v0 }
 0x15f   : > { %6356 = vmatprep.mubr.msk.bf16.mxu0 %vm690_vm3, %v5716_v24  ;;  %v8881_v4 = vadd.f32 %v6147_v60, %v1161_v17  ;;  %v1153_v18 = vadd.f32 %v1152_v3, %v9499_v33  ;;  %v1590_v40 = vpop.f32.mrf.mxu0 }
 0x160   : > { %v6116_v41 = vpop.f32.mrf.mxu1  ;;  %6319 = vmatmul.mubr.msk.bf16.gmra.mxu1 %vm690_vm3, %v5650_v50 }
 0x161   : > { %v8888_v1 = vadd.f32 %v1577_v14, %v1153_v18  ;;  %v1174_v49 = vadd.f32 %v6116_v41, %v9500_v62  ;;  %v6151_v58 = vpop.f32.mrf.mxu0  ;;  %6322 = vmatprep.mubr.msk.bf16.mxu1 %vm690_vm3, %v5651_v2 }
 0x162   : > { %v1165_v20 = vpop.f32.mrf.mxu1 }
 0x163   : > { %v8894_v23 = vadd.f32 %v6150_v51, %v1174_v49  ;;  %v1166_v53 = vadd.f32 %v1165_v20, %v9501_v26  ;;  %v1593_v32 = vpop.f32.mrf.mxu0 }
 0x164   : > { %v6117_v60 = vpop.f32.mrf.mxu1 }
 0x165   : > { %v8897_v57 = vadd.f32 %v1590_v40, %v1166_v53  ;;  %v1177_v48 = vadd.f32 %v6117_v60, %v9502_v43  ;;  %v6154_v24 = vpop.f32.mrf.mxu0 }
 0x166   : > { %6357 = vmatmul.mubr.msk.bf16.gmra.mxu0 %vm690_vm3, %v5717_v35  ;;  %v1168_v16 = vpop.f32.mrf.mxu1 }
 0x167   : > { %v8901_v52 = vadd.f32 %v6151_v58, %v1177_v48  ;;  %v1169_v22 = vadd.f32 %v1168_v16, %v9503_v31  ;;  %v1606_v25 = vpop.f32.mrf.mxu0 }
 0x168   : > { %v6120_v38 = vpop.f32.mrf.mxu1  ;;  %6323 = vmatmul.mubr.msk.bf16.gmra.mxu1 %vm690_vm3, %v5652_v12 }
 0x169   : > { %v8905_v14 = vadd.f32 %v1593_v32, %v1169_v22  ;;  %v1190_v15 = vadd.f32 %v6120_v38, %v8477_v42  ;;  %v6155_v50 = vpop.f32.mrf.mxu0 }
 0x16a   : > { %v1181_v2 = vpop.f32.mrf.mxu1 }
 0x16b   : > { %v8908_v39 = vadd.f32 %v6154_v24, %v1190_v15  ;;  %v1182_v30 = vadd.f32 %v1181_v2, %v8504_v44  ;;  %v1609_v17 = vpop.f32.mrf.mxu0 }
 0x16c   : > { %v6121_v51 = vpop.f32.mrf.mxu1 }
 0x16d   : > { %v8911_v45 = vadd.f32 %v1606_v25, %v1182_v30  ;;  %v1193_v27 = vadd.f32 %v6121_v51, %v8519_v8  ;;  %v6194_v3 = vpop.f32.mrf.mxu0  ;;  %v9504_v30 = vld [vmem:[#allocation17_spill] sm:$0xff] }
 0x16e   : > { %v1184_v19 = vpop.f32.mrf.mxu1 }
 0x16f   : > { %v8914_v61 = vadd.f32 %v6155_v50, %v1193_v27  ;;  %v1185_v33 = vadd.f32 %v1184_v19, %v8541_v55  ;;  %v2582_v18 = vpop.f32.mrf.mxu0 }
 0x170   : > { %v6160_v42 = vpop.f32.mrf.mxu1 }
 0x171   : > { %v8917_v40 = vadd.f32 %v1609_v17, %v1185_v33  ;;  %v1985_v41 = vadd.f32 %v6160_v42, %v8586_v5  ;;  %v6195_v13 = vpop.f32.mrf.mxu0 }
 0x172   : > { %v1856_v44 = vpop.f32.mrf.mxu1 }
 0x173   : > { %v8920_v62 = vadd.f32 %v6194_v3, %v1985_v41  ;;  %v1983_v49 = vadd.f32 %v1856_v44, %v8593_v37  ;;  %v2585_v58 = vpop.f32.mrf.mxu0  ;;  %v9505_v3 = vld [vmem:[#allocation14_spill] sm:$0xff] }
 0x174   : > { %v6161_v8 = vpop.f32.mrf.mxu1 }
 0x175   : > { %v8923_v0 = vadd.f32 %v2582_v18, %v1983_v49  ;;  %v1986_v35 = vadd.f32 %v6161_v8, %v8619_v54  ;;  %v6198_v20 = vpop.f32.mrf.mxu0 }
 0x176   : > { %v1859_v55 = vpop.f32.mrf.mxu1 }
 0x177   : > { %v8926_v26 = vadd.f32 %v6195_v13, %v1986_v35  ;;  %v1984_v53 = vadd.f32 %v1859_v55, %v8633_v11  ;;  %v2598_v32 = vpop.f32.mrf.mxu0 }
 0x178   : > { %v6164_v5 = vpop.f32.mrf.mxu1 }
 0x179   : > { %v8929_v60 = vadd.f32 %v2585_v58, %v1984_v53  ;;  %v1989_v12 = vadd.f32 %v6164_v5, %v8645_v29  ;;  %v6199_v43 = vpop.f32.mrf.mxu0 }
 0x17a   : > { %v1872_v37 = vpop.f32.mrf.mxu1 }
 0x17b   : > { %v8932_v48 = vadd.f32 %v6198_v20, %v1989_v12  ;;  %v1987_v24 = vadd.f32 %v1872_v37, %v8652_v9  ;;  %v2601_v16 = vpop.f32.mrf.mxu0 }
 0x17c   : > { %v6165_v54 = vpop.f32.mrf.mxu1 }
 0x17d   : > { %v8935_v31 = vadd.f32 %v2598_v32, %v1987_v24  ;;  %v1990_v22 = vadd.f32 %v6165_v54, %v8677_v34  ;;  %v6202_v25 = vpop.f32.mrf.mxu0  ;;  %v9507_v54 = vld [vmem:[#allocation18_spill] sm:$0xff] }
 0x17e   : > { %v1875_v11 = vpop.f32.mrf.mxu1 }
 0x17f   : > { %v8938_v38 = vadd.f32 %v6199_v43, %v1990_v22  ;;  %v1988_v15 = vadd.f32 %v1875_v11, %v8700_v59  ;;  %v2614_v50 = vpop.f32.mrf.mxu0  ;;  %v9506_v43 = vld [vmem:[#allocation22_spill] sm:$0xff] }
 0x180   : > { %v6168_v29 = vpop.f32.mrf.mxu1 }
 0x181   : > { %v8941_v2 = vadd.f32 %v2601_v16, %v1988_v15  ;;  %v1993_v17 = vadd.f32 %v6168_v29, %v9504_v30  ;;  %v6203_v51 = vpop.f32.mrf.mxu0 }
 0x182   : > { %v1888_v9 = vpop.f32.mrf.mxu1 }
 0x183   : > { %v8944_v27 = vadd.f32 %v6202_v25, %v1993_v17  ;;  %v1991_v19 = vadd.f32 %v1888_v9, %v9505_v3  ;;  %v2617_v33 = vpop.f32.mrf.mxu0 }
 0x184   : > { %v6169_v34 = vpop.f32.mrf.mxu1 }
 0x185   : > { %v8947_v18 = vadd.f32 %v2614_v50, %v1991_v19  ;;  %v1994_v42 = vadd.f32 %v6169_v34, %v8740_v56  ;;  %v6206_v41 = vpop.f32.mrf.mxu0 }
 0x186   : > { %v1891_v59 = vpop.f32.mrf.mxu1 }
 0x187   : > { %v8950_v13 = vadd.f32 %v6203_v51, %v1994_v42  ;;  %v1992_v44 = vadd.f32 %v1891_v59, %v8756_v63  ;;  %v2630_v49 = vpop.f32.mrf.mxu0 }
 0x188   : > { %v6172_v58 = vpop.f32.mrf.mxu1 }
 0x189   : > { %v8953_v8 = vadd.f32 %v2617_v33, %v1992_v44  ;;  %v1997_v35 = vadd.f32 %v6172_v58, %v8766_v46  ;;  %v6207_v20 = vpop.f32.mrf.mxu0 }
 0x18a   : > { %v1904_v55 = vpop.f32.mrf.mxu1 }
 0x18b   : > { %v8956_v53 = vadd.f32 %v6206_v41, %v1997_v35  ;;  %v1995_v32 = vadd.f32 %v1904_v55, %v8783_v7  ;;  %v2633_v5 = vpop.f32.mrf.mxu0 }
 0x18c   : > { %v6173_v56 = vpop.f32.mrf.mxu1 }
 0x18d   : > { %v8959_v12 = vadd.f32 %v2630_v49, %v1995_v32  ;;  %v1998_v37 = vadd.f32 %v6173_v56, %v9506_v43  ;;  %v6210_v24 = vpop.f32.mrf.mxu0 }
 0x18e   : > { %v1907_v63 = vpop.f32.mrf.mxu1 }
 0x18f   : > { %v8962_v16 = vadd.f32 %v6207_v20, %v1998_v37  ;;  %v1996_v22 = vadd.f32 %v1907_v63, %v9507_v54  ;;  %v2646_v25 = vpop.f32.mrf.mxu0 }
 0x190   : > { %v6176_v46 = vpop.f32.mrf.mxu1 }
 0x191   : > { %v8965_v11 = vadd.f32 %v2633_v5, %v1996_v22  ;;  %v2001_v15 = vadd.f32 %v6176_v46, %v8825_v47  ;;  %v6211_v50 = vpop.f32.mrf.mxu0 }
 0x192   : > { %v1920_v7 = vpop.f32.mrf.mxu1 }
 0x193   : > { %v8968_v29 = vadd.f32 %v6210_v24, %v2001_v15  ;;  %v1999_v30 = vadd.f32 %v1920_v7, %v8828_v6  ;;  %v2649_v17 = vpop.f32.mrf.mxu0 }
 0x194   : > { %v6177_v51 = vpop.f32.mrf.mxu1 }
 0x195   : > { %v8971_v9 = vadd.f32 %v2646_v25, %v1999_v30  ;;  %v2002_v3 = vadd.f32 %v6177_v51, %v8848_v36  ;;  %v6214_v19 = vpop.f32.mrf.mxu0 }
 0x196   : > { %v1923_v33 = vpop.f32.mrf.mxu1 }
 0x197   : > { %v8974_v34 = vadd.f32 %v6211_v50, %v2002_v3  ;;  %v2000_v42 = vadd.f32 %v1923_v33, %v8863_v28  ;;  %v2662_v41 = vpop.f32.mrf.mxu0 }
 0x198   : > { %v6180_v47 = vpop.f32.mrf.mxu1 }
 0x199   : > { %v8977_v59 = vadd.f32 %v2649_v17, %v2000_v42  ;;  %v2005_v44 = vadd.f32 %v6180_v47, %v8869_v21  ;;  %v6215_v49 = vpop.f32.mrf.mxu0 }
 0x19a   : > { %v1936_v6 = vpop.f32.mrf.mxu1 }
 0x19b   : > { %v8980_v58 = vadd.f32 %v6214_v19, %v2005_v44  ;;  %v2003_v35 = vadd.f32 %v1936_v6, %v8872_v10  ;;  %v2665_v20 = vpop.f32.mrf.mxu0 }
 0x19c   : > { %v6181_v36 = vpop.f32.mrf.mxu1 }
 0x19d   : > { %v8983_v55 = vadd.f32 %v2662_v41, %v2003_v35  ;;  %v2006_v32 = vadd.f32 %v6181_v36, %v8881_v4  ;;  %v6218_v5 = vpop.f32.mrf.mxu0 }
 0x19e   : > { %v1939_v28 = vpop.f32.mrf.mxu1 }
 0x19f   : > { %9508 = vst [vmem:[#allocation8_spill] sm:$0xff] %v8983_v55  ;;  %v8986_v56 = vadd.f32 %v6215_v49, %v2006_v32  ;;  %v2004_v43 = vadd.f32 %v1939_v28, %v8888_v1  ;;  %v2678_v37 = vpop.f32.mrf.mxu0 }
 0x1a0   : > { %v6184_v21 = vpop.f32.mrf.mxu1 }
 0x1a1   : > { %9509 = vst [vmem:[#allocation20_spill] sm:$0xff] %v8986_v56  ;;  %v8989_v24 = vadd.f32 %v2665_v20, %v2004_v43  ;;  %v2009_v63 = vadd.f32 %v6184_v21, %v8894_v23  ;;  %v6219_v54 = vpop.f32.mrf.mxu0 }
 0x1a2   : > { %v1952_v10 = vpop.f32.mrf.mxu1 }
 0x1a3   : > { %9510 = vst [vmem:[#allocation25_spill] sm:$0xff] %v8989_v24  ;;  %v8992_v22 = vadd.f32 %v6218_v5, %v2009_v63  ;;  %v2007_v25 = vadd.f32 %v1952_v10, %v8897_v57  ;;  %v2681_v46 = vpop.f32.mrf.mxu0 }
 0x1a4   : > { %v6185_v4 = vpop.f32.mrf.mxu1 }
 0x1a5   : > { %v8995_v15 = vadd.f32 %v2678_v37, %v2007_v25  ;;  %v2010_v50 = vadd.f32 %v6185_v4, %v8901_v52  ;;  %v6222_v7 = vpop.f32.mrf.mxu0 }
 0x1a6   : > { %v1955_v1 = vpop.f32.mrf.mxu1 }
 0x1a7   : > { %9511 = vst [vmem:[#allocation15_spill] sm:$0xff] %v8995_v15  ;;  %v8998_v30 = vadd.f32 %v6219_v54, %v2010_v50  ;;  %v2008_v17 = vadd.f32 %v1955_v1, %v8905_v14  ;;  %v2694_v51 = vpop.f32.mrf.mxu0 }
 0x1a8   : > { %v6188_v23 = vpop.f32.mrf.mxu1 }
 0x1a9   : > { %9512 = vst [vmem:[#allocation24_spill] sm:$0xff] %v8998_v30  ;;  %v9001_v3 = vadd.f32 %v2681_v46, %v2008_v17  ;;  %v2013_v19 = vadd.f32 %v6188_v23, %v8908_v39  ;;  %v6223_v33 = vpop.f32.mrf.mxu0 }
 0x1aa   : > { %v1968_v57 = vpop.f32.mrf.mxu1 }
 0x1ab   : > { %9513 = vst [vmem:[#allocation27_spill] sm:$0xff] %v9001_v3  ;;  %v9004_v42 = vadd.f32 %v6222_v7, %v2013_v19  ;;  %v2011_v41 = vadd.f32 %v1968_v57, %v8911_v45  ;;  %v2697_v47 = vpop.f32.mrf.mxu0 }
 0x1ac   : > { %v6189_v52 = vpop.f32.mrf.mxu1 }
 0x1ad   : > { %v9007_v44 = vadd.f32 %v2694_v51, %v2011_v41  ;;  %v2014_v49 = vadd.f32 %v6189_v52, %v8914_v61  ;;  %v6262_v6 = vpop.f32.mrf.mxu0 }
 0x1ae   : > { %v1971_v14 = vpop.f32.mrf.mxu1 }
 0x1af   : > { %9514 = vst [vmem:[#allocation29_spill] sm:$0xff] %v9007_v44  ;;  %v9010_v35 = vadd.f32 %v6223_v33, %v2014_v49  ;;  %v2012_v20 = vadd.f32 %v1971_v14, %v8917_v40  ;;  %v3414_v36 = vpop.f32.mrf.mxu0 }
 0x1b0   : > { %v6228_v39 = vpop.f32.mrf.mxu1 }
 0x1b1   : > { %9515 = vst [vmem:[#allocation31_spill] sm:$0xff] %v9010_v35  ;;  %v9013_v32 = vadd.f32 %v2697_v47, %v2012_v20  ;;  %v3181_v5 = vadd.f32 %v6228_v39, %v8920_v62  ;;  %v9016_v28 = vpop.f32.mrf.mxu0 }
 0x1b2   : > { %v3052_v45 = vpop.f32.mrf.mxu1 }
 0x1b3   : > { %9516 = vst [vmem:[#allocation10_spill] sm:$0xff] %v9013_v32  ;;  %v9018_v43 = vadd.f32 %v6262_v6, %v3181_v5  ;;  %v3179_v37 = vadd.f32 %v3052_v45, %v8923_v0  ;;  %v9021_v61 = vpop.f32.mrf.mxu0 }
 0x1b4   : > { %v9023_v21 = vpop.f32.mrf.mxu1 }
 0x1b5   : > { %v9025_v63 = vadd.f32 %v3414_v36, %v3179_v37  ;;  %v6266_v40 = vpop.f32.mrf.mxu0 }
 0x1b6   : > { %v9027_v54 = vpop.f32.mrf.mxu1 }
 0x1b7   : > { %v9029_v10 = vpop.f32.mrf.mxu0 }
 0x1b8   : > { %v6232_v25 = vpop.f32.mrf.mxu1 }
 0x1b9   : > { %v3185_v62 = vadd.f32 %v6232_v25, %v8932_v48  ;;  %v9032_v46 = vpop.f32.mrf.mxu0 }
 0x1ba   : > { %v9034_v4 = vpop.f32.mrf.mxu1 }
 0x1bb   : > { %v9036_v50 = vadd.f32 %v6266_v40, %v3185_v62  ;;  %v9038_v0 = vpop.f32.mrf.mxu0 }
 0x1bc   : > { %v9040_v7 = vpop.f32.mrf.mxu1 }
 0x1bd   : > { %v6270_v1 = vpop.f32.mrf.mxu0 }
 0x1be   : > { %v9042_v17 = vpop.f32.mrf.mxu1 }
 0x1bf   : > { %v9044_v51 = vpop.f32.mrf.mxu0 }
 0x1c0   : > { %v6236_v23 = vpop.f32.mrf.mxu1 }
 0x1c1   : > { %v3189_v19 = vadd.f32 %v6236_v23, %v8944_v27  ;;  %v9047_v33 = vpop.f32.mrf.mxu0 }
 0x1c2   : > { %v9049_v48 = vpop.f32.mrf.mxu1 }
 0x1c3   : > { %v9051_v57 = vadd.f32 %v6270_v1, %v3189_v19  ;;  %v9053_v41 = vpop.f32.mrf.mxu0 }
 0x1c4   : > { %v9055_v47 = vpop.f32.mrf.mxu1 }
 0x1c5   : > { %v6274_v52 = vpop.f32.mrf.mxu0 }
 0x1c6   : > { %v9057_v49 = vpop.f32.mrf.mxu1 }
 0x1c7   : > { %v9059_v6 = vpop.f32.mrf.mxu0 }
 0x1c8   : > { %v6240_v14 = vpop.f32.mrf.mxu1 }
 0x1c9   : > { %v3193_v20 = vadd.f32 %v6240_v14, %v8956_v53  ;;  %v9062_v36 = vpop.f32.mrf.mxu0 }
 0x1ca   : > { %v9064_v27 = vpop.f32.mrf.mxu1 }
 0x1cb   : > { %v9066_v39 = vadd.f32 %v6274_v52, %v3193_v20  ;;  %v9068_v5 = vpop.f32.mrf.mxu0 }
 0x1cc   : > { %v9070_v45 = vpop.f32.mrf.mxu1 }
 0x1cd   : > { %v6278_v37 = vpop.f32.mrf.mxu0 }
 0x1ce   : > { %v9072_v40 = vpop.f32.mrf.mxu1 }
 0x1cf   : > { %v9074_v25 = vpop.f32.mrf.mxu0 }
 0x1d0   : > { %v6244_v62 = vpop.f32.mrf.mxu1 }
 0x1d1   : > { %v3197_v1 = vadd.f32 %v6244_v62, %v8968_v29  ;;  %v9077_v23 = vpop.f32.mrf.mxu0 }
 0x1d2   : > { %v9079_v53 = vpop.f32.mrf.mxu1 }
 0x1d3   : > { %v9081_v19 = vadd.f32 %v6278_v37, %v3197_v1  ;;  %v9083_v52 = vpop.f32.mrf.mxu0 }
 0x1d4   : > { %9517 = vst [vmem:[#allocation9_spill] sm:$0xff] %v9083_v52  ;;  %v9085_v14 = vpop.f32.mrf.mxu1 }
 0x1d5   : > { %v6282_v20 = vpop.f32.mrf.mxu0 }
 0x1d6   : > { %v9087_v32 = vpop.f32.mrf.mxu1 }
 0x1d7   : > { %v9089_v35 = vpop.f32.mrf.mxu0 }
 0x1d8   : > { %9518 = vst [vmem:[#allocation12_spill] sm:$0xff] %v9089_v35  ;;  %v6248_v44 = vpop.f32.mrf.mxu1 }
 0x1d9   : > { %v3201_v3 = vadd.f32 %v6248_v44, %v8980_v58  ;;  %v9092_v30 = vpop.f32.mrf.mxu0 }
 0x1da   : > { %9519 = vst [vmem:[#allocation11_spill] sm:$0xff] %v9092_v30  ;;  %v9094_v29 = vpop.f32.mrf.mxu1 }
 0x1db   : > { %v9096_v62 = vadd.f32 %v6282_v20, %v3201_v3  ;;  %v9098_v37 = vpop.f32.mrf.mxu0 }
 0x1dc   : > { %9521 = vst [vmem:[#allocation16_spill] sm:$0xff] %v9098_v37  ;;  %v9100_v1 = vpop.f32.mrf.mxu1 }
 0x1dd   : > { %9520 = vst [vmem:[#allocation13_spill] sm:$0xff] %v9096_v62  ;;  %v6286_v15 = vpop.f32.mrf.mxu0 }
 0x1de   : > { %v9102_v24 = vpop.f32.mrf.mxu1 }
 0x1df   : > { %9522 = vst [vmem:[#allocation19_spill] sm:$0xff] %v9102_v24  ;;  %v9104_v56 = vpop.f32.mrf.mxu0 }
 0x1e0   : > { %9523 = vst [vmem:[#allocation21_spill] sm:$0xff] %v9104_v56  ;;  %v6252_v55 = vpop.f32.mrf.mxu1 }
 0x1e1   : > { %v3205_v35 = vadd.f32 %v6252_v55, %v8992_v22  ;;  %v9107_v52 = vpop.f32.mrf.mxu0 }
 0x1e2   : > { %9524 = vst [vmem:[#allocation23_spill] sm:$0xff] %v9107_v52  ;;  %v9109_v58 = vpop.f32.mrf.mxu1 }
 0x1e3   : > { %9525 = vst [vmem:[#allocation26_spill] sm:$0xff] %v9109_v58  ;;  %v9111_v44 = vadd.f32 %v6286_v15, %v3205_v35  ;;  %v9113_v3 = vpop.f32.mrf.mxu0 }
 0x1e4   : > { %9527 = vst [vmem:[#allocation30_spill] sm:$0xff] %v9113_v3  ;;  %v9115_v20 = vpop.f32.mrf.mxu1 }
 0x1e5   : > { %9526 = vst [vmem:[#allocation28_spill] sm:$0xff] %v9111_v44  ;;  %9528 = vst [vmem:[#allocation17_spill] sm:$0xff] %v9115_v20  ;;  %v6290_v37 = vpop.f32.mrf.mxu0 }
 0x1e6   : > { %v9117_v62 = vpop.f32.mrf.mxu1 }
 0x1e7   : > { %9529 = vst [vmem:[#allocation14_spill] sm:$0xff] %v9117_v62  ;;  %v9119_v30 = vpop.f32.mrf.mxu0 }
 0x1e8   : > { %9530 = vst [vmem:[#allocation22_spill] sm:$0xff] %v9119_v30  ;;  %v6256_v56 = vpop.f32.mrf.mxu1  ;;  %v3182_v30 = vadd.f32 %v9023_v21, %v8926_v26 }
 0x1e9   : > { %v3209_v24 = vadd.f32 %v6256_v56, %v9004_v42  ;;  %v9122_v55 = vpop.f32.mrf.mxu0  ;;  %v3180_v56 = vadd.f32 %v9027_v54, %v8929_v60  ;;  %v3183_v60 = vadd.f32 %v9034_v4, %v8935_v31  ;;  %v3186_v54 = vadd.f32 %v9040_v7, %v8938_v38 }
 0x1ea   : > { %9531 = vst [vmem:[#allocation18_spill] sm:$0xff] %v9122_v55  ;;  %v9124_v22 = vpop.f32.mrf.mxu1 }
 0x1eb   : > { %9532 = vst [vmem:[#allocation32_spill] sm:$0xff] %v9124_v22  ;;  %v9126_v52 = vadd.f32 %v6290_v37, %v3209_v24  ;;  %v9128_v15 = vpop.f32.mrf.mxu0  ;;  %v3544_v24 = vadd.f32 %v9016_v28, %v3182_v30  ;;  %v3542_v26 = vadd.f32 %v9021_v61, %v3180_v56  ;;  %v3548_v31 = vadd.f32 %v9032_v46, %v3186_v54 }
 0x1ec   : > { %9534 = vst [vmem:[#allocation34_spill] sm:$0xff] %v9128_v15  ;;  %v9130_v35 = vpop.f32.mrf.mxu1 }
 0x1ed   : > { %9533 = vst [vmem:[#allocation33_spill] sm:$0xff] %v9126_v52  ;;  %9535 = vst [vmem:[#allocation35_spill] sm:$0xff] %v9130_v35  ;;  %v6330_v3 = vpop.f32.mrf.mxu0 }
 0x1ee   : > { %v9132_v44 = vpop.f32.mrf.mxu1 }
 0x1ef   : > { %9536 = vst [vmem:[#allocation36_spill] sm:$0xff] %v9132_v44  ;;  %v4610_v62 = vpop.f32.mrf.mxu0 }
 0x1f0   : > { %v6296_v20 = vpop.f32.mrf.mxu1 }
 0x1f1   : > { %v6331_v42 = vpop.f32.mrf.mxu0  ;;  %v4269_v37 = vadd.f32 %v6296_v20, %v9018_v43 }
 0x1f2   : > { %v4140_v55 = vpop.f32.mrf.mxu1 }
 0x1f3   : > { %v4267_v15 = vadd.f32 %v4140_v55, %v9025_v63  ;;  %v4613_v52 = vpop.f32.mrf.mxu0  ;;  %v4739_v58 = vadd.f32 %v6330_v3, %v4269_v37  ;;  %v3184_v63 = vadd.f32 %v9042_v17, %v8941_v2 }
 0x1f4   : > { %v6297_v44 = vpop.f32.mrf.mxu1 }
 0x1f5   : > { %v4270_v21 = vadd.f32 %v6297_v44, %v3544_v24  ;;  %v6334_v35 = vpop.f32.mrf.mxu0  ;;  %v4737_v30 = vadd.f32 %v4610_v62, %v4267_v15  ;;  %v3545_v24 = vadd.f32 %v9029_v10, %v3183_v60  ;;  %v3187_v10 = vadd.f32 %v9049_v48, %v8947_v18 }
 0x1f6   : > { %v4143_v22 = vpop.f32.mrf.mxu1  ;;  %v4968_v15 = vmul.f32 %v4739_v58, %v4739_v58 }
 0x1f7   : > { %v4740_v28 = vadd.f32 %v6331_v42, %v4270_v21  ;;  %v4268_v43 = vadd.f32 %v4143_v22, %v3542_v26  ;;  %v4626_v20 = vpop.f32.mrf.mxu0  ;;  %v4966_v7 = vmul.f32 %v4737_v30, %v4737_v30  ;;  %v3190_v21 = vadd.f32 %v9055_v47, %v8950_v13 }
 0x1f8   : > { %v6300_v55 = vpop.f32.mrf.mxu1 }
 0x1f9   : > { %v5814_v61 = vpack.c.bf16 %v4740_v28, %v4739_v58  ;;  %v4738_v44 = vadd.f32 %v4613_v52, %v4268_v43  ;;  %v6335_v56 = vpop.f32.mrf.mxu0  ;;  %v4273_v4 = vadd.f32 %v6300_v55, %v9036_v50  ;;  %v3546_v52 = vadd.f32 %v9038_v0, %v3184_v63 }
 0x1fa   : > { %v4156_v38 = vpop.f32.mrf.mxu1  ;;  %v4969_v60 = vmul.f32 %v4740_v28, %v4740_v28 }
 0x1fb   : > { %5886 = vst [vmem:[%s9155_s7 + $0x8] sm:$0xff] %v5814_v61   ;;  %v5809_v62 = vpack.c.bf16 %v4738_v44, %v4737_v30  ;;  %v4929_v3 = vadd.f32 %v4738_v44, %v4737_v30  ;;  %v4967_v2 = vmul.f32 %v4738_v44, %v4738_v44  ;;  %v4629_v17 = vpop.f32.mrf.mxu0  ;;  %v4271_v22 = vadd.f32 %v4156_v38, %v3545_v24 }
 0x1fc   : > { %v6301_v46 = vpop.f32.mrf.mxu1  ;;  %v4743_v54 = vadd.f32 %v6334_v35, %v4273_v4  ;;  %v3549_v61 = vadd.f32 %v9044_v51, %v3187_v10  ;;  %v3552_v4 = vadd.f32 %v9047_v33, %v3190_v21 }
 0x1fd   : > { %5810 = vst [vmem:[%s9155_s7] sm:$0xff] %v5809_v62   ;;  %v4930_v50 = vadd.f32 %v4929_v3, %v4739_v58  ;;  %v4998_v42 = vadd.f32 %v4967_v2, %v4966_v7  ;;  %v4274_v37 = vadd.f32 %v6301_v46, %v3548_v31  ;;  %v6338_v26 = vpop.f32.mrf.mxu0  ;;  %v4741_v30 = vadd.f32 %v4626_v20, %v4271_v22 }
 0x1fe   : > { %v4159_v43 = vpop.f32.mrf.mxu1  ;;  %v3188_v58 = vadd.f32 %v9057_v49, %v8953_v8  ;;  %v4972_v22 = vmul.f32 %v4743_v54, %v4743_v54 }
 0x1ff   : > { %v4999_v55 = vadd.f32 %v4998_v42, %v4968_v15  ;;  %v4931_v0 = vadd.f32 %v4930_v50, %v4740_v28  ;;  %v4744_v63 = vadd.f32 %v6335_v56, %v4274_v37  ;;  %v4272_v18 = vadd.f32 %v4159_v43, %v3546_v52  ;;  %v4642_v48 = vpop.f32.mrf.mxu0 }
 0x200   : > { %v6304_v44 = vpop.f32.mrf.mxu1  ;;  %v4970_v31 = vmul.f32 %v4741_v30, %v4741_v30  ;;  %v3550_v2 = vadd.f32 %v9053_v41, %v3188_v58  ;;  %v3191_v52 = vadd.f32 %v9064_v27, %v8959_v12 }
 0x201   : > { %v4932_v24 = vadd.f32 %v4931_v0, %v4741_v30  ;;  %v5000_v38 = vadd.f32 %v4999_v55, %v4969_v60  ;;  %v5824_v13 = vpack.c.bf16 %v4744_v63, %v4743_v54  ;;  %v6339_v47 = vpop.f32.mrf.mxu0  ;;  %v4742_v35 = vadd.f32 %v4629_v17, %v4272_v18 }
 0x202   : > { %v4172_v20 = vpop.f32.mrf.mxu1  ;;  %v4277_v56 = vadd.f32 %v6304_v44, %v9051_v57  ;;  %v3194_v17 = vadd.f32 %v9070_v45, %v8962_v16  ;;  %v4973_v41 = vmul.f32 %v4744_v63, %v4744_v63  ;;  %v3553_v27 = vadd.f32 %v9059_v6, %v3191_v52 }
 0x203   : > { %v5001_v28 = vadd.f32 %v5000_v38, %v4970_v31  ;;  %5888 = vst [vmem:[%s9155_s7 + $0x18] sm:$0xff] %v5824_v13   ;;  %v4275_v7 = vadd.f32 %v4172_v20, %v3549_v61  ;;  %v4645_v51 = vpop.f32.mrf.mxu0  ;;  %v5819_v62 = vpack.c.bf16 %v4742_v35, %v4741_v30  ;;  %v4933_v3 = vadd.f32 %v4932_v24, %v4742_v35 }
 0x204   : > { %v4971_v8 = vmul.f32 %v4742_v35, %v4742_v35  ;;  %v6305_v49 = vpop.f32.mrf.mxu1  ;;  %v4747_v42 = vadd.f32 %v6338_v26, %v4277_v56  ;;  %v3192_v16 = vadd.f32 %v9072_v40, %v8965_v11  ;;  %v3556_v0 = vadd.f32 %v9062_v36, %v3194_v17 }
 0x205   : > { %v4278_v33 = vadd.f32 %v6305_v49, %v3552_v4  ;;  %v6342_v10 = vpop.f32.mrf.mxu0  ;;  %5887 = vst [vmem:[%s9155_s7 + $0x10] sm:$0xff] %v5819_v62   ;;  %v4934_v46 = vadd.f32 %v4933_v3, %v4743_v54  ;;  %v4745_v15 = vadd.f32 %v4642_v48, %v4275_v7  ;;  %v3195_v36 = vadd.f32 %v9079_v53, %v8971_v9 }
 0x206   : > { %v5002_v57 = vadd.f32 %v5001_v28, %v4971_v8  ;;  %v4175_v50 = vpop.f32.mrf.mxu1  ;;  %v3554_v40 = vadd.f32 %v9068_v5, %v3192_v16  ;;  %v3198_v13 = vadd.f32 %v9085_v14, %v8974_v34  ;;  %v4976_v20 = vmul.f32 %v4747_v42, %v4747_v42 }
 0x207   : > { %v4748_v37 = vadd.f32 %v6339_v47, %v4278_v33  ;;  %v4276_v21 = vadd.f32 %v4175_v50, %v3550_v2  ;;  %v4658_v60 = vpop.f32.mrf.mxu0  ;;  %v4935_v43 = vadd.f32 %v4934_v46, %v4744_v63  ;;  %v4974_v26 = vmul.f32 %v4745_v15, %v4745_v15 }
 0x208   : > { %v5003_v30 = vadd.f32 %v5002_v57, %v4972_v22  ;;  %v6308_v12 = vpop.f32.mrf.mxu1  ;;  %v3557_v53 = vadd.f32 %v9074_v25, %v3195_v36  ;;  %v3196_v34 = vadd.f32 %v9087_v32, %v8977_v59  ;;  %v3560_v17 = vadd.f32 %v9077_v23, %v3198_v13  ;;  %v9537_v32 = vld [vmem:[#allocation9_spill] sm:$0xff]  ;;  %v9543_v36 = vld [vmem:[#allocation11_spill] sm:$0xff] }
 0x209   : > { %v5834_v45 = vpack.c.bf16 %v4748_v37, %v4747_v42  ;;  %v4746_v55 = vadd.f32 %v4645_v51, %v4276_v21  ;;  %v6343_v54 = vpop.f32.mrf.mxu0  ;;  %v4936_v18 = vadd.f32 %v4935_v43, %v4745_v15  ;;  %v4281_v63 = vadd.f32 %v6308_v12, %v9066_v39 }
 0x20a   : > { %v5004_v48 = vadd.f32 %v5003_v30, %v4973_v41  ;;  %v4188_v61 = vpop.f32.mrf.mxu1  ;;  %v4977_v5 = vmul.f32 %v4748_v37, %v4748_v37  ;;  %v9538_v41 = vld [vmem:[#allocation8_spill] sm:$0xff] }
 0x20b   : > { %5890 = vst [vmem:[%s9155_s7 + $0x28] sm:$0xff] %v5834_v45   ;;  %v5829_v58 = vpack.c.bf16 %v4746_v55, %v4745_v15  ;;  %v4975_v44 = vmul.f32 %v4746_v55, %v4746_v55  ;;  %v4279_v24 = vadd.f32 %v4188_v61, %v3553_v27  ;;  %v4661_v6 = vpop.f32.mrf.mxu0  ;;  %v4937_v38 = vadd.f32 %v4936_v18, %v4746_v55  ;;  %v9539_v30 = vld [vmem:[#allocation20_spill] sm:$0xff] }
 0x20c   : > { %v5005_v31 = vadd.f32 %v5004_v48, %v4974_v26  ;;  %v6309_v11 = vpop.f32.mrf.mxu1  ;;  %v4751_v7 = vadd.f32 %v6342_v10, %v4281_v63  ;;  %v3199_v23 = vadd.f32 %v9094_v29, %v9538_v41  ;;  %v3202_v43 = vadd.f32 %v9100_v1, %v9539_v30  ;;  %v9540_v63 = vld [vmem:[#allocation12_spill] sm:$0xff]  ;;  %v9541_v1 = vld [vmem:[#allocation25_spill] sm:$0xff] }
 0x20d   : > { %5889 = vst [vmem:[%s9155_s7 + $0x20] sm:$0xff] %v5829_v58   ;;  %v4282_v47 = vadd.f32 %v6309_v11, %v3556_v0  ;;  %v6346_v35 = vpop.f32.mrf.mxu0  ;;  %v4938_v4 = vadd.f32 %v4937_v38, %v4747_v42  ;;  %v4749_v39 = vadd.f32 %v4658_v60, %v4279_v24  ;;  %v3558_v60 = vadd.f32 %v9537_v32, %v3196_v34  ;;  %v9547_v34 = vld [vmem:[#allocation26_spill] sm:$0xff] }
 0x20e   : > { %v5006_v28 = vadd.f32 %v5005_v31, %v4975_v44  ;;  %v4191_v56 = vpop.f32.mrf.mxu1  ;;  %v4980_v16 = vmul.f32 %v4751_v7, %v4751_v7  ;;  %v3561_v24 = vadd.f32 %v9540_v63, %v3199_v23  ;;  %v3564_v13 = vadd.f32 %v9543_v36, %v3202_v43  ;;  %v9550_v23 = vld [vmem:[#allocation21_spill] sm:$0xff]  ;;  %v9551_v43 = vld [vmem:[#allocation27_spill] sm:$0xff]  ;;  %v9557_v36 = vld [vmem:[#allocation32_spill] sm:$0xff] }
 0x20f   : > { %v4752_v51 = vadd.f32 %v6343_v54, %v4282_v47  ;;  %v4280_v62 = vadd.f32 %v4191_v56, %v3554_v40  ;;  %v4674_v3 = vpop.f32.mrf.mxu0  ;;  %v4939_v49 = vadd.f32 %v4938_v4, %v4748_v37  ;;  %v4978_v10 = vmul.f32 %v4749_v39, %v4749_v39  ;;  %v9544_v56 = vld [vmem:[#allocation13_spill] sm:$0xff] }
 0x210   : > { %v5007_v8 = vadd.f32 %v5006_v28, %v4976_v20  ;;  %v6312_v9 = vpop.f32.mrf.mxu1 }
 0x211   : > { %v5844_v14 = vpack.c.bf16 %v4752_v51, %v4751_v7  ;;  %v4750_v2 = vadd.f32 %v4661_v6, %v4280_v62  ;;  %v6347_v52 = vpop.f32.mrf.mxu0  ;;  %v4940_v33 = vadd.f32 %v4939_v49, %v4749_v39  ;;  %v4285_v50 = vadd.f32 %v6312_v9, %v9081_v19  ;;  %v9542_v6 = vld [vmem:[#allocation19_spill] sm:$0xff]  ;;  %v9545_v49 = vld [vmem:[#allocation16_spill] sm:$0xff] }
 0x212   : > { %v5008_v22 = vadd.f32 %v5007_v8, %v4977_v5  ;;  %v4204_v46 = vpop.f32.mrf.mxu1  ;;  %v4981_v61 = vmul.f32 %v4752_v51, %v4752_v51  ;;  %v3200_v31 = vadd.f32 %v9542_v6, %v9541_v1 }
 0x213   : > { %5892 = vst [vmem:[%s9155_s7 + $0x38] sm:$0xff] %v5844_v14   ;;  %v5839_v57 = vpack.c.bf16 %v4750_v2, %v4749_v39  ;;  %v4979_v15 = vmul.f32 %v4750_v2, %v4750_v2  ;;  %v4283_v42 = vadd.f32 %v4204_v46, %v3557_v53  ;;  %v4677_v25 = vpop.f32.mrf.mxu0  ;;  %v4941_v21 = vadd.f32 %v4940_v33, %v4750_v2  ;;  %v9546_v53 = vld [vmem:[#allocation15_spill] sm:$0xff]  ;;  %v9548_v2 = vld [vmem:[#allocation24_spill] sm:$0xff] }
 0x214   : > { %v5009_v37 = vadd.f32 %v5008_v22, %v4978_v10  ;;  %v6313_v59 = vpop.f32.mrf.mxu1  ;;  %v4755_v0 = vadd.f32 %v6346_v35, %v4285_v50  ;;  %v3562_v9 = vadd.f32 %v9545_v49, %v3200_v31  ;;  %v3203_v14 = vadd.f32 %v9547_v34, %v9546_v53 }
 0x215   : > { %5891 = vst [vmem:[%s9155_s7 + $0x30] sm:$0xff] %v5839_v57   ;;  %v4286_v12 = vadd.f32 %v6313_v59, %v3560_v17  ;;  %v4942_v45 = vadd.f32 %v4941_v21, %v4751_v7  ;;  %v4753_v19 = vadd.f32 %v4674_v3, %v4283_v42 }
 0x216   : > { %v6350_v27 = vpop.f32.mrf.mxu0  ;;  %v5010_v55 = vadd.f32 %v5009_v37, %v4979_v15  ;;  %v4207_v54 = vpop.f32.mrf.mxu1  ;;  %v4984_v22 = vmul.f32 %v4755_v0, %v4755_v0  ;;  %v3565_v30 = vadd.f32 %v9550_v23, %v3203_v14 }
 0x217   : > { %v4756_v18 = vadd.f32 %v6347_v52, %v4286_v12  ;;  %v4284_v26 = vadd.f32 %v4207_v54, %v3558_v60  ;;  %v4943_v44 = vadd.f32 %v4942_v45, %v4752_v51  ;;  %v4982_v35 = vmul.f32 %v4753_v19, %v4753_v19  ;;  %v9549_v52 = vld [vmem:[#allocation17_spill] sm:$0xff]  ;;  %v9552_v12 = vld [vmem:[#allocation14_spill] sm:$0xff]  ;;  %v9553_v54 = vld [vmem:[#allocation23_spill] sm:$0xff] }
 0x218   : > { %v4690_v48 = vpop.f32.mrf.mxu0  ;;  %v5011_v58 = vadd.f32 %v5010_v55, %v4980_v16  ;;  %v6316_v29 = vpop.f32.mrf.mxu1  ;;  %v3206_v17 = vadd.f32 %v9549_v52, %v9548_v2  ;;  %v3204_v16 = vadd.f32 %v9552_v12, %v9551_v43  ;;  %v9560_v2 = vld [vmem:[#allocation22_spill] sm:$0xff] }
 0x219   : > { %v5854_v38 = vpack.c.bf16 %v4756_v18, %v4755_v0  ;;  %v4754_v11 = vadd.f32 %v4677_v25, %v4284_v26  ;;  %v4944_v47 = vadd.f32 %v4943_v44, %v4753_v19  ;;  %v4289_v7 = vadd.f32 %v6316_v29, %v9544_v56 }
 0x21a   : > { %v6351_v40 = vpop.f32.mrf.mxu0  ;;  %v5012_v20 = vadd.f32 %v5011_v58, %v4981_v61  ;;  %v4220_v4 = vpop.f32.mrf.mxu1  ;;  %v4985_v59 = vmul.f32 %v4756_v18, %v4756_v18 }
 0x21b   : > { %5894 = vst [vmem:[%s9155_s7 + $0x48] sm:$0xff] %v5854_v38   ;;  %v5849_v28 = vpack.c.bf16 %v4754_v11, %v4753_v19  ;;  %v4983_v39 = vmul.f32 %v4754_v11, %v4754_v11  ;;  %v4287_v51 = vadd.f32 %v4220_v4, %v3561_v24  ;;  %v4945_v5 = vadd.f32 %v4944_v47, %v4754_v11  ;;  %v9555_v38 = vld [vmem:[#allocation30_spill] sm:$0xff]  ;;  %v9558_v47 = vld [vmem:[#allocation31_spill] sm:$0xff] }
 0x21c   : > { %v4693_v62 = vpop.f32.mrf.mxu0  ;;  %v5013_v3 = vadd.f32 %v5012_v20, %v4982_v35  ;;  %v6317_v8 = vpop.f32.mrf.mxu1  ;;  %v4759_v42 = vadd.f32 %v6350_v27, %v4289_v7  ;;  %v3566_v11 = vadd.f32 %v9555_v38, %v3204_v16  ;;  %v9559_v35 = vld [vmem:[#allocation35_spill] sm:$0xff]  ;;  %v9565_v16 = vld [vmem:[#allocation34_spill] sm:$0xff] }
 0x21d   : > { %5893 = vst [vmem:[%s9155_s7 + $0x40] sm:$0xff] %v5849_v28   ;;  %v4290_v33 = vadd.f32 %v6317_v8, %v3564_v13  ;;  %v4946_v46 = vadd.f32 %v4945_v5, %v4755_v0  ;;  %v4757_v15 = vadd.f32 %v4690_v48, %v4287_v51  ;;  %v3568_v0 = vadd.f32 %v9553_v54, %v3206_v17  ;;  %v9561_v17 = vld [vmem:[#allocation10_spill] sm:$0xff] }
 0x21e   : > { %v6354_v10 = vpop.f32.mrf.mxu0  ;;  %v5014_v57 = vadd.f32 %v5013_v3, %v4983_v39  ;;  %v4223_v50 = vpop.f32.mrf.mxu1  ;;  %v3210_v20 = vadd.f32 %v9559_v35, %v9558_v47  ;;  %v4988_v39 = vmul.f32 %v4759_v42, %v4759_v42 }
 0x21f   : > { %v4760_v25 = vadd.f32 %v6351_v40, %v4290_v33  ;;  %v4288_v37 = vadd.f32 %v4223_v50, %v3562_v9  ;;  %v4947_v60 = vadd.f32 %v4946_v46, %v4756_v18  ;;  %v4986_v27 = vmul.f32 %v4757_v15, %v4757_v15  ;;  %v9554_v18 = vld [vmem:[#allocation28_spill] sm:$0xff]  ;;  %v9556_v40 = vld [vmem:[#allocation29_spill] sm:$0xff] }
 0x220   : > { %v4706_v21 = vpop.f32.mrf.mxu0  ;;  %v5015_v32 = vadd.f32 %v5014_v57, %v4984_v22  ;;  %v6320_v41 = vpop.f32.mrf.mxu1  ;;  %v3207_v13 = vadd.f32 %v9557_v36, %v9556_v40  ;;  %v9562_v33 = vld [vmem:[#allocation36_spill] sm:$0xff] }
 0x221   : > { %v5864_v45 = vpack.c.bf16 %v4760_v25, %v4759_v42  ;;  %v4758_v55 = vadd.f32 %v4693_v62, %v4288_v37  ;;  %v4948_v26 = vadd.f32 %v4947_v60, %v4757_v15  ;;  %v4293_v29 = vadd.f32 %v6320_v41, %v9554_v18 }
 0x222   : > { %v6355_v19 = vpop.f32.mrf.mxu0  ;;  %v5016_v48 = vadd.f32 %v5015_v32, %v4985_v59  ;;  %v4236_v61 = vpop.f32.mrf.mxu1  ;;  %v4989_v49 = vmul.f32 %v4760_v25, %v4760_v25  ;;  %v3569_v52 = vadd.f32 %v9560_v2, %v3207_v13  ;;  %v3208_v22 = vadd.f32 %v9562_v33, %v9561_v17 }
 0x223   : > { %5896 = vst [vmem:[%s9155_s7 + $0x58] sm:$0xff] %v5864_v45   ;;  %v5859_v58 = vpack.c.bf16 %v4758_v55, %v4757_v15  ;;  %v4987_v44 = vmul.f32 %v4758_v55, %v4758_v55  ;;  %v4291_v63 = vadd.f32 %v4236_v61, %v3565_v30  ;;  %v4949_v6 = vadd.f32 %v4948_v26, %v4758_v55  ;;  %v9563_v15 = vld [vmem:[#allocation18_spill] sm:$0xff] }
 0x224   : > { %v4709_v24 = vpop.f32.mrf.mxu0  ;;  %v5017_v1 = vadd.f32 %v5016_v48, %v4986_v27  ;;  %v6321_v31 = vpop.f32.mrf.mxu1  ;;  %v4763_v3 = vadd.f32 %v6354_v10, %v4293_v29  ;;  %v3572_v50 = vadd.f32 %v9563_v15, %v3210_v20  ;;  %v3570_v45 = vadd.f32 %v9565_v16, %v3208_v22 }
 0x225   : > { %5895 = vst [vmem:[%s9155_s7 + $0x50] sm:$0xff] %v5859_v58   ;;  %v4294_v4 = vadd.f32 %v6321_v31, %v3568_v0  ;;  %v4950_v56 = vadd.f32 %v4949_v6, %v4759_v42  ;;  %v4761_v51 = vadd.f32 %v4706_v21, %v4291_v63 }
 0x226   : > { %v6358_v28 = vpop.f32.mrf.mxu0  ;;  %v5018_v7 = vadd.f32 %v5017_v1, %v4987_v44  ;;  %v4239_v62 = vpop.f32.mrf.mxu1 }
 0x227   : > { %v4764_v5 = vadd.f32 %v6355_v19, %v4294_v4  ;;  %v4292_v8 = vadd.f32 %v4239_v62, %v3566_v11  ;;  %v4951_v53 = vadd.f32 %v4950_v56, %v4760_v25  ;;  %v4990_v10 = vmul.f32 %v4761_v51, %v4761_v51  ;;  %v9564_v25 = vld [vmem:[#allocation33_spill] sm:$0xff] }
 0x228   : > { %v5019_v9 = vadd.f32 %v5018_v7, %v4988_v39  ;;  %v6324_v34 = vpop.f32.mrf.mxu1  ;;  %v4722_v14 = vpop.f32.mrf.mxu0  ;;  %v4992_v19 = vmul.f32 %v4763_v3, %v4763_v3 }
 0x229   : > { %v5874_v46 = vpack.c.bf16 %v4764_v5, %v4763_v3  ;;  %v4762_v57 = vadd.f32 %v4709_v24, %v4292_v8  ;;  %v4952_v42 = vadd.f32 %v4951_v53, %v4761_v51  ;;  %v4297_v60 = vadd.f32 %v6324_v34, %v9564_v25 }
 0x22a   : > { %v5020_v37 = vadd.f32 %v5019_v9, %v4989_v49  ;;  %v4252_v21 = vpop.f32.mrf.mxu1  ;;  %v6359_v12 = vpop.f32.mrf.mxu0  ;;  %v4993_v44 = vmul.f32 %v4764_v5, %v4764_v5 }
 0x22b   : > { %5898 = vst [vmem:[%s9155_s7 + $0x68] sm:$0xff] %v5874_v46   ;;  %v5869_v59 = vpack.c.bf16 %v4762_v57, %v4761_v51  ;;  %v4991_v32 = vmul.f32 %v4762_v57, %v4762_v57  ;;  %v4295_v41 = vadd.f32 %v4252_v21, %v3569_v52  ;;  %v4953_v30 = vadd.f32 %v4952_v42, %v4762_v57 }
 0x22c   : > { %v5021_v23 = vadd.f32 %v5020_v37, %v4990_v10  ;;  %v6325_v43 = vpop.f32.mrf.mxu1  ;;  %v4767_v48 = vadd.f32 %v6358_v28, %v4297_v60  ;;  %v4725_v63 = vpop.f32.mrf.mxu0 }
 0x22d   : > { %5897 = vst [vmem:[%s9155_s7 + $0x60] sm:$0xff] %v5869_v59   ;;  %v4298_v55 = vadd.f32 %v6325_v43, %v3572_v50  ;;  %v4954_v54 = vadd.f32 %v4953_v30, %v4763_v3  ;;  %v4765_v26 = vadd.f32 %v4722_v14, %v4295_v41 }
 0x22e   : > { %v5022_v0 = vadd.f32 %v5021_v23, %v4991_v32  ;;  %v4255_v27 = vpop.f32.mrf.mxu1  ;;  %v4996_v47 = vmul.f32 %v4767_v48, %v4767_v48 }
 0x22f   : > { %v4768_v61 = vadd.f32 %v6359_v12, %v4298_v55  ;;  %v4296_v58 = vadd.f32 %v4255_v27, %v3570_v45  ;;  %v4955_v29 = vadd.f32 %v4954_v54, %v4764_v5  ;;  %v4994_v31 = vmul.f32 %v4765_v26, %v4765_v26 }
 0x230   : > { %v5023_v18 = vadd.f32 %v5022_v0, %v4992_v19 }
 0x231   : > { %v5884_v24 = vpack.c.bf16 %v4768_v61, %v4767_v48  ;;  %v4766_v1 = vadd.f32 %v4725_v63, %v4296_v58  ;;  %v4956_v6 = vadd.f32 %v4955_v29, %v4765_v26 }
 0x232   : > { %v5024_v38 = vadd.f32 %v5023_v18, %v4993_v44 }
 0x233   : > { %5900 = vst [vmem:[%s9155_s7 + $0x78] sm:$0xff] %v5884_v24   ;;  %v5879_v11 = vpack.c.bf16 %v4766_v1, %v4765_v26  ;;  %v4995_v40 = vmul.f32 %v4766_v1, %v4766_v1  ;;  %v4957_v13 = vadd.f32 %v4956_v6, %v4766_v1 }
 0x234   : > { %v5025_v36 = vadd.f32 %v5024_v38, %v4994_v31 }
 0x235   : > { %5899 = vst [vmem:[%s9155_s7 + $0x70] sm:$0xff] %v5879_v11   ;;  %v4958_v35 = vadd.f32 %v4957_v13, %v4767_v48 }
 0x236   : > { %v5026_v20 = vadd.f32 %v5025_v36, %v4995_v40 }
 0x237   : > { %6498 = shalt.err (!%p6495_p5)
}
 0x238   : > { %s6499_s28 = scalar_lea.hbm %s9237_s18, 2048  ;;  %s6503_s4 = scalar_lea.hbm %s9314_s2, 4096 }
 0x239   : > { %p6500_p6 = scmp.ne.s32.totalorder %s9237_s18, %s6499_s28  ;;  %p6504_p10 = scmp.lt.s32.totalorder %s9237_s18, %s9314_s2 }
 0x23a   : > { %p6505_p11 = scmp.lt.s32.totalorder %s6503_s4, %s6499_s28 }
 0x23b   : > { %p6501_p7 = pnand %p6500_p6, %p6657_p4 }
 0x23c   : > { %p6506_p12 = por %p6505_p11, %p6504_p10 }
 0x23d   : > { %p6502_p9 = pneg %p6501_p7 }
 0x23f   : > { %p6507_p13 = pnand %p6506_p12, %p6502_p9 }
 0x241   : > { %6510 = shalt.err (!%p6507_p13)
}
 0x242   : > { %s6594_s8 = smov 64   ;;  %s6595_s10 = smov 4   ;;  %v4997_v4 = vmul.f32 %v4768_v61, %v4768_v61  ;;  %v4959_v28 = vadd.f32 %v4958_v35, %v4768_v61  ;;  %v5027_v39 = vadd.f32 %v5026_v20, %v4996_v47  ;;  %v5035_v3 = vlaneseq }
 0x243   : > { %6373 = dma.vmem_to_hbm [thread:$0]  (%p6657_p4), %s9239_s9, 2048, %s9237_s18, %s5043_s19, %s6594_s8, %s6594_s8, %s6595_s10  }
 0x244   : > { %v4960_v56 = vrot.slane %v4959_v28, 4  ;;  %v5028_v7 = vadd.f32 %v5027_v39, %v4997_v4  ;;  %s5196_s11 = sshll.u32 %s9139_s5, 3  ;;  %v5036_v53 = vshrl.u32 %v5035_v3, 7  ;;  %s5770_s9 = sshll.u32 %s6583_s15, 7 }
 0x245   : > { %s190_s18 = scalar_lea.vmem [#allocation4], %s5196_s11  ;;  %s9271_s26 = scalar_lea.hbm %s9315_s3, %s5770_s9 }
 0x246   : > { %v4961_v51 = vadd.f32 %v4960_v56, %v4959_v28  ;;  %v5029_v62 = vrot.slane %v5028_v7, 4  ;;  %vm5038_vm8 = vcmp.eq.s32.totalorder %v5036_v53, 1  ;;  %s5079_s19 = sshll.u32 %s190_s18, 4  ;;  %vm5037_vm9 = vcmp.eq.s32.totalorder %v5036_v53, 0  ;;  %s5048_s27 = scalar_lea.sflag [#allocation5], %s9139_s5  ;;  %s5080_s19 = int_to_ptr.vmem [resolvable:$true] %s5079_s19 }
 0x247   : > { %s6511_s28 = scalar_lea.vmem %s5080_s19, 128  ;;  %s6596_s15 = smov [#allocation4]  }
 0x248   : > { %v4962_v5 = vrot.slane %v4961_v51, 2  ;;  %v5030_v8 = vadd.f32 %v5029_v62, %v5028_v7  ;;  %p6512_p0 = scmp.ne.s32.totalorder %s5080_s19, %s6511_s28  ;;  %s6515_s29 = sshll.u32 %s6596_s15, 4  ;;  %s6516_s29 = int_to_ptr.vmem [resolvable:$false] %s6515_s29 }
 0x249   : > { %s6517_s30 = scalar_lea.vmem %s6516_s29, 256  ;;  %p6518_p3 = scmp.lt.s32.totalorder %s5080_s19, %s6516_s29 }
 0x24a   : > { %v4963_v49 = vadd.f32 %v4962_v5, %v4961_v51  ;;  %v5031_v9 = vrot.slane %v5030_v8, 2  ;;  %p6513_p1 = pnand %p6512_p0, %p6657_p4  ;;  %p6519_p5 = scmp.lt.s32.totalorder %s6517_s30, %s6511_s28 }
 0x24c   : > { %v5032_v34 = vadd.f32 %v5031_v9, %v5030_v8  ;;  %v4964_v14 = vrot.slane %v4963_v49, 1  ;;  %p6514_p2 = pneg %p6513_p1  ;;  %p6520_p6 = por %p6519_p5, %p6518_p3 }
 0x24e   : > { %v5033_v2 = vrot.slane %v5032_v34, 1  ;;  %v4965_v17 = vadd.f32 %v4964_v14, %v4963_v49  ;;  %p6521_p7 = pnand %p6520_p6, %p6514_p2 }
 0x250   : > { %v5034_v52 = vadd.f32 %v5033_v2, %v5032_v34 }
 0x252   : > { %v5039_v33 = vsel %vm5038_vm8, %v5034_v52, 0.0 }
 0x253   : > { %v5040_v22 = vsel %vm5037_vm9, %v4965_v17, %v5039_v33 }
 0x254   : > { %5041 = vst [vmem:[%s190_s18] sm:$0xff] %v5040_v22 }
 0x255   : > { %6524 = shalt.err (!%p6521_p7)
}
 0x256   : > { %s6525_s4 = scalar_lea.hbm %s9271_s26, 128  ;;  %s6529_s7 = scalar_lea.hbm %s9315_s3, 256 }
 0x257   : > { %p6526_p9 = scmp.ne.s32.totalorder %s9271_s26, %s6525_s4  ;;  %p6530_p12 = scmp.lt.s32.totalorder %s9271_s26, %s9315_s3 }
 0x258   : > { %p6531_p13 = scmp.lt.s32.totalorder %s6529_s7, %s6525_s4 }
 0x259   : > { %p6527_p10 = pnand %p6526_p9, %p6657_p4 }
 0x25a   : > { %p6532_p0 = por %p6531_p13, %p6530_p12 }
 0x25b   : > { %p6528_p11 = pneg %p6527_p10 }
 0x25d   : > { %p6533_p1 = pnand %p6532_p0, %p6528_p11 }
 0x25f   : > { %6536 = shalt.err (!%p6533_p1)
}
 0x260   : > { %6374 = dma.vmem_to_hbm [thread:$0]  (%p6657_p4), %s5080_s19, 128, %s9271_s26, %s5048_s27  }
 0x261 PF: > { %p6384_p2 = scmp.ge.s32.totalorder %s6591_s17, 2  ;;  %s5091_s11 = sand.u32 1, %s6571_s12  }
 0x262   : > { %s5092_s9 = scalar_lea.sflag [#allocation3], %s5091_s11 }
 0x263   : > { %p6378_p3 = pnand %p6384_p2, %p6664_p8 }
 0x265   : > { %p6379_p5 = pneg %p6378_p3 }
 0x267   : > { %6562 = dma.done.wait (%p6379_p5), %s5092_s9, 2048  }
 0x268   : > { %6564 = vsyncadd (%p6379_p5), %s5092_s9, 4294965248  ;;  %s5101_s18 = scalar_lea.sflag [#allocation5], %s5091_s11 }
 0x269   : > { %6566 = dma.done.wait (%p6379_p5), %s5101_s18, 128  }
 0x26a   : > { %6568 = vsyncadd (%p6379_p5), %s5101_s18, 4294967168  ;;  %s20_s17 = sadd.s32 1, %s6591_s17   ;;  %s9566_s12 = smov %s6575_s13 }
 0x26b   : > { %p17_p6 = scmp.ge.s32.totalorder %s20_s17, 4   ;;  %s9567_s13 = smov %s6579_s14 }
 0x26c   : > { %s9568_s14 = smov %s6670_s25  ;;  %s9569_s15 = smov %s6587_s16 }
 0x26d   : > { %s9570_s16 = smov %s9572_s20  ;;  %19 = sbr.rel (!%p17_p6) target bundleno = 6 (0x6), region = 91 }
 0x272   :  { %5106 = vsyncpa [#allocation3], 1 }
 0x273   :  { %5108 = vsyncpa [#allocation3 + $0x1], 1 }
 0x274   :  { %5109 = vsyncpa [#allocation5], 1 }
 0x275   :  { %5111 = vsyncpa [#allocation5 + $0x1], 1 }

</bundles_post_ra>
